<compile_context>
chip_gen: v6e
topology: v6e:2x2x1
jax: 0.10.0
libtpu: 0.0.40
codegen_flags: <defaults>
</compile_context>

<pallas_src>
import functools
import math

import numpy as np
import jax
import jax.numpy as jnp
from jax import lax
from jax.experimental import pallas as pl
from jax.experimental.pallas import tpu as pltpu

_HALF_PI = math.pi / 2.0


def _round_up(x, m):
    return ((x + m - 1) // m) * m


# -----------------------------------------------------------------------------
# Path A (preferred): fused kernel that writes the interleaved output directly.
# -----------------------------------------------------------------------------
def _fused_kernel(xT_ref, o_ref, *, freqs, include_input, input_dims, chunk,
                  n_chunks, c_out, c_pad):
    """xT_ref: (input_dims, TILE_R) f32, rows in lanes (lane-dense compute).
    o_ref:  (TILE_R, c_out) interleaved output rows (c_out = D * n_fns)."""

    def body(c, carry):
        col0 = pl.multiple_of(c * chunk, chunk)
        xc = xT_ref[:, pl.ds(col0, chunk)]            # (D, chunk) f32, lanes = rows

        # Channel stack, PyTorch order: [x, sin f0, cos f0, sin f1, cos f1, ...].
        # cos rows are realized as sin(t + pi/2) so a single transcendental pass
        # covers the whole (sublane-dense) stack.
        pieces = []
        if include_input:
            pieces.append(xc)                         # identity rows (no phase)
        for f in freqs:
            xf = xc * f                               # exact power-of-two scale
            pieces.append(xf)                         # sin rows
            pieces.append(xf + _HALF_PI)              # cos rows
        if c_pad > c_out:
            pieces.append(jnp.zeros((c_pad - c_out, chunk), jnp.float32))
        xm = jnp.concatenate(pieces, axis=0)          # (c_pad, chunk)
        s = jnp.sin(xm)                               # one EUP pass over the stack
        if include_input:
            row = lax.broadcasted_iota(jnp.int32, (c_pad, 1), 0)
            vals = jnp.where(row < input_dims, xm, s)  # keep identity rows exact
        else:
            vals = s

        # Re-orient for the contiguous (rows, c_out) HBM store.
        t = vals.T                                    # (chunk, c_pad)
        o_ref[pl.ds(col0, chunk), :] = t[:, :c_out].astype(o_ref.dtype)
        return carry

    lax.fori_loop(0, n_chunks, body, 0)


def _build_fused_embed(N_freqs, input_dims, include_input, out_dtype, *,
                       max_tile_rows=16384, chunk=512):
    freqs = tuple(float(2.0 ** i) for i in range(N_freqs))
    n_fns = (1 if include_input else 0) + 2 * N_freqs
    c_out = input_dims * n_fns
    c_pad = _round_up(max(c_out, 8), 8)
    out_dtype = np.dtype(out_dtype)

    # VMEM guard: per-row bytes for the double-buffered pipeline
    #   output block (lanes padded to 128): 128*4, input block: 8*4.
    vmem_budget = 40 * 1024 * 1024
    per_row = 2 * (128 * 4 + 8 * 4)
    cap = max(chunk, (vmem_budget // per_row) // chunk * chunk)
    max_tile_rows = max(chunk, (int(min(max(max_tile_rows, chunk), cap)) // chunk) * chunk)

    kernel_tpl = functools.partial(
        _fused_kernel, freqs=freqs, include_input=include_input,
        input_dims=input_dims, chunk=chunk, c_out=c_out, c_pad=c_pad)

    def embed(inputs):
        B, N, D = inputs.shape
        assert D == input_dims
        rows = B * N

        # Balanced row tiles; keep the tile count even when >1 so the "parallel"
        # grid axis can shard across v7x's two TensorCores.
        num_tiles = pl.cdiv(rows, max_tile_rows)
        if num_tiles > 1 and num_tiles % 2 == 1:
            num_tiles += 1
        tile_r = min(max_tile_rows, _round_up(pl.cdiv(rows, num_tiles), chunk))
        grid = pl.cdiv(rows, tile_r)
        n_chunks = tile_r // chunk

        # Small wrapper transpose of the input only (12 B/row of payload); the big
        # interleaved output is written once, straight from the kernel.
        xT = inputs.reshape(rows, D).astype(jnp.float32).T        # (D, rows)

        kernel = functools.partial(kernel_tpl, n_chunks=n_chunks)
        out = pl.pallas_call(
            kernel,
            out_shape=jax.ShapeDtypeStruct((rows, c_out), out_dtype),
            grid_spec=pltpu.PrefetchScalarGridSpec(
                num_scalar_prefetch=0,
                grid=(grid,),
                in_specs=[pl.BlockSpec((input_dims, tile_r), lambda i: (0, i))],
                out_specs=pl.BlockSpec((tile_r, c_out), lambda i: (i, 0)),
            ),
            compiler_params=pltpu.CompilerParams(
                dimension_semantics=("parallel",),
                vmem_limit_bytes=48 * 1024 * 1024,
            ),
        )(xT)
        return out.reshape(B, N, c_out)

    return jax.jit(embed)


# -----------------------------------------------------------------------------
# Path B (fallback): proven lane-dense slab kernel + wrapper-side interleave.
# -----------------------------------------------------------------------------
_SLAB_LANES = 512


def _slab_kernel(x_ref, o_ref, *, freqs, include_input):
    """x_ref: (TILE_M, 512) f32; o_ref: (n_fns, TILE_M, 512)."""
    x = x_ref[...]
    k = 0
    if include_input:
        o_ref[0] = x.astype(o_ref.dtype)
        k = 1
    for f in freqs:
        xf = x * f
        o_ref[k] = jnp.sin(xf).astype(o_ref.dtype)
        o_ref[k + 1] = jnp.cos(xf).astype(o_ref.dtype)
        k += 2


def _build_slab_embed(N_freqs, input_dims, include_input, out_dtype, *,
                      max_row_tile=512):
    freqs = tuple(float(2.0 ** i) for i in range(N_freqs))
    n_fns = (1 if include_input else 0) + 2 * N_freqs
    c_out = input_dims * n_fns
    out_dtype = np.dtype(out_dtype)
    kernel = functools.partial(_slab_kernel, freqs=freqs, include_input=include_input)

    vmem_budget = 24 * 1024 * 1024
    bytes_per_row = 2 * _SLAB_LANES * (4 + n_fns * out_dtype.itemsize)
    tile_cap = max(8, (vmem_budget // bytes_per_row) // 8 * 8)
    pref_tile_m = max(8, (int(min(max_row_tile, tile_cap)) // 8) * 8)

    def embed(inputs):
        B, N, D = inputs.shape
        assert D == input_dims
        rows = B * N
        elems = rows * D

        m_needed = max(int(pl.cdiv(elems, _SLAB_LANES)), 1)
        tile_m = int(min(pref_tile_m, _round_up(m_needed, 8)))
        m_padded = _round_up(m_needed, tile_m)
        padded_elems = m_padded * _SLAB_LANES

        flat = inputs.reshape(elems).astype(jnp.float32)
        if padded_elems != elems:          # skip the pad copy for aligned shapes
            flat = jnp.pad(flat, (0, padded_elems - elems))
        x2d = flat.reshape(m_padded, _SLAB_LANES)

        slabs = pl.pallas_call(
            kernel,
            out_shape=jax.ShapeDtypeStruct((n_fns, m_padded, _SLAB_LANES), out_dtype),
            grid_spec=pltpu.PrefetchScalarGridSpec(
                num_scalar_prefetch=0,
                grid=(m_padded // tile_m,),
                in_specs=[pl.BlockSpec((tile_m, _SLAB_LANES), lambda i: (i, 0))],
                out_specs=pl.BlockSpec((n_fns, tile_m, _SLAB_LANES), lambda i: (0, i, 0)),
            ),
            compiler_params=pltpu.CompilerParams(
                dimension_semantics=("parallel",),
                vmem_limit_bytes=32 * 1024 * 1024,
            ),
        )(x2d)

        out = slabs.reshape(n_fns, padded_elems)
        if padded_elems != elems:
            out = out[:, :elems]
        # Interleave back to [x, sin f0, cos f0, ...] (only used on the fallback path).
        out = out.reshape(n_fns, rows, D).transpose(1, 0, 2)
        return out.reshape(B, N, c_out)

    return jax.jit(embed)


# -----------------------------------------------------------------------------
# Public builder + pure-JAX reference.
# -----------------------------------------------------------------------------
def _reference_embed(inputs, N_freqs, include_input=True):
    x = inputs.astype(jnp.float32)
    outs = []
    if include_input:
        outs.append(x)
    for i in range(N_freqs):
        f = 2.0 ** i
        outs.append(jnp.sin(x * f))
        outs.append(jnp.cos(x * f))
    return jnp.concatenate(outs, axis=2)


def make_embedder(N_freqs, input_dims=3, include_input=True, *,
                  out_dtype=jnp.float32, max_tile_rows=16384, interleave="auto"):
    """Returns embed(inputs) mirroring Embedder.forward for (B, N, input_dims) inputs."""
    fused = _build_fused_embed(N_freqs, input_dims, include_input, out_dtype,
                               max_tile_rows=max_tile_rows)
    if interleave == "fused":
        return fused
    slab = _build_slab_embed(N_freqs, input_dims, include_input, out_dtype)
    if interleave == "slab":
        return slab

    # "auto": probe the fused kernel on tiny shapes (an unaligned single block and an
    # unaligned two-block grid), comparing against the pure-JAX reference; fall back
    # to the slab path on any compile/runtime/numerics failure.
    tol = 3e-5 if np.dtype(out_dtype) == np.float32 else 3e-2
    try:
        probes = [
            (fused, (1, 37)),
            (_build_fused_embed(N_freqs, input_dims, include_input, out_dtype,
                                max_tile_rows=512), (1, 700)),
        ]
        key = jax.random.PRNGKey(0)
        for fn, (b, n) in probes:
            x = jax.random.normal(key, (b, n, input_dims), dtype=jnp.float32)
            got = np.asarray(jax.block_until_ready(fn(x))).astype(np.float32)
            want = np.asarray(_reference_embed(x, N_freqs, include_input))
            if got.shape != want.shape or not np.allclose(got, want, atol=tol, rtol=tol):
                raise AssertionError("fused embedder probe mismatch")
        return fused
    except Exception:
        # TODO(synk): log the probe failure reason (kept silent so the script stays robust).
        return slab


if __name__ == "__main__":
    N_freqs = 4
    input_dims = 3
    expected_dim = input_dims * (1 + 2 * N_freqs)

    # Case 1: small, unaligned shape -> single grid step with a clipped boundary block.
    embed = make_embedder(N_freqs, input_dims=input_dims, include_input=True)
    B1, N1 = 2, 100
    x1 = jax.random.normal(jax.random.PRNGKey(0), (B1, N1, input_dims), dtype=jnp.float32)
    y1 = jax.block_until_ready(embed(x1))
    assert y1.shape == (B1, N1, expected_dim), y1.shape
    r1 = _reference_embed(x1, N_freqs, include_input=True)
    err1 = float(jnp.max(jnp.abs(y1 - r1)))
    assert np.allclose(np.asarray(y1), np.asarray(r1), atol=2e-5, rtol=2e-5), err1

    # Case 2: larger input with a forced multi-step grid (several row tiles).
    B2, N2 = 2, 8192
    x2 = jax.random.normal(jax.random.PRNGKey(0), (B2, N2, input_dims), dtype=jnp.float32)
    embed2 = make_embedder(N_freqs, input_dims=input_dims, include_input=True,
                           max_tile_rows=2048)
    y2 = jax.block_until_ready(embed2(x2))
    assert y2.shape == (B2, N2, expected_dim), y2.shape
    r2 = _reference_embed(x2, N_freqs, include_input=True)
    err2 = float(jnp.max(jnp.abs(y2 - r2)))
    assert np.allclose(np.asarray(y2), np.asarray(r2), atol=2e-5, rtol=2e-5), err2

    print("KERNEL_OK")
</pallas_src>

<mosaic_0001>
module attributes {stable_mosaic.version = 11 : i64} {
  func.func @_fused_kernel(%arg0: i32, %arg1: memref<3x512xf32, #tpu.memory_space<vmem>>, %arg2: memref<512x27xf32, #tpu.memory_space<vmem>>) attributes {dimension_semantics = [#tpu.dimension_semantics<parallel>], iteration_bounds = array<i64: 1>, scalar_prefetch = 0 : i64, scratch_operands = 0 : i64, tpu.core_type = #tpu.core_type<tc>, window_params = [{transform_indices = @transform_0, window_bounds = array<i64: 3, 512>}, {transform_indices = @transform_1, window_bounds = array<i64: 512, 27>}]} {
    %c0_i32 = arith.constant 0 : i32
    %c512_i32 = arith.constant 512 : i32
    %0 = arith.muli %c0_i32, %c512_i32 : i32
    %1 = tpu.assume_multiple %0, 512 : i32
    %c0 = arith.constant 0 : index
    %2 = arith.index_cast %1 : i32 to index
    %3 = vector.load %arg1[%c0, %2] : memref<3x512xf32, #tpu.memory_space<vmem>>, vector<3x512xf32>
    %cst = arith.constant 1.000000e+00 : f32
    %4 = vector.broadcast %cst : f32 to vector<3x512xf32>
    %5 = arith.mulf %3, %4 : vector<3x512xf32>
    %cst_0 = arith.constant 1.57079637 : f32
    %6 = vector.broadcast %cst_0 : f32 to vector<3x512xf32>
    %7 = arith.addf %5, %6 : vector<3x512xf32>
    %cst_1 = arith.constant 2.000000e+00 : f32
    %8 = vector.broadcast %cst_1 : f32 to vector<3x512xf32>
    %9 = arith.mulf %3, %8 : vector<3x512xf32>
    %cst_2 = arith.constant 1.57079637 : f32
    %10 = vector.broadcast %cst_2 : f32 to vector<3x512xf32>
    %11 = arith.addf %9, %10 : vector<3x512xf32>
    %cst_3 = arith.constant 4.000000e+00 : f32
    %12 = vector.broadcast %cst_3 : f32 to vector<3x512xf32>
    %13 = arith.mulf %3, %12 : vector<3x512xf32>
    %cst_4 = arith.constant 1.57079637 : f32
    %14 = vector.broadcast %cst_4 : f32 to vector<3x512xf32>
    %15 = arith.addf %13, %14 : vector<3x512xf32>
    %cst_5 = arith.constant 8.000000e+00 : f32
    %16 = vector.broadcast %cst_5 : f32 to vector<3x512xf32>
    %17 = arith.mulf %3, %16 : vector<3x512xf32>
    %cst_6 = arith.constant 1.57079637 : f32
    %18 = vector.broadcast %cst_6 : f32 to vector<3x512xf32>
    %19 = arith.addf %17, %18 : vector<3x512xf32>
    %cst_7 = arith.constant 0.000000e+00 : f32
    %20 = vector.broadcast %cst_7 : f32 to vector<5x512xf32>
    %21 = tpu.concatenate %3, %5, %7, %9, %11, %13, %15, %17, %19, %20 in 0 : vector<3x512xf32>, vector<3x512xf32>, vector<3x512xf32>, vector<3x512xf32>, vector<3x512xf32>, vector<3x512xf32>, vector<3x512xf32>, vector<3x512xf32>, vector<3x512xf32>, vector<5x512xf32> -> vector<32x512xf32>
    %22 = math.sin %21 : vector<32x512xf32>
    %23 = tpu.iota {dimensions = array<i32: 0>} : vector<32x1xi32>
    %c3_i32 = arith.constant 3 : i32
    %24 = vector.broadcast %c3_i32 : i32 to vector<32x1xi32>
    %25 = arith.cmpi slt, %23, %24 : vector<32x1xi32>
    %26 = vector.shape_cast %25 : vector<32x1xi1> to vector<32x1xi1>
    %27 = vector.broadcast %26 : vector<32x1xi1> to vector<32x512xi1>
    %28 = arith.select %27, %21, %22 : vector<32x512xi1>, vector<32x512xf32>
    %29 = tpu.transpose %28, [1, 0] : vector<32x512xf32> -> vector<512x32xf32>
    %30 = vector.extract_strided_slice %29 {offsets = [0, 0], sizes = [512, 27], strides = [1, 1]} : vector<512x32xf32> to vector<512x27xf32>
    %31 = arith.index_cast %1 : i32 to index
    %c0_8 = arith.constant 0 : index
    %32 = vector.load %arg2[%31, %c0_8] : memref<512x27xf32, #tpu.memory_space<vmem>>, vector<512x27xf32>
    tpu.vector_store %arg2[%31, %c0_8], %30 {strides = array<i32>} : memref<512x27xf32, #tpu.memory_space<vmem>>, vector<512x27xf32>,
    %c1_i32 = arith.constant 1 : i32
    return
  }
  func.func @transform_0(%arg0: i32) -> (i32, i32) {
    %c0_i32 = arith.constant 0 : i32
    %c0_i32_0 = arith.constant 0 : i32
    return %c0_i32, %arg0 : i32, i32
  }
  func.func @transform_1(%arg0: i32) -> (i32, i32) {
    %c0_i32 = arith.constant 0 : i32
    %c0_i32_0 = arith.constant 0 : i32
    return %arg0, %c0_i32 : i32, i32
  }
}

module attributes {stable_mosaic.version = 11 : i64} {
  func.func @_slab_kernel(%arg0: i32, %arg1: memref<8x512xf32, #tpu.memory_space<vmem>>, %arg2: memref<9x8x512xf32, #tpu.memory_space<vmem>>) attributes {dimension_semantics = [#tpu.dimension_semantics<parallel>], iteration_bounds = array<i64: 1>, scalar_prefetch = 0 : i64, scratch_operands = 0 : i64, tpu.core_type = #tpu.core_type<tc>, window_params = [{transform_indices = @transform_0, window_bounds = array<i64: 8, 512>}, {transform_indices = @transform_1, window_bounds = array<i64: 9, 8, 512>}]} {
    %c0 = arith.constant 0 : index
    %c0_0 = arith.constant 0 : index
    %0 = vector.load %arg1[%c0, %c0_0] : memref<8x512xf32, #tpu.memory_space<vmem>>, vector<8x512xf32>
    %c0_1 = arith.constant 0 : index
    %c0_2 = arith.constant 0 : index
    %c0_3 = arith.constant 0 : index
    %1 = vector.load %arg2[%c0_1, %c0_2, %c0_3] : memref<9x8x512xf32, #tpu.memory_space<vmem>>, vector<1x8x512xf32>
    %2 = vector.shape_cast %1 : vector<1x8x512xf32> to vector<8x512xf32>
    %3 = vector.shape_cast %0 : vector<8x512xf32> to vector<1x8x512xf32>
    tpu.vector_store %arg2[%c0_1, %c0_2, %c0_3], %3 {strides = array<i32>} : memref<9x8x512xf32, #tpu.memory_space<vmem>>, vector<1x8x512xf32>,
    %cst = arith.constant 1.000000e+00 : f32
    %4 = vector.broadcast %cst : f32 to vector<8x512xf32>
    %5 = arith.mulf %0, %4 : vector<8x512xf32>
    %6 = math.sin %5 : vector<8x512xf32>
    %c1 = arith.constant 1 : index
    %c0_4 = arith.constant 0 : index
    %c0_5 = arith.constant 0 : index
    %7 = vector.load %arg2[%c1, %c0_4, %c0_5] : memref<9x8x512xf32, #tpu.memory_space<vmem>>, vector<1x8x512xf32>
    %8 = vector.shape_cast %7 : vector<1x8x512xf32> to vector<8x512xf32>
    %9 = vector.shape_cast %6 : vector<8x512xf32> to vector<1x8x512xf32>
    tpu.vector_store %arg2[%c1, %c0_4, %c0_5], %9 {strides = array<i32>} : memref<9x8x512xf32, #tpu.memory_space<vmem>>, vector<1x8x512xf32>,
    %10 = math.cos %5 : vector<8x512xf32>
    %c2 = arith.constant 2 : index
    %c0_6 = arith.constant 0 : index
    %c0_7 = arith.constant 0 : index
    %11 = vector.load %arg2[%c2, %c0_6, %c0_7] : memref<9x8x512xf32, #tpu.memory_space<vmem>>, vector<1x8x512xf32>
    %12 = vector.shape_cast %11 : vector<1x8x512xf32> to vector<8x512xf32>
    %13 = vector.shape_cast %10 : vector<8x512xf32> to vector<1x8x512xf32>
    tpu.vector_store %arg2[%c2, %c0_6, %c0_7], %13 {strides = array<i32>} : memref<9x8x512xf32, #tpu.memory_space<vmem>>, vector<1x8x512xf32>,
    %cst_8 = arith.constant 2.000000e+00 : f32
    %14 = vector.broadcast %cst_8 : f32 to vector<8x512xf32>
    %15 = arith.mulf %0, %14 : vector<8x512xf32>
    %16 = math.sin %15 : vector<8x512xf32>
    %c3 = arith.constant 3 : index
    %c0_9 = arith.constant 0 : index
    %c0_10 = arith.constant 0 : index
    %17 = vector.load %arg2[%c3, %c0_9, %c0_10] : memref<9x8x512xf32, #tpu.memory_space<vmem>>, vector<1x8x512xf32>
    %18 = vector.shape_cast %17 : vector<1x8x512xf32> to vector<8x512xf32>
    %19 = vector.shape_cast %16 : vector<8x512xf32> to vector<1x8x512xf32>
    tpu.vector_store %arg2[%c3, %c0_9, %c0_10], %19 {strides = array<i32>} : memref<9x8x512xf32, #tpu.memory_space<vmem>>, vector<1x8x512xf32>,
    %20 = math.cos %15 : vector<8x512xf32>
    %c4 = arith.constant 4 : index
    %c0_11 = arith.constant 0 : index
    %c0_12 = arith.constant 0 : index
    %21 = vector.load %arg2[%c4, %c0_11, %c0_12] : memref<9x8x512xf32, #tpu.memory_space<vmem>>, vector<1x8x512xf32>
    %22 = vector.shape_cast %21 : vector<1x8x512xf32> to vector<8x512xf32>
    %23 = vector.shape_cast %20 : vector<8x512xf32> to vector<1x8x512xf32>
    tpu.vector_store %arg2[%c4, %c0_11, %c0_12], %23 {strides = array<i32>} : memref<9x8x512xf32, #tpu.memory_space<vmem>>, vector<1x8x512xf32>,
    %cst_13 = arith.constant 4.000000e+00 : f32
    %24 = vector.broadcast %cst_13 : f32 to vector<8x512xf32>
    %25 = arith.mulf %0, %24 : vector<8x512xf32>
    %26 = math.sin %25 : vector<8x512xf32>
    %c5 = arith.constant 5 : index
    %c0_14 = arith.constant 0 : index
    %c0_15 = arith.constant 0 : index
    %27 = vector.load %arg2[%c5, %c0_14, %c0_15] : memref<9x8x512xf32, #tpu.memory_space<vmem>>, vector<1x8x512xf32>
    %28 = vector.shape_cast %27 : vector<1x8x512xf32> to vector<8x512xf32>
    %29 = vector.shape_cast %26 : vector<8x512xf32> to vector<1x8x512xf32>
    tpu.vector_store %arg2[%c5, %c0_14, %c0_15], %29 {strides = array<i32>} : memref<9x8x512xf32, #tpu.memory_space<vmem>>, vector<1x8x512xf32>,
    %30 = math.cos %25 : vector<8x512xf32>
    %c6 = arith.constant 6 : index
    %c0_16 = arith.constant 0 : index
    %c0_17 = arith.constant 0 : index
    %31 = vector.load %arg2[%c6, %c0_16, %c0_17] : memref<9x8x512xf32, #tpu.memory_space<vmem>>, vector<1x8x512xf32>
    %32 = vector.shape_cast %31 : vector<1x8x512xf32> to vector<8x512xf32>
    %33 = vector.shape_cast %30 : vector<8x512xf32> to vector<1x8x512xf32>
    tpu.vector_store %arg2[%c6, %c0_16, %c0_17], %33 {strides = array<i32>} : memref<9x8x512xf32, #tpu.memory_space<vmem>>, vector<1x8x512xf32>,
    %cst_18 = arith.constant 8.000000e+00 : f32
    %34 = vector.broadcast %cst_18 : f32 to vector<8x512xf32>
    %35 = arith.mulf %0, %34 : vector<8x512xf32>
    %36 = math.sin %35 : vector<8x512xf32>
    %c7 = arith.constant 7 : index
    %c0_19 = arith.constant 0 : index
    %c0_20 = arith.constant 0 : index
    %37 = vector.load %arg2[%c7, %c0_19, %c0_20] : memref<9x8x512xf32, #tpu.memory_space<vmem>>, vector<1x8x512xf32>
    %38 = vector.shape_cast %37 : vector<1x8x512xf32> to vector<8x512xf32>
    %39 = vector.shape_cast %36 : vector<8x512xf32> to vector<1x8x512xf32>
    tpu.vector_store %arg2[%c7, %c0_19, %c0_20], %39 {strides = array<i32>} : memref<9x8x512xf32, #tpu.memory_space<vmem>>, vector<1x8x512xf32>,
    %40 = math.cos %35 : vector<8x512xf32>
    %c8 = arith.constant 8 : index
    %c0_21 = arith.constant 0 : index
    %c0_22 = arith.constant 0 : index
    %41 = vector.load %arg2[%c8, %c0_21, %c0_22] : memref<9x8x512xf32, #tpu.memory_space<vmem>>, vector<1x8x512xf32>
    %42 = vector.shape_cast %41 : vector<1x8x512xf32> to vector<8x512xf32>
    %43 = vector.shape_cast %40 : vector<8x512xf32> to vector<1x8x512xf32>
    tpu.vector_store %arg2[%c8, %c0_21, %c0_22], %43 {strides = array<i32>} : memref<9x8x512xf32, #tpu.memory_space<vmem>>, vector<1x8x512xf32>,
    return
  }
  func.func @transform_0(%arg0: i32) -> (i32, i32) {
    %c0_i32 = arith.constant 0 : i32
    %c0_i32_0 = arith.constant 0 : i32
    return %arg0, %c0_i32 : i32, i32
  }
  func.func @transform_1(%arg0: i32) -> (i32, i32, i32) {
    %c0_i32 = arith.constant 0 : i32
    %c0_i32_0 = arith.constant 0 : i32
    %c0_i32_1 = arith.constant 0 : i32
    return %c0_i32, %arg0, %c0_i32_0 : i32, i32, i32
  }
}

</mosaic_0001>

<bundles_post_ra>
// kernel: embed.1
= control target key start
LH: loop header
LB: loop body
LE: loop exit
PB: predicated region body
PF: predicated region fallthrough
CT: control target
= control target key end

     0   :  { %vm110_vm0 = vcmask 1042432   ;;  %vm3757_vm1 = vcmask 1045504   ;;  %vm3756_vm2 = vcmask 1040384   ;;  %vm3755_vm3 = vcmask 1043456   ;;  %s3752_s0 = inlined_call_operand.vmem [shape: f32[3,37], index: 0, kind: input, shape index: {}]   ;;  %s3753_s1 = inlined_call_operand.vmem [shape: f32[37,27], index: 1, kind: output, shape index: {}]  }
   0x1   :  { %v2316_v0 = vld [vmem:[%s3752_s0] sm:$0x77]  ;;  %vm3754_vm4 = vcmask 1046528   ;;  %v2297_v42 = vmov 683565275  }
   0x2   :  { %v10_v1 = vadd.f32 1.5707964, %v2316_v0  ;;  %v30_v2 = vrot.slane %v2316_v0, 5  ;;  %v26_v3 = vcombine.high %v2316_v0, %v2316_v0  ;;  %v2325_v8 = vmul.f32 2.0, %v2316_v0 }
   0x3   :  { %v2333_v12 = vmul.f32 4.0, %v2316_v0  ;;  %v2298_v44 = vmov 2475754826   ;;  %v2299_v46 = vmov 2131351028  }
   0x4   :  { %v42_v4 = vrot.slane %v10_v1, 2  ;;  %v111_v5 = vsel %vm110_vm0, %v2316_v0, %v30_v2  ;;  %v31_v6 = vrot.slane %v26_v3, 5  ;;  %v40_v7 = vcombine.high %v10_v1, %v10_v1 }
   0x5   :  { %v2339_v15 = vadd.f32 1.5707964, %v2325_v8  ;;  %v54_v16 = vrot.slane %v2325_v8, 7  ;;  %v72_v21 = vrot.slane %v2333_v12, 1  ;;  %v52_v40 = vcombine.high %v2325_v8, %v2325_v8 }
   0x6   :  { %v2328_v9 = vsel %vm3757_vm1, %v111_v5, %v42_v4  ;;  %v2335_v13 = vrot.slane %v40_v7, 2  ;;  %v112_v14 = vsel %vm110_vm0, %v26_v3, %v31_v6  ;;  %v2300_v48 = vmov 2102212464  }
   0x7   :  { %v149_v10 = vand.u32 2147483647, %v2328_v9  ;;  %v152_v11 = vand.u32 2139095040, %v2328_v9  ;;  %v64_v20 = vcombine.low %v2339_v15, %v2339_v15  ;;  %v121_v22 = vsel %vm3756_vm2, %v42_v4, %v54_v16 }
   0x8   :  { %v2346_v19 = vsel %vm3757_vm1, %v112_v14, %v2335_v13  ;;  %v2301_v50 = vmov 920167782   ;;  %v2302_v58 = vmov 1326507024  }
   0x9   :  { %v153_v17 = vshrl.u32 %v152_v11, 23  ;;  %v156_v18 = vand.u32 8388607, %v149_v10  ;;  %v253_v24 = vand.u32 2147483647, %v2346_v19  ;;  %v256_v25 = vand.u32 2139095040, %v2346_v19 }
   0xa   :  { %v126_v26 = vsel %vm3755_vm3, %v121_v22, %v64_v20 }
   0xb   :  { %v2096_v23 = vadd.s32 4294967169, %v153_v17  ;;  %v157_v28 = vor.u32 8388608, %v156_v18  ;;  %v257_v29 = vshrl.u32 %v256_v25, 23  ;;  %v260_v30 = vand.u32 8388607, %v253_v24 }
   0xc   :  { %v2360_v31 = vsel %vm3754_vm4, %v126_v26, %v72_v21 }
   0xd   :  { %v159_v27 = vadd.s32 1, %v2096_v23  ;;  %v2100_v33 = vadd.s32 4294967169, %v257_v29  ;;  %v568_v34 = vand.u32 2139095040, %v2360_v31  ;;  %v2363_v37 = vshll.u32 %v157_v28, 8 }
   0xe   :  { %v261_v38 = vor.u32 8388608, %v260_v30 }
   0xf   :  { %vm160_vm5 = vcmp.gt.s32.totalorder %v159_v27, 0  ;;  %v263_v39 = vadd.s32 1, %v2100_v33  ;;  %v569_v52 = vshrl.u32 %v568_v34, 23 }
  0x10   :  { %v161_v32 = vsel %vm160_vm5, %v159_v27, 0  ;;  %v2381_v16 = vshll.u32 %v261_v38, 8 }
  0x11   :  { %v162_v35 = vshrl.u32 %v161_v32, 5  ;;  %v163_v36 = vand.u32 31, %v161_v32  ;;  %vm264_vm9 = vcmp.gt.s32.totalorder %v263_v39, 0  ;;  %v2112_v27 = vadd.s32 4294967169, %v569_v52 }
  0x12   :  { %v265_v2 = vsel %vm264_vm9, %v263_v39, 0 }
  0x13   :  { %v164_v41 = vsub.s32 32, %v163_v36  ;;  %v166_v43 = vshll.u32 %v2297_v42, %v163_v36  ;;  %v169_v45 = vshll.u32 %v2298_v44, %v163_v36  ;;  %v172_v47 = vshll.u32 %v2299_v46, %v163_v36 }
  0x14   :  { %v175_v49 = vshll.u32 %v2300_v48, %v163_v36  ;;  %v178_v51 = vshll.u32 %v2301_v50, %v163_v36  ;;  %vm181_vm6 = vcmp.lt.s32.totalorder %v162_v35, 1  ;;  %vm182_vm7 = vcmp.lt.s32.totalorder %v162_v35, 2 }
  0x15   :  { %v165_v53 = vshrl.u32 %v2297_v42, %v164_v41  ;;  %v167_v54 = vshrl.u32 %v2298_v44, %v164_v41  ;;  %v170_v55 = vshrl.u32 %v2299_v46, %v164_v41  ;;  %v173_v56 = vshrl.u32 %v2300_v48, %v164_v41 }
  0x16   :  { %v176_v57 = vshrl.u32 %v2301_v50, %v164_v41  ;;  %v179_v59 = vshrl.u32 %v2302_v58, %v164_v41  ;;  %vm184_vm8 = vcmp.lt.s32.totalorder %v162_v35, 4  ;;  %vm183_vm10 = vcmp.lt.s32.totalorder %v162_v35, 3 }
  0x17   :  { %v168_v60 = vor.u32 %v167_v54, %v166_v43  ;;  %v171_v61 = vor.u32 %v170_v55, %v169_v45  ;;  %v174_v62 = vor.u32 %v173_v56, %v172_v47  ;;  %v266_v20 = vshrl.u32 %v265_v2, 5 }
  0x18   :  { %v177_v63 = vor.u32 %v176_v57, %v175_v49  ;;  %v180_v1 = vor.u32 %v179_v59, %v178_v51  ;;  %v267_v22 = vand.u32 31, %v265_v2 }
  0x19   :  { %v185_v3 = vsel %vm181_vm6, %v165_v53, %v168_v60  ;;  %v186_v4 = vsel %vm184_vm8, %v174_v62, 2102212464  ;;  %v189_v5 = vsel %vm181_vm6, %v168_v60, %v171_v61  ;;  %v193_v6 = vsel %vm181_vm6, %v171_v61, %v174_v62 }
  0x1a   :  { %v187_v7 = vsel %vm183_vm10, %v171_v61, %v186_v4  ;;  %v190_v11 = vsel %vm184_vm8, %v177_v63, 920167782  ;;  %v194_v14 = vsel %vm184_vm8, %v180_v1, 1326507024  ;;  %v268_v33 = vsub.s32 32, %v267_v22 }
  0x1b   :  { %v191_v17 = vsel %vm183_vm10, %v174_v62, %v190_v11  ;;  %v195_v18 = vsel %vm183_vm10, %v177_v63, %v194_v14  ;;  %v188_v23 = vsel %vm182_vm7, %v185_v3, %v187_v7  ;;  %v270_v34 = vshll.u32 %v2297_v42, %v267_v22 }
  0x1c   :  { %v192_v25 = vsel %vm182_vm7, %v189_v5, %v191_v17  ;;  %v196_v26 = vsel %vm182_vm7, %v193_v6, %v195_v18  ;;  %v273_v36 = vshll.u32 %v2298_v44, %v267_v22  ;;  %v276_v38 = vshll.u32 %v2299_v46, %v267_v22 }
  0x1d   :  { %v2387_v28 = vmul.u32.u64.low %v2363_v37, %v196_v26  ;;  %v2388_v29 = vmul.u32.u64.high %v2363_v37, %v196_v26, %v2387_v28  ;;  %v2391_v30 = vmul.u32.u64.low %v2363_v37, %v192_v25  ;;  %v2392_v32 = vmul.u32.u64.high %v2363_v37, %v192_v25, %v2391_v30 }
  0x1e   :  { %v204_v35 = vmul.u32 %v2363_v37, %v188_v23  ;;  %v279_v39 = vshll.u32 %v2300_v48, %v267_v22  ;;  %v282_v41 = vshll.u32 %v2301_v50, %v267_v22  ;;  %vm285_vm11 = vcmp.lt.s32.totalorder %v266_v20, 1 }
  0x1f   :  { %v269_v43 = vshrl.u32 %v2297_v42, %v268_v33  ;;  %v271_v45 = vshrl.u32 %v2298_v44, %v268_v33  ;;  %v274_v47 = vshrl.u32 %v2299_v46, %v268_v33  ;;  %v277_v49 = vshrl.u32 %v2300_v48, %v268_v33 }
  0x20   :  { %vm206_vm12 = vc.u32 %v2388_v29, %v2391_v30  ;;  %v207_v51 = vadd.s32 1, %v2392_v32  ;;  %v280_v37 = vshrl.u32 %v2301_v50, %v268_v33  ;;  %vm286_vm13 = vcmp.lt.s32.totalorder %v266_v20, 2 }
  0x21   :  { %v272_v52 = vor.u32 %v271_v45, %v270_v34  ;;  %v275_v53 = vor.u32 %v274_v47, %v273_v36  ;;  %v278_v54 = vor.u32 %v277_v49, %v276_v38  ;;  %v283_v55 = vshrl.u32 %v2302_v58, %v268_v33 }
  0x22   :  { %v208_v56 = vsel %vm206_vm12, %v207_v51, %v2392_v32  ;;  %v281_v57 = vor.u32 %v280_v37, %v279_v39  ;;  %vm287_vm14 = vcmp.lt.s32.totalorder %v266_v20, 3  ;;  %vm288_vm15 = vcmp.lt.s32.totalorder %v266_v20, 4 }
  0x23   :  { %v209_v59 = vadd.s32 %v208_v56, %v204_v35  ;;  %v284_v60 = vor.u32 %v283_v55, %v282_v41  ;;  %v289_v61 = vsel %vm285_vm11, %v269_v43, %v272_v52  ;;  %v290_v62 = vsel %vm288_vm15, %v278_v54, 2102212464 }
  0x24   :  { %v291_v63 = vsel %vm287_vm14, %v275_v53, %v290_v62  ;;  %v293_v1 = vsel %vm285_vm11, %v272_v52, %v275_v53  ;;  %v294_v2 = vsel %vm288_vm15, %v281_v57, 920167782  ;;  %v297_v3 = vsel %vm285_vm11, %v275_v53, %v278_v54 }
  0x25   :  { %v210_v4 = vadd.s32 536870912, %v209_v59  ;;  %v295_v5 = vsel %vm287_vm14, %v278_v54, %v294_v2  ;;  %v298_v6 = vsel %vm288_vm15, %v284_v60, 1326507024  ;;  %v565_v7 = vand.u32 2147483647, %v2360_v31 }
  0x26   :  { %v292_v11 = vsel %vm286_vm13, %v289_v61, %v291_v63  ;;  %v296_v14 = vsel %vm286_vm13, %v293_v1, %v295_v5  ;;  %v299_v17 = vsel %vm287_vm14, %v281_v57, %v298_v6  ;;  %v575_v18 = vadd.s32 1, %v2112_v27 }
  0x27   :  { %v211_v22 = vshrl.u32 %v210_v4, 30  ;;  %v300_v23 = vsel %vm286_vm13, %v297_v3, %v299_v17  ;;  %v2422_v25 = vmul.u32.u64.low %v2381_v16, %v296_v14  ;;  %v2423_v26 = vmul.u32.u64.high %v2381_v16, %v296_v14, %v2422_v25 }
  0x28   :  { %v2427_v28 = vmul.u32.u64.low %v2381_v16, %v300_v23  ;;  %v2428_v32 = vmul.u32.u64.high %v2381_v16, %v300_v23, %v2427_v28  ;;  %vm576_vm5 = vcmp.gt.s32.totalorder %v575_v18, 0  ;;  %v572_v34 = vand.u32 8388607, %v565_v7 }
  0x29   :  { %v212_v33 = vshll.u32 %v211_v22, 30  ;;  %v577_v36 = vsel %vm576_vm5, %v575_v18, 0  ;;  %v308_v27 = vmul.u32 %v2381_v16, %v292_v11  ;;  %v70_v20 = vcombine.high %v2333_v12, %v2333_v12 }
  0x2a   :  { %v579_v38 = vand.u32 31, %v577_v36  ;;  %v311_v39 = vadd.s32 1, %v2423_v26  ;;  %v55_v41 = vrot.slane %v52_v40, 7  ;;  %vm310_vm6 = vc.u32 %v2428_v32, %v2422_v25 }
  0x2b   :  { %v2435_v35 = vsub.s32 %v209_v59, %v212_v33  ;;  %v1813_v47 = vlaneseq  ;;  %v573_v49 = vor.u32 8388608, %v572_v34  ;;  %vm151_vm7 = vcmp.lt.s32.totalorder %v2328_v9, 0 }
  0x2c   :  { %v580_v43 = vsub.s32 32, %v579_v38  ;;  %v312_v16 = vsel %vm310_vm6, %v311_v39, %v2423_v26  ;;  %v205_v51 = vadd.s32 %v2391_v30, %v2388_v29  ;;  %v2448_v52 = vrot.slane %v70_v20, 1 }
  0x2d   :  { %v215_v45 = vsub.s32 0, %v2435_v35  ;;  %v313_v37 = vadd.s32 %v312_v16, %v308_v27  ;;  %v235_v40 = vsub.s32 4, %v211_v22  ;;  %v582_v53 = vshll.u32 %v2297_v42, %v579_v38 }
  0x2e   :  { %v122_v54 = vsel %vm3756_vm2, %v2335_v13, %v55_v41  ;;  %v583_v56 = vshrl.u32 %v2298_v44, %v580_v43  ;;  %v585_v57 = vshll.u32 %v2298_v44, %v579_v38  ;;  %v586_v59 = vshrl.u32 %v2299_v46, %v580_v43 }
  0x2f   :  { %v2097_v8 = vmin.u32 %v215_v45, %v2435_v35  ;;  %v314_v55 = vadd.s32 536870912, %v313_v37  ;;  %v578_v29 = vshrl.u32 %v577_v36, 5  ;;  %v591_v30 = vshll.u32 %v2300_v48, %v579_v38 }
  0x30   :  { %v2458_v61 = vshll.u32 %v573_v49, 8  ;;  %v588_v63 = vshll.u32 %v2299_v46, %v579_v38  ;;  %v589_v1 = vshrl.u32 %v2300_v48, %v580_v43  ;;  %v592_v13 = vshrl.u32 %v2301_v50, %v580_v43 }
  0x31   :  { %v217_v60 = vclz %v2097_v8  ;;  %v315_v62 = vshrl.u32 %v314_v55, 30  ;;  %vm2465_vm8 = vcmp.le.f32.partialorder %v149_v10, 0.7853982  ;;  %v2471_v4 = vsel %vm151_vm7, %v235_v40, %v211_v22 }
  0x32   :  { %v581_v5 = vshrl.u32 %v2297_v42, %v580_v43  ;;  %v127_v6 = vsel %vm3755_vm3, %v122_v54, %v2339_v15  ;;  %v584_v14 = vor.u32 %v583_v56, %v582_v53  ;;  %v587_v17 = vor.u32 %v586_v59, %v585_v57 }
  0x33   :  { %v2098_v3 = vadd.s32 4294967294, %v217_v60  ;;  %v316_v11 = vshll.u32 %v315_v62, 30  ;;  %v594_v18 = vshll.u32 %v2301_v50, %v579_v38  ;;  %v593_v10 = vor.u32 %v592_v13, %v591_v30 }
  0x34   :  { %v595_v23 = vshrl.u32 %v2302_v58, %v580_v43  ;;  %vm597_vm10 = vcmp.lt.s32.totalorder %v578_v29, 1  ;;  %vm255_vm11 = vcmp.lt.s32.totalorder %v2346_v19, 0  ;;  %v590_v28 = vor.u32 %v589_v1, %v588_v63 }
  0x35   :  { %vm2099_vm9 = vcmp.lt.s32.totalorder %v2098_v3, 0  ;;  %v2479_v22 = vsub.s32 %v313_v37, %v316_v11  ;;  %vm600_vm12 = vcmp.lt.s32.totalorder %v578_v29, 4  ;;  %vm599_vm13 = vcmp.lt.s32.totalorder %v578_v29, 3 }
  0x36   :  { %v220_v26 = vsel %vm2099_vm9, 0, %v2098_v3  ;;  %vm598_vm14 = vcmp.lt.s32.totalorder %v578_v29, 2  ;;  %v602_v27 = vsel %vm600_vm12, %v590_v28, 2102212464  ;;  %v605_v38 = vsel %vm597_vm10, %v584_v14, %v587_v17 }
  0x37   :  { %v221_v33 = vsub.s32 32, %v220_v26  ;;  %v222_v15 = vshll.u32 %v2435_v35, %v220_v26  ;;  %v225_v34 = vsub.s32 4294967266, %v220_v26  ;;  %v319_v36 = vsub.s32 0, %v2479_v22 }
  0x38   :  { %v596_v41 = vor.u32 %v595_v23, %v594_v18  ;;  %v606_v43 = vsel %vm600_vm12, %v593_v10, 920167782  ;;  %v601_v16 = vsel %vm597_vm10, %v581_v5, %v584_v14  ;;  %v603_v35 = vsel %vm599_vm13, %v587_v17, %v602_v27 }
  0x39   :  { %v223_v20 = vshrl.u32 %v205_v51, %v221_v33  ;;  %v226_v39 = vadd.s32 127, %v225_v34  ;;  %v2101_v45 = vmin.u32 %v319_v36, %v2479_v22  ;;  %v607_v49 = vsel %vm599_vm13, %v590_v28, %v606_v43 }
  0x3a   :  { %v339_v40 = vsub.s32 4, %v315_v62  ;;  %v608_v53 = vsel %vm598_vm14, %v605_v38, %v607_v49  ;;  %v238_v51 = vsel %vm2465_vm8, 0, %v2471_v4  ;;  %v609_v55 = vsel %vm597_vm10, %v587_v17, %v590_v28 }
  0x3b   :  { %v224_v37 = vor.u32 %v223_v20, %v222_v15  ;;  %v227_v8 = vshll.u32 %v226_v39, 23  ;;  %v321_v54 = vclz %v2101_v45  ;;  %v2497_v56 = vsel %vm3754_vm4, %v127_v6, %v2448_v52 }
  0x3c   :  { %v604_v60 = vsel %vm598_vm14, %v601_v16, %v603_v35  ;;  %v610_v30 = vsel %vm600_vm12, %v596_v41, 1326507024  ;;  %v2503_v13 = vmul.u32.u64.low %v2458_v61, %v608_v53  ;;  %v2504_v3 = vmul.u32.u64.high %v2458_v61, %v608_v53, %v2503_v13 }
  0x3d   :  { %v228_v57 = vor.u32 4788187, %v227_v8  ;;  %v231_v59 = vcvt.s32.f32 %v224_v37  ;;  %v2102_v63 = vadd.s32 4294967294, %v321_v54  ;;  %v611_v1 = vsel %vm599_vm13, %v593_v10, %v610_v30 }
  0x3e   :  { %v309_v5 = vadd.s32 %v2422_v25, %v2428_v32  ;;  %v340_v6 = vsel %vm255_vm11, %v339_v40, %v315_v62  ;;  %v612_v11 = vsel %vm598_vm14, %v609_v55, %v611_v1  ;;  %v672_v18 = vand.u32 2139095040, %v2497_v56 }
  0x3f   :  { %v229_v4 = vand.u32 2147483647, %v228_v57  ;;  %vm2103_vm15 = vcmp.lt.s32.totalorder %v2102_v63, 0  ;;  %v2512_v14 = vmul.u32.u64.low %v2458_v61, %v612_v11  ;;  %v2513_v17 = vmul.u32.u64.high %v2458_v61, %v612_v11, %v2512_v14 }
  0x40   :  { %v324_v23 = vsel %vm2103_vm15, 0, %v2102_v63  ;;  %v620_v26 = vmul.u32 %v2458_v61, %v604_v60  ;;  %v669_v28 = vand.u32 2147483647, %v2497_v56  ;;  %v623_v29 = vadd.s32 1, %v2504_v3 }
  0x41   :  { %v232_v10 = vmul.f32 %v231_v59, %v229_v4  ;;  %v325_v33 = vsub.s32 32, %v324_v23  ;;  %v326_v25 = vshll.u32 %v2479_v22, %v324_v23  ;;  %v329_v32 = vsub.s32 4294967266, %v324_v23 }
  0x42   :  { %v242_v15 = vadd.s32 3, %v238_v51  ;;  %vm2522_vm5 = vcmp.le.f32.partialorder %v253_v24, 0.7853982  ;;  %v673_v36 = vshrl.u32 %v672_v18, 23  ;;  %vm622_vm6 = vc.u32 %v2513_v17, %v2503_v13 }
  0x43   :  { %v233_v62 = vxor.u32 2147483648, %v232_v10  ;;  %v327_v27 = vshrl.u32 %v309_v5, %v325_v33  ;;  %v330_v38 = vadd.s32 127, %v329_v32  ;;  %v342_v61 = vsel %vm2522_vm5, 0, %v340_v6 }
  0x44   :  { %v624_v20 = vsel %vm622_vm6, %v623_v29, %v2504_v3  ;;  %v2116_v39 = vadd.s32 4294967169, %v673_v36  ;;  %v676_v24 = vand.u32 8388607, %v669_v28  ;;  %v2537_v35 = vand.u32 3, %v242_v15 }
  0x45   :  { %v234_v22 = vsel %vm151_vm7, %v233_v62, %v232_v10  ;;  %v328_v43 = vor.u32 %v327_v27, %v326_v25  ;;  %v331_v45 = vshll.u32 %v330_v38, 23  ;;  %v625_v16 = vadd.s32 %v624_v20, %v620_v26 }
  0x46   :  { %v237_v41 = vsel %vm2465_vm8, %v2328_v9, %v234_v22  ;;  %v346_v49 = vadd.s32 3, %v342_v61  ;;  %v679_v37 = vadd.s32 1, %v2116_v39  ;;  %v677_v51 = vor.u32 8388608, %v676_v24 }
  0x47   :  { %2233 = vcosq.f32 %v237_v41  ;;  %v332_v8 = vor.u32 4788187, %v331_v45  ;;  %v335_v40 = vcvt.s32.f32 %v328_v43  ;;  %v626_v53 = vadd.s32 536870912, %v625_v16 }
  0x48   :  { %2235 = vsinq.f32 %v237_v41  ;;  %vm680_vm7 = vcmp.gt.s32.totalorder %v679_v37, 0  ;;  %v2542_v2 = vshrl.u32 %v1813_v47, 7  ;;  %v2545_v60 = vadd.f32 1.5707964, %v2333_v12 }
  0x49   :  { %v333_v54 = vand.u32 2147483647, %v332_v8  ;;  %v2539_v55 = vshrl.u32 %v626_v53, 30  ;;  %v681_v57 = vsel %vm680_vm7, %v679_v37, 0  ;;  %vm248_vm8 = vcmp.eq.s32.totalorder %v2537_v35, 2 }
  0x4a   :  { %v683_v59 = vand.u32 31, %v681_v57  ;;  %v2548_v63 = vand.u32 3, %v346_v49  ;;  %v2552_v3 = vmul.f32 8.0, %v2316_v0  ;;  %vm245_vm9 = vcmp.eq.s32.totalorder %v2537_v35, 0 }
  0x4b   :  { %v336_v30 = vmul.f32 %v335_v40, %v333_v54  ;;  %v628_v1 = vshll.u32 %v2539_v55, 30  ;;  %v2556_v4 = vadd.s32 %v2503_v13, %v2513_v17  ;;  %v2558_v5 = vshll.u32 %v677_v51, 8 }
  0x4c   :  { %v684_v47 = vsub.s32 32, %v683_v59  ;;  %v84_v6 = vrot.slane %v2545_v60, 6  ;;  %vm244_vm10 = vcmp.lt.s32.totalorder %v2537_v35, 2  ;;  %v96_v18 = vrot.slane %v2552_v3, 3 }
  0x4d   :  { %v337_v11 = vxor.u32 2147483648, %v336_v30  ;;  %v2562_v14 = vsub.s32 %v625_v16, %v628_v1  ;;  %vm135_vm12 = vcmask 1041408   ;;  %vm241_vm13 = vweird.f32 %v2328_v9 }
  0x4e   :  { %v2566_v0 = vshrl.u32 %v681_v57, 5  ;;  %v686_v13 = vshll.u32 %v2297_v42, %v683_v59  ;;  %v689_v17 = vshll.u32 %v2298_v44, %v683_v59  ;;  %v695_v10 = vshll.u32 %v2300_v48, %v683_v59 }
  0x4f   :  { %vm1818_vm14 = vcmp.lt.s32.totalorder %v2542_v2, 3  ;;  %v338_v23 = vsel %vm255_vm11, %v337_v11, %v336_v30  ;;  %v631_v26 = vsub.s32 0, %v2562_v14  ;;  %v687_v33 = vshrl.u32 %v2298_v44, %v684_v47 }
  0x50   :  { %v690_v25 = vshrl.u32 %v2299_v46, %v684_v47  ;;  %v341_v32 = vsel %vm2522_vm5, %v2346_v19, %v338_v23  ;;  %v692_v29 = vshll.u32 %v2299_v46, %v683_v59  ;;  %v693_v62 = vshrl.u32 %v2300_v48, %v684_v47 }
  0x51   :  { %v696_v15 = vshrl.u32 %v2301_v50, %v684_v47  ;;  %vm140_vm15 = vcmask 1044480   ;;  %2237 = vcosq.f32 %v341_v32  ;;  %v2113_v36 = vmin.u32 %v631_v26, %v2562_v14 }
  0x52   :  { %v651_v27 = vsub.s32 4, %v2539_v55  ;;  %v136_v38 = vsel %vm135_vm12, %v72_v21, %v84_v6  ;;  %2239 = vsinq.f32 %v341_v32  ;;  %v685_v34 = vshrl.u32 %v2297_v42, %v684_v47 }
  0x53   :  { %v698_v61 = vshll.u32 %v2301_v50, %v683_v59  ;;  %v699_v22 = vshrl.u32 %v2302_v58, %v684_v47  ;;  %v633_v39 = vclz %v2113_v36  ;;  %v688_v24 = vor.u32 %v687_v33, %v686_v13 }
  0x54   :  { %v2234_v20 = vpop.eup %2233  ;;  %v691_v41 = vor.u32 %v690_v25, %v689_v17  ;;  %v697_v43 = vor.u32 %v696_v15, %v695_v10  ;;  %v694_v49 = vor.u32 %v693_v62, %v692_v29  ;;  %vm701_vm11 = vcmp.lt.s32.totalorder %v2566_v0, 1 }
  0x55   :  { %v2236_v45 = vpop.eup %2235  ;;  %v249_v16 = vxor.u32 2147483648, %v2234_v20  ;;  %v700_v37 = vor.u32 %v699_v22, %v698_v61  ;;  %vm567_vm5 = vcmp.lt.s32.totalorder %v2360_v31, 0  ;;  %v2114_v21 = vadd.s32 4294967294, %v633_v39 }
  0x56   :  { %v246_v12 = vxor.u32 2147483648, %v2236_v45  ;;  %vm703_vm6 = vcmp.lt.s32.totalorder %v2566_v0, 3  ;;  %vm704_vm7 = vcmp.lt.s32.totalorder %v2566_v0, 4  ;;  %vm702_vm4 = vcmp.lt.s32.totalorder %v2566_v0, 2 }
  0x57   :  { %v250_v8 = vsel %vm248_vm8, %v249_v16, %v2236_v45  ;;  %v705_v40 = vsel %vm701_vm11, %v685_v34, %v688_v24  ;;  %v706_v53 = vsel %vm704_vm7, %v694_v49, 2102212464  ;;  %vm349_vm3 = vcmp.eq.s32.totalorder %v2548_v63, 0 }
  0x58   :  { %v247_v51 = vsel %vm245_vm9, %v2234_v20, %v246_v12  ;;  %vm2115_vm2 = vcmp.lt.s32.totalorder %v2114_v21, 0  ;;  %v709_v54 = vsel %vm701_vm11, %v688_v24, %v691_v41  ;;  %v710_v57 = vsel %vm704_vm7, %v697_v43, 920167782 }
  0x59   :  { %v251_v59 = vsel %vm244_vm10, %v247_v51, %v250_v8  ;;  %vm348_vm8 = vcmp.lt.s32.totalorder %v2548_v63, 2  ;;  %vm2614_vm1 = vcmp.le.f32.partialorder %v565_v7, 0.7853982  ;;  %v636_v1 = vsel %vm2115_vm2, 0, %v2114_v21 }
  0x5a   :  { %v707_v47 = vsel %vm703_vm6, %v691_v41, %v706_v53  ;;  %v711_v6 = vsel %vm703_vm6, %v694_v49, %v710_v57  ;;  %v252_v11 = vsel %vm241_vm13, nan, %v251_v59  ;;  %vm345_vm9 = vweird.f32 %v2346_v19 }
  0x5b   :  { %v637_v35 = vsub.s32 32, %v636_v1  ;;  %v638_v13 = vshll.u32 %v2562_v14, %v636_v1  ;;  %v641_v17 = vsub.s32 4294967266, %v636_v1  ;;  %v1830_v7 = vsel %vm1818_vm14, %v2328_v9, %v252_v11 }
  0x5c   :  { %v712_v10 = vsel %vm702_vm4, %v709_v54, %v711_v6  ;;  %v713_v23 = vsel %vm701_vm11, %v691_v41, %v694_v49  ;;  %v714_v26 = vsel %vm704_vm7, %v700_v37, 1326507024  ;;  %1846 = vxpose.xlu0.b32.start [1/4] (short) %v1830_v7, 128  ;;  %v2641_v9 = vsel %vm140_vm15, %v136_v38, %v96_v18 }
  0x5d   :  { %v639_v33 = vshrl.u32 %v2556_v4, %v637_v35  ;;  %v642_v25 = vadd.s32 127, %v641_v17  ;;  %v715_v14 = vsel %vm703_vm6, %v697_v43, %v714_v26  ;;  %v708_v32 = vsel %vm702_vm4, %v705_v40, %v707_v47 }
  0x5e   :  { %v716_v29 = vsel %vm702_vm4, %v713_v23, %v715_v14  ;;  %v2648_v62 = vmul.u32.u64.low %v2558_v5, %v712_v10  ;;  %v2649_v15 = vmul.u32.u64.high %v2558_v5, %v712_v10, %v2648_v62  ;;  %v2238_v22 = vpop.eup %2237  ;;  %vm352_vm2 = vcmp.eq.s32.totalorder %v2548_v63, 2 }
  0x5f   :  { %v640_v4 = vor.u32 %v639_v33, %v638_v13  ;;  %v643_v36 = vshll.u32 %v642_v25, 23  ;;  %v2653_v34 = vmul.u32.u64.low %v2558_v5, %v716_v29  ;;  %v2654_v61 = vmul.u32.u64.high %v2558_v5, %v716_v29, %v2653_v34  ;;  %v2240_v20 = vpop.eup %2239 }
  0x60   :  { %v652_v18 = vsel %vm567_vm5, %v651_v27, %v2539_v55  ;;  %v984_v0 = vand.u32 2139095040, %v2641_v9  ;;  %v82_v38 = vcombine.high %v2545_v60, %v2545_v60  ;;  %v353_v39 = vxor.u32 2147483648, %v2238_v22 }
  0x61   :  { %v644_v24 = vor.u32 4788187, %v643_v36  ;;  %v647_v41 = vcvt.s32.f32 %v640_v4  ;;  %v724_v43 = vmul.u32 %v2558_v5, %v708_v32  ;;  %v350_v45 = vxor.u32 2147483648, %v2240_v20 }
  0x62   :  { %v727_v16 = vadd.s32 1, %v2649_v15  ;;  %v981_v49 = vand.u32 2147483647, %v2641_v9  ;;  %v985_v37 = vshrl.u32 %v984_v0, 23  ;;  %v354_v12 = vsel %vm352_vm2, %v353_v39, %v2240_v20 }
  0x63   :  { %v645_v21 = vand.u32 2147483647, %v644_v24  ;;  %v654_v55 = vsel %vm2614_vm1, 0, %v652_v18  ;;  %vm726_vm4 = vc.u32 %v2654_v61, %v2648_v62  ;;  %v351_v60 = vsel %vm349_vm3, %v2238_v22, %v350_v45 }
  0x64   :  { %v728_v27 = vsel %vm726_vm4, %v727_v16, %v2649_v15  ;;  %v2128_v5 = vadd.s32 4294967169, %v985_v37  ;;  %v355_v8 = vsel %vm348_vm8, %v351_v60, %v354_v12  ;;  %v658_v54 = vadd.s32 3, %v654_v55 }
  0x65   :  { %v648_v40 = vmul.f32 %v647_v41, %v645_v21  ;;  %v729_v53 = vadd.s32 %v728_v27, %v724_v43  ;;  %v356_v51 = vsel %vm345_vm9, nan, %v355_v8  ;;  %v988_v57 = vand.u32 8388607, %v981_v49 }
  0x66   :  { %v991_v59 = vadd.s32 1, %v2128_v5  ;;  %v1831_v1 = vsel %vm1818_vm14, %v2346_v19, %v356_v51  ;;  %v85_v11 = vrot.slane %v82_v38, 6  ;;  %v94_v17 = vcombine.high %v2552_v3, %v2552_v3 }
  0x67   :  { %v649_v47 = vxor.u32 2147483648, %v648_v40  ;;  %v730_v6 = vadd.s32 536870912, %v729_v53  ;;  %1878 = vxpose.xlu1.b32.start [1/4] (short) %v1831_v1, 128  ;;  %v2689_v10 = vand.u32 3, %v658_v54  ;;  %vm671_vm10 = vcmp.lt.s32.totalorder %v2497_v56, 0 }
  0x68   :  { %vm992_vm3 = vcmp.gt.s32.totalorder %v991_v59, 0  ;;  %v989_v26 = vor.u32 8388608, %v988_v57  ;;  %v137_v33 = vsel %vm135_vm12, %v2448_v52, %v85_v11  ;;  %v97_v4 = vrot.slane %v94_v17, 3 }
  0x69   :  { %v650_v63 = vsel %vm567_vm5, %v649_v47, %v648_v40  ;;  %v731_v35 = vshrl.u32 %v730_v6, 30  ;;  %v993_v13 = vsel %vm992_vm3, %v991_v59, 0  ;;  %vm664_vm13 = vcmp.eq.s32.totalorder %v2689_v10, 2 }
  0x6a   :  { %v653_v7 = vsel %vm2614_vm1, %v2360_v31, %v650_v63  ;;  %v995_v19 = vand.u32 31, %v993_v13  ;;  %v994_v34 = vshrl.u32 %v993_v13, 5  ;;  %vm661_vm1 = vcmp.eq.s32.totalorder %v2689_v10, 0 }
  0x6b   :  { %2241 = vcosq.f32 %v653_v7  ;;  %v732_v23 = vshll.u32 %v731_v35, 30  ;;  %v755_v36 = vsub.s32 4, %v731_v35  ;;  %vm660_vm11 = vcmp.lt.s32.totalorder %v2689_v10, 2 }
  0x6c   :  { %2243 = vsinq.f32 %v653_v7  ;;  %v996_v25 = vsub.s32 32, %v995_v19  ;;  %v998_v14 = vshll.u32 %v2297_v42, %v995_v19  ;;  %v1001_v32 = vshll.u32 %v2298_v44, %v995_v19 }
  0x6d   :  { %v2696_v29 = vsub.s32 %v729_v53, %v732_v23  ;;  %v1004_v30 = vshll.u32 %v2299_v46, %v995_v19  ;;  %v1007_v15 = vshll.u32 %v2300_v48, %v995_v19  ;;  %v1010_v41 = vshll.u32 %v2301_v50, %v995_v19 }
  0x6e   :  { %v999_v22 = vshrl.u32 %v2298_v44, %v996_v25  ;;  %v1002_v18 = vshrl.u32 %v2299_v46, %v996_v25  ;;  %v997_v0 = vshrl.u32 %v2297_v42, %v996_v25  ;;  %v1005_v38 = vshrl.u32 %v2300_v48, %v996_v25 }
  0x6f   :  { %v735_v52 = vsub.s32 0, %v2696_v29  ;;  %v1008_v20 = vshrl.u32 %v2301_v50, %v996_v25  ;;  %v1011_v43 = vshrl.u32 %v2302_v58, %v996_v25  ;;  %v725_v12 = vadd.s32 %v2648_v62, %v2654_v61 }
  0x70   :  { %v1000_v39 = vor.u32 %v999_v22, %v998_v14  ;;  %v1003_v24 = vor.u32 %v1002_v18, %v1001_v32  ;;  %v1006_v16 = vor.u32 %v1005_v38, %v1004_v30  ;;  %vm1013_vm5 = vcmp.lt.s32.totalorder %v994_v34, 1 }
  0x71   :  { %v2117_v45 = vmin.u32 %v735_v52, %v2696_v29  ;;  %v1009_v37 = vor.u32 %v1008_v20, %v1007_v15  ;;  %v1012_v21 = vor.u32 %v1011_v43, %v1010_v41  ;;  %v1029_v55 = vshll.u32 %v989_v26, 8 }
  0x72   :  { %vm657_vm6 = vweird.f32 %v2360_v31  ;;  %vm2717_vm7 = vcmp.le.f32.partialorder %v669_v28, 0.7853982  ;;  %v756_v5 = vsel %vm671_vm10, %v755_v36, %v731_v35  ;;  %vm1015_vm8 = vcmp.lt.s32.totalorder %v994_v34, 3 }
  0x73   :  { %v737_v27 = vclz %v2117_v45  ;;  %v2724_v8 = vsel %vm140_vm15, %v137_v33, %v97_v4  ;;  %vm1014_vm9 = vcmp.lt.s32.totalorder %v994_v34, 2  ;;  %vm1016_vm2 = vcmp.lt.s32.totalorder %v994_v34, 4 }
  0x74   :  { %v1017_v62 = vsel %vm1013_vm5, %v997_v0, %v1000_v39  ;;  %v1021_v61 = vsel %vm1013_vm5, %v1000_v39, %v1003_v24  ;;  %v1018_v53 = vsel %vm1016_vm2, %v1006_v16, 2102212464  ;;  %v1022_v51 = vsel %vm1016_vm2, %v1009_v37, 920167782 }
  0x75   :  { %v2118_v40 = vadd.s32 4294967294, %v737_v27  ;;  %v1025_v54 = vsel %vm1013_vm5, %v1003_v24, %v1006_v16  ;;  %v1019_v28 = vsel %vm1015_vm8, %v1003_v24, %v1018_v53  ;;  %v1023_v57 = vsel %vm1015_vm8, %v1006_v16, %v1022_v51 }
  0x76   :  { %v1026_v59 = vsel %vm1016_vm2, %v1012_v21, 1326507024  ;;  %v1088_v1 = vand.u32 2139095040, %v2724_v8  ;;  %v1020_v47 = vsel %vm1014_vm9, %v1017_v62, %v1019_v28  ;;  %v1024_v6 = vsel %vm1014_vm9, %v1021_v61, %v1023_v57 }
  0x77   :  { %vm2119_vm4 = vcmp.lt.s32.totalorder %v2118_v40, 0  ;;  %v1027_v11 = vsel %vm1015_vm8, %v1009_v37, %v1026_v59  ;;  %v2733_v17 = vmul.u32.u64.low %v1029_v55, %v1024_v6  ;;  %v2734_v7 = vmul.u32.u64.high %v1029_v55, %v1024_v6, %v2733_v17 }
  0x78   :  { %v2242_v63 = vpop.eup %2241  ;;  %v740_v35 = vsel %vm2119_vm4, 0, %v2118_v40  ;;  %v1028_v13 = vsel %vm1014_vm9, %v1025_v54, %v1027_v11  ;;  %v1085_v15 = vand.u32 2147483647, %v2724_v8  ;;  %v1089_v22 = vshrl.u32 %v1088_v1, 23 }
  0x79   :  { %v2244_v19 = vpop.eup %2243  ;;  %v665_v23 = vxor.u32 2147483648, %v2242_v63  ;;  %v741_v26 = vsub.s32 32, %v740_v35  ;;  %v742_v33 = vshll.u32 %v2696_v29, %v740_v35  ;;  %v745_v25 = vsub.s32 4294967266, %v740_v35 }
  0x7a   :  { %v662_v14 = vxor.u32 2147483648, %v2244_v19  ;;  %v2737_v32 = vmul.u32.u64.low %v1029_v55, %v1028_v13  ;;  %v2738_v30 = vmul.u32.u64.high %v1029_v55, %v1028_v13, %v2737_v32  ;;  %v758_v52 = vsel %vm2717_vm7, 0, %v756_v5 }
  0x7b   :  { %v666_v4 = vsel %vm664_vm13, %v665_v23, %v2244_v19  ;;  %v743_v36 = vshrl.u32 %v725_v12, %v741_v26  ;;  %v746_v34 = vadd.s32 127, %v745_v25  ;;  %v1036_v29 = vmul.u32 %v1029_v55, %v1020_v47 }
  0x7c   :  { %v663_v18 = vsel %vm661_vm1, %v2242_v63, %v662_v14  ;;  %v1039_v0 = vadd.s32 1, %v2734_v7  ;;  %v2132_v24 = vadd.s32 4294967169, %v1089_v22  ;;  %vm1038_vm3 = vc.u32 %v2738_v30, %v2733_v17 }
  0x7d   :  { %v667_v38 = vsel %vm660_vm11, %v663_v18, %v666_v4  ;;  %v744_v20 = vor.u32 %v743_v36, %v742_v33  ;;  %v747_v39 = vshll.u32 %v746_v34, 23  ;;  %v762_v12 = vadd.s32 3, %v758_v52 }
  0x7e   :  { %v668_v41 = vsel %vm657_vm6, nan, %v667_v38  ;;  %v1040_v16 = vsel %vm1038_vm3, %v1039_v0, %v2734_v7  ;;  %v1095_v37 = vadd.s32 1, %v2132_v24  ;;  %v2755_v55 = vadd.f32 1.5707964, %v2552_v3 }
  0x7f   :  { %1847 = vxpose.xlu0.b32.cont [2/4] (short) %v668_v41, 128  ;;  %v748_v43 = vor.u32 4788187, %v747_v39  ;;  %v751_v45 = vcvt.s32.f32 %v744_v20  ;;  %v1041_v21 = vadd.s32 %v1040_v16, %v1036_v29  ;;  %v1092_v27 = vand.u32 8388607, %v1085_v15 }
  0x80   :  { %vm1096_vm1 = vcmp.gt.s32.totalorder %v1095_v37, 0  ;;  %v2761_v40 = vsel %vm110_vm0, %v2755_v55, 0.0  ;;  %v2763_v53 = vand.u32 3, %v762_v12  ;;  %v106_v3 = vcombine.high %v2755_v55, %v2755_v55 }
  0x81   :  { %v749_v10 = vand.u32 2147483647, %v748_v43  ;;  %v1042_v31 = vadd.s32 536870912, %v1041_v21  ;;  %v1097_v5 = vsel %vm1096_vm1, %v1095_v37, 0  ;;  %v2770_v28 = vadd.s32 %v2733_v17, %v2738_v30 }
  0x82   :  { %v1099_v61 = vand.u32 31, %v1097_v5  ;;  %v1093_v57 = vor.u32 8388608, %v1092_v27  ;;  %v1400_v11 = vand.u32 2139095040, %v2761_v40  ;;  %v1098_v23 = vshrl.u32 %v1097_v5, 5 }
  0x83   :  { %v752_v62 = vmul.f32 %v751_v45, %v749_v10  ;;  %v2765_v51 = vshrl.u32 %v1042_v31, 30  ;;  %v1397_v14 = vand.u32 2147483647, %v2761_v40  ;;  %vm983_vm5 = vcmp.lt.s32.totalorder %v2641_v9, 0 }
  0x84   :  { %v1100_v59 = vsub.s32 32, %v1099_v61  ;;  %v1102_v47 = vshll.u32 %v2297_v42, %v1099_v61  ;;  %v1105_v6 = vshll.u32 %v2298_v44, %v1099_v61  ;;  %v1108_v17 = vshll.u32 %v2299_v46, %v1099_v61 }
  0x85   :  { %v753_v54 = vxor.u32 2147483648, %v752_v62  ;;  %v1044_v1 = vshll.u32 %v2765_v51, 30  ;;  %v1111_v25 = vshll.u32 %v2300_v48, %v1099_v61  ;;  %v1114_v34 = vshll.u32 %v2301_v50, %v1099_v61 }
  0x86   :  { %v1103_v35 = vshrl.u32 %v2298_v44, %v1100_v59  ;;  %v1106_v13 = vshrl.u32 %v2299_v46, %v1100_v59  ;;  %v1109_v26 = vshrl.u32 %v2300_v48, %v1100_v59  ;;  %v1101_v33 = vshrl.u32 %v2297_v42, %v1100_v59 }
  0x87   :  { %v754_v63 = vsel %vm671_vm10, %v753_v54, %v752_v62  ;;  %v2784_v19 = vsub.s32 %v1041_v21, %v1044_v1  ;;  %v1112_v60 = vshrl.u32 %v2301_v50, %v1100_v59  ;;  %v1115_v22 = vshrl.u32 %v2302_v58, %v1100_v59 }
  0x88   :  { %v757_v7 = vsel %vm2717_vm7, %v2497_v56, %v754_v63  ;;  %v1104_v30 = vor.u32 %v1103_v35, %v1102_v47  ;;  %v1107_v4 = vor.u32 %v1106_v13, %v1105_v6  ;;  %v1110_v36 = vor.u32 %v1109_v26, %v1108_v17 }
  0x89   :  { %2245 = vcosq.f32 %v757_v7  ;;  %v1047_v32 = vsub.s32 0, %v2784_v19  ;;  %vm1117_vm10 = vcmp.lt.s32.totalorder %v1098_v23, 1  ;;  %v1133_v52 = vshll.u32 %v1093_v57, 8 }
  0x8a   :  { %2247 = vsinq.f32 %v757_v7  ;;  %v1401_v29 = vshrl.u32 %v1400_v11, 23  ;;  %v1113_v0 = vor.u32 %v1112_v60, %v1111_v25  ;;  %v1116_v38 = vor.u32 %v1115_v22, %v1114_v34 }
  0x8b   :  { %v2129_v18 = vmin.u32 %v1047_v32, %v2784_v19  ;;  %vm1119_vm13 = vcmp.lt.s32.totalorder %v1098_v23, 3  ;;  %vm1120_vm11 = vcmp.lt.s32.totalorder %v1098_v23, 4  ;;  %vm1118_vm6 = vcmp.lt.s32.totalorder %v1098_v23, 2 }
  0x8c   :  { %v1121_v39 = vsel %vm1117_vm10, %v1101_v33, %v1104_v30  ;;  %v2798_v24 = vand.u32 8388607, %v1397_v14  ;;  %v1122_v41 = vsel %vm1120_vm11, %v1110_v36, 2102212464  ;;  %v1125_v43 = vsel %vm1117_vm10, %v1104_v30, %v1107_v4 }
  0x8d   :  { %v1049_v20 = vclz %v2129_v18  ;;  %v1126_v45 = vsel %vm1120_vm11, %v1113_v0, 920167782  ;;  %v1129_v16 = vsel %vm1117_vm10, %v1107_v4, %v1110_v36  ;;  %vm764_vm7 = vcmp.lt.s32.totalorder %v2763_v53, 2 }
  0x8e   :  { %v1123_v12 = vsel %vm1119_vm13, %v1107_v4, %v1122_v41  ;;  %v1127_v21 = vsel %vm1119_vm13, %v1110_v36, %v1126_v45  ;;  %v1130_v10 = vsel %vm1120_vm11, %v1116_v38, 1326507024  ;;  %vm761_vm8 = vweird.f32 %v2497_v56 }
  0x8f   :  { %v2130_v37 = vadd.s32 4294967294, %v1049_v20  ;;  %vm2806_vm9 = vcmp.le.f32.partialorder %v981_v49, 0.7853982  ;;  %v1124_v31 = vsel %vm1118_vm6, %v1121_v39, %v1123_v12  ;;  %v1128_v5 = vsel %vm1118_vm6, %v1125_v43, %v1127_v21 }
  0x90   :  { %v1131_v62 = vsel %vm1119_vm13, %v1113_v0, %v1130_v10  ;;  %v2144_v61 = vadd.s32 4294967169, %v1401_v29  ;;  %v2814_v57 = vmul.u32.u64.low %v1133_v52, %v1128_v5  ;;  %v2815_v59 = vmul.u32.u64.high %v1133_v52, %v1128_v5, %v2814_v57 }
  0x91   :  { %vm2131_vm2 = vcmp.lt.s32.totalorder %v2130_v37, 0  ;;  %v1132_v54 = vsel %vm1118_vm6, %v1129_v16, %v1131_v62  ;;  %v1067_v49 = vsub.s32 4, %v2765_v51  ;;  %vm765_vm4 = vcmp.eq.s32.totalorder %v2763_v53, 0 }
  0x92   :  { %v1052_v1 = vsel %vm2131_vm2, 0, %v2130_v37  ;;  %v2819_v47 = vmul.u32.u64.low %v1133_v52, %v1132_v54  ;;  %v2820_v6 = vmul.u32.u64.high %v1133_v52, %v1132_v54, %v2819_v47  ;;  %v1407_v13 = vadd.s32 1, %v2144_v61 }
  0x93   :  { %v1053_v11 = vsub.s32 32, %v1052_v1  ;;  %v1054_v63 = vshll.u32 %v2784_v19, %v1052_v1  ;;  %v1057_v35 = vsub.s32 4294967266, %v1052_v1  ;;  %vm768_vm3 = vcmp.eq.s32.totalorder %v2763_v53, 2 }
  0x94   :  { %v1140_v17 = vmul.u32 %v1133_v52, %v1124_v31  ;;  %v1405_v7 = vor.u32 8388608, %v2798_v24  ;;  %v1143_v25 = vadd.s32 1, %v2815_v59  ;;  %vm1408_vm1 = vcmp.gt.s32.totalorder %v1407_v13, 0 }
  0x95   :  { %v1055_v26 = vshrl.u32 %v2770_v28, %v1053_v11  ;;  %v1058_v33 = vadd.s32 127, %v1057_v35  ;;  %v1068_v19 = vsel %vm983_vm5, %v1067_v49, %v2765_v51  ;;  %vm1142_vm10 = vc.u32 %v2820_v6, %v2814_v57 }
  0x96   :  { %v2246_v23 = vpop.eup %2245  ;;  %v1409_v4 = vsel %vm1408_vm1, %v1407_v13, 0  ;;  %v1144_v22 = vsel %vm1142_vm10, %v1143_v25, %v2815_v59  ;;  %v2840_v29 = vsel %vm110_vm0, %v106_v3, 0.0  ;;  %v1070_v20 = vsel %vm2806_vm9, 0, %v1068_v19 }
  0x97   :  { %v2248_v32 = vpop.eup %2247  ;;  %v769_v30 = vxor.u32 2147483648, %v2246_v23  ;;  %v1056_v60 = vor.u32 %v1055_v26, %v1054_v63  ;;  %v1059_v34 = vshll.u32 %v1058_v33, 23  ;;  %v1145_v18 = vadd.s32 %v1144_v22, %v1140_v17 }
  0x98   :  { %v766_v36 = vxor.u32 2147483648, %v2248_v32  ;;  %v1411_v52 = vand.u32 31, %v1409_v4  ;;  %v1410_v41 = vshrl.u32 %v1409_v4, 5  ;;  %v1074_v62 = vadd.s32 3, %v1070_v20 }
  0x99   :  { %v770_v28 = vsel %vm768_vm3, %v769_v30, %v2248_v32  ;;  %v1060_v0 = vor.u32 4788187, %v1059_v34  ;;  %v1063_v38 = vcvt.s32.f32 %v1056_v60  ;;  %v1146_v24 = vadd.s32 536870912, %v1145_v18 }
  0x9a   :  { %v767_v51 = vsel %vm765_vm4, %v2246_v23, %v766_v36  ;;  %v1412_v43 = vsub.s32 32, %v1411_v52  ;;  %v1414_v3 = vshll.u32 %v2297_v42, %v1411_v52  ;;  %v1417_v16 = vshll.u32 %v2298_v44, %v1411_v52 }
  0x9b   :  { %v771_v39 = vsel %vm764_vm7, %v767_v51, %v770_v28  ;;  %v1061_v45 = vand.u32 2147483647, %v1060_v0  ;;  %v1147_v37 = vshrl.u32 %v1146_v24, 30  ;;  %v1420_v53 = vshll.u32 %v2299_v46, %v1411_v52 }
  0x9c   :  { %v772_v55 = vsel %vm761_vm8, nan, %v771_v39  ;;  %v1415_v12 = vshrl.u32 %v2298_v44, %v1412_v43  ;;  %v1418_v21 = vshrl.u32 %v2299_v46, %v1412_v43  ;;  %v1421_v31 = vshrl.u32 %v2300_v48, %v1412_v43 }
  0x9d   :  { %1879 = vxpose.xlu1.b32.cont [2/4] (short) %v772_v55, 128  ;;  %v1064_v10 = vmul.f32 %v1063_v38, %v1061_v45  ;;  %v1423_v5 = vshll.u32 %v2300_v48, %v1411_v52  ;;  %v1424_v56 = vshrl.u32 %v2301_v50, %v1412_v43  ;;  %v1148_v61 = vshll.u32 %v1147_v37, 30  ;;  %v2893_v55 = vld [vmem:[%s3752_s0 + $0x8] sm:$0x77] }
  0x9e   :  { %v2858_v54 = vshll.u32 %v1405_v7, 8  ;;  %v1504_v59 = vand.u32 2139095040, %v2840_v29  ;;  %v1171_v49 = vsub.s32 4, %v1147_v37  ;;  %v1413_v47 = vshrl.u32 %v2297_v42, %v1412_v43 }
  0x9f   :  { %v1065_v1 = vxor.u32 2147483648, %v1064_v10  ;;  %v1426_v11 = vshll.u32 %v2301_v50, %v1411_v52  ;;  %v2863_v63 = vsub.s32 %v1145_v18, %v1148_v61  ;;  %v1416_v35 = vor.u32 %v1415_v12, %v1414_v3 }
  0xa0   :  { %v1419_v13 = vor.u32 %v1418_v21, %v1417_v16  ;;  %v1427_v17 = vshrl.u32 %v2302_v58, %v1412_v43  ;;  %v1422_v26 = vor.u32 %v1421_v31, %v1420_v53  ;;  %v1425_v7 = vor.u32 %v1424_v56, %v1423_v5 }
  0xa1   :  { %v1066_v23 = vsel %vm983_vm5, %v1065_v1, %v1064_v10  ;;  %vm1429_vm13 = vcmp.lt.s32.totalorder %v1410_v41, 1  ;;  %v1151_v25 = vsub.s32 0, %v2863_v63  ;;  %vm1430_vm11 = vcmp.lt.s32.totalorder %v1410_v41, 2 }
  0xa2   :  { %v1069_v33 = vsel %vm2806_vm9, %v2641_v9, %v1066_v23  ;;  %v1428_v32 = vor.u32 %v1427_v17, %v1426_v11  ;;  %vm1431_vm6 = vcmp.lt.s32.totalorder %v1410_v41, 3  ;;  %vm1432_vm7 = vcmp.lt.s32.totalorder %v1410_v41, 4 }
  0xa3   :  { %2249 = vcosq.f32 %v1069_v33  ;;  %v1433_v30 = vsel %vm1429_vm13, %v1413_v47, %v1416_v35  ;;  %v2133_v19 = vmin.u32 %v1151_v25, %v2863_v63  ;;  %v1434_v4 = vsel %vm1432_vm7, %v1422_v26, 2102212464 }
  0xa4   :  { %2251 = vsinq.f32 %v1069_v33  ;;  %v1437_v36 = vsel %vm1429_vm13, %v1416_v35, %v1419_v13  ;;  %v1435_v60 = vsel %vm1431_vm6, %v1419_v13, %v1434_v4  ;;  %v1438_v34 = vsel %vm1432_vm7, %v1425_v7, 920167782 }
  0xa5   :  { %v1441_v22 = vsel %vm1429_vm13, %v1419_v13, %v1422_v26  ;;  %v1442_v28 = vsel %vm1432_vm7, %v1428_v32, 1326507024  ;;  %v2874_v27 = vand.u32 3, %v1074_v62  ;;  %vm2878_vm5 = vcmp.le.f32.partialorder %v1085_v15, 0.7853982 }
  0xa6   :  { %vm1087_vm8 = vcmp.lt.s32.totalorder %v2724_v8, 0  ;;  %v1153_v52 = vclz %v2133_v19  ;;  %v1439_v0 = vsel %vm1431_vm6, %v1422_v26, %v1438_v34  ;;  %v1443_v38 = vsel %vm1431_vm6, %v1425_v7, %v1442_v28 }
  0xa7   :  { %v1172_v51 = vsel %vm1087_vm8, %v1171_v49, %v1147_v37  ;;  %v1505_v20 = vshrl.u32 %v1504_v59, 23  ;;  %v1436_v24 = vsel %vm1430_vm11, %v1433_v30, %v1435_v60  ;;  %v1440_v43 = vsel %vm1430_vm11, %v1437_v36, %v1439_v0 }
  0xa8   :  { %v2134_v39 = vadd.s32 4294967294, %v1153_v52  ;;  %v1444_v15 = vsel %vm1430_vm11, %v1441_v22, %v1443_v38  ;;  %v2900_v16 = vmul.u32.u64.low %v2858_v54, %v1440_v43  ;;  %v2901_v37 = vmul.u32.u64.high %v2858_v54, %v1440_v43, %v2900_v16 }
  0xa9   :  { %v2896_v45 = vmul.u32.u64.low %v2858_v54, %v1444_v15  ;;  %v2897_v3 = vmul.u32.u64.high %v2858_v54, %v1444_v15, %v2896_v45  ;;  %v1141_v12 = vadd.s32 %v2814_v57, %v2820_v6  ;;  %v1174_v41 = vsel %vm2878_vm5, 0, %v1172_v51 }
  0xaa   :  { %vm2135_vm9 = vcmp.lt.s32.totalorder %v2134_v39, 0  ;;  %v2148_v21 = vadd.s32 4294967169, %v1505_v20  ;;  %vm1073_vm2 = vweird.f32 %v2641_v9  ;;  %v1501_v10 = vand.u32 2147483647, %v2840_v29 }
  0xab   :  { %v1156_v53 = vsel %vm2135_vm9, 0, %v2134_v39  ;;  %v2911_v31 = vadd.f32 1.5707964, %v2893_v55  ;;  %v1452_v61 = vmul.u32 %v2858_v54, %v1436_v24  ;;  %v1178_v57 = vadd.s32 3, %v1174_v41 }
  0xac   :  { %v1157_v5 = vsub.s32 32, %v1156_v53  ;;  %v1158_v56 = vshll.u32 %v2863_v63, %v1156_v53  ;;  %v1161_v62 = vsub.s32 4294967266, %v1156_v53  ;;  %vm1454_vm4 = vc.u32 %v2897_v3, %v2900_v16 }
  0xad   :  { %v1455_v6 = vadd.s32 1, %v2901_v37  ;;  %v1511_v59 = vadd.s32 1, %v2148_v21  ;;  %vm1076_vm3 = vcmp.lt.s32.totalorder %v2874_v27, 2  ;;  %v32_v47 = vrot.slane %v2893_v55, 5 }
  0xae   :  { %v1159_v1 = vshrl.u32 %v1141_v12, %v1157_v5  ;;  %v1162_v49 = vadd.s32 127, %v1161_v62  ;;  %vm1077_vm1 = vcmp.eq.s32.totalorder %v2874_v27, 0  ;;  %vm1080_vm10 = vcmp.eq.s32.totalorder %v2874_v27, 2 }
  0xaf   :  { %v1456_v11 = vsel %vm1454_vm4, %v1455_v6, %v2901_v37  ;;  %vm1512_vm13 = vcmp.gt.s32.totalorder %v1511_v59, 0  ;;  %v2923_v7 = vand.u32 3, %v1178_v57  ;;  %v1508_v33 = vand.u32 8388607, %v1501_v10 }
  0xb0   :  { %v2250_v54 = vpop.eup %2249  ;;  %v1160_v63 = vor.u32 %v1159_v1, %v1158_v56  ;;  %v1163_v35 = vshll.u32 %v1162_v49, 23  ;;  %v1457_v13 = vadd.s32 %v1456_v11, %v1452_v61  ;;  %v1513_v17 = vsel %vm1512_vm13, %v1511_v59, 0 }
  0xb1   :  { %v2252_v23 = vpop.eup %2251  ;;  %v1081_v26 = vxor.u32 2147483648, %v2250_v54  ;;  %v1515_v25 = vand.u32 31, %v1513_v17  ;;  %v44_v34 = vrot.slane %v2911_v31, 2  ;;  %v113_v22 = vsel %vm110_vm0, %v2893_v55, %v32_v47 }
  0xb2   :  { %v1078_v32 = vxor.u32 2147483648, %v2252_v23  ;;  %v1164_v30 = vor.u32 4788187, %v1163_v35  ;;  %v1167_v19 = vcvt.s32.f32 %v1160_v63  ;;  %v1458_v4 = vadd.s32 536870912, %v1457_v13 }
  0xb3   :  { %v1082_v36 = vsel %vm1080_vm10, %v1081_v26, %v2252_v23  ;;  %v1516_v60 = vsub.s32 32, %v1515_v25  ;;  %v1518_v0 = vshll.u32 %v2297_v42, %v1515_v25  ;;  %v1521_v39 = vshll.u32 %v2298_v44, %v1515_v25 }
  0xb4   :  { %v1079_v28 = vsel %vm1077_vm1, %v2250_v54, %v1078_v32  ;;  %v1165_v52 = vand.u32 2147483647, %v1164_v30  ;;  %v1459_v51 = vshrl.u32 %v1458_v4, 30  ;;  %v1524_v24 = vshll.u32 %v2299_v46, %v1515_v25 }
  0xb5   :  { %v1083_v38 = vsel %vm1076_vm3, %v1079_v28, %v1082_v36  ;;  %v1519_v20 = vshrl.u32 %v2298_v44, %v1516_v60  ;;  %v1522_v37 = vshrl.u32 %v2299_v46, %v1516_v60  ;;  %v1509_v12 = vor.u32 8388608, %v1508_v33 }
  0xb6   :  { %v1084_v43 = vsel %vm1073_vm2, nan, %v1083_v38  ;;  %v1168_v15 = vmul.f32 %v1167_v19, %v1165_v52  ;;  %v1460_v45 = vshll.u32 %v1459_v51, 30  ;;  %v1514_v41 = vshrl.u32 %v1513_v17, 5 }
  0xb7   :  { %1848 = vxpose.xlu0.b32.cont [3/4] (short) %v1084_v43, 128  ;;  %v1525_v21 = vshrl.u32 %v2300_v48, %v1516_v60  ;;  %v1527_v27 = vshll.u32 %v2300_v48, %v1515_v25  ;;  %vm1399_vm11 = vcmp.lt.s32.totalorder %v2761_v40, 0  ;;  %v1453_v5 = vadd.s32 %v2900_v16, %v2897_v3 }
  0xb8   :  { %v1169_v53 = vxor.u32 2147483648, %v1168_v15  ;;  %v2948_v56 = vsub.s32 %v1457_v13, %v1460_v45  ;;  %v1528_v9 = vshrl.u32 %v2301_v50, %v1516_v60  ;;  %v1517_v62 = vshrl.u32 %v2297_v42, %v1516_v60 }
  0xb9   :  { %v1520_v61 = vor.u32 %v1519_v20, %v1518_v0  ;;  %v1530_v57 = vshll.u32 %v2301_v50, %v1515_v25  ;;  %v1531_v6 = vshrl.u32 %v2302_v58, %v1516_v60  ;;  %v1523_v49 = vor.u32 %v1522_v37, %v1521_v39 }
  0xba   :  { %v1170_v59 = vsel %vm1087_vm8, %v1169_v53, %v1168_v15  ;;  %v1463_v1 = vsub.s32 0, %v2948_v56  ;;  %v1526_v47 = vor.u32 %v1525_v21, %v1524_v24  ;;  %v1529_v16 = vor.u32 %v1528_v9, %v1527_v27 }
  0xbb   :  { %v1173_v3 = vsel %vm2878_vm5, %v2724_v8, %v1170_v59  ;;  %v1532_v11 = vor.u32 %v1531_v6, %v1530_v57  ;;  %vm1533_vm6 = vcmp.lt.s32.totalorder %v1514_v41, 1  ;;  %v1549_v63 = vshll.u32 %v1509_v12, 8 }
  0xbc   :  { %2253 = vcosq.f32 %v1173_v3  ;;  %v2145_v54 = vmin.u32 %v1463_v1, %v2948_v56  ;;  %vm3770_vm7 = vcmask 1045504   ;;  %v1483_v13 = vsub.s32 4, %v1459_v51 }
  0xbd   :  { %v2964_v35 = vsel %vm3770_vm7, %v113_v22, %v44_v34  ;;  %2255 = vsinq.f32 %v1173_v3  ;;  %vm1535_vm8 = vcmp.lt.s32.totalorder %v1514_v41, 3  ;;  %vm1536_vm9 = vcmp.lt.s32.totalorder %v1514_v41, 4 }
  0xbe   :  { %v1465_v17 = vclz %v2145_v54  ;;  %vm1534_vm2 = vcmp.lt.s32.totalorder %v1514_v41, 2  ;;  %v1537_v18 = vsel %vm1533_vm6, %v1517_v62, %v1520_v61  ;;  %v1541_v23 = vsel %vm1533_vm6, %v1520_v61, %v1523_v49 }
  0xbf   :  { %v1538_v26 = vsel %vm1536_vm9, %v1526_v47, 2102212464  ;;  %v1542_v33 = vsel %vm1536_vm9, %v1529_v16, 920167782  ;;  %v1545_v25 = vsel %vm1533_vm6, %v1523_v49, %v1526_v47  ;;  %v1546_v32 = vsel %vm1536_vm9, %v1532_v11, 1326507024 }
  0xc0   :  { %v2146_v30 = vadd.s32 4294967294, %v1465_v17  ;;  %v1539_v19 = vsel %vm1535_vm8, %v1523_v49, %v1538_v26  ;;  %v1543_v4 = vsel %vm1535_vm8, %v1526_v47, %v1542_v33  ;;  %v1547_v36 = vsel %vm1535_vm8, %v1529_v16, %v1546_v32 }
  0xc1   :  { %v1484_v60 = vsel %vm1399_vm11, %v1483_v13, %v1459_v51  ;;  %v1544_v22 = vsel %vm1534_vm2, %v1541_v23, %v1543_v4  ;;  %v1548_v28 = vsel %vm1534_vm2, %v1545_v25, %v1547_v36  ;;  %v360_v52 = vand.u32 2139095040, %v2964_v35 }
  0xc2   :  { %vm2147_vm5 = vcmp.lt.s32.totalorder %v2146_v30, 0  ;;  %v1540_v0 = vsel %vm1534_vm2, %v1537_v18, %v1539_v19  ;;  %v2972_v38 = vmul.u32.u64.low %v1549_v63, %v1548_v28  ;;  %v2973_v20 = vmul.u32.u64.high %v1549_v63, %v1548_v28, %v2972_v38 }
  0xc3   :  { %v1468_v39 = vsel %vm2147_vm5, 0, %v2146_v30  ;;  %v2975_v24 = vmul.u32.u64.low %v1549_v63, %v1544_v22  ;;  %v2976_v43 = vmul.u32.u64.high %v1549_v63, %v1544_v22, %v2975_v24  ;;  %v361_v15 = vshrl.u32 %v360_v52, 23 }
  0xc4   :  { %vm2980_vm4 = vcmp.le.f32.partialorder %v1397_v14, 0.7853982  ;;  %v1469_v45 = vsub.s32 32, %v1468_v39  ;;  %v1470_v37 = vshll.u32 %v2948_v56, %v1468_v39  ;;  %v1473_v12 = vsub.s32 4294967266, %v1468_v39 }
  0xc5   :  { %vm1177_vm3 = vweird.f32 %v2724_v8  ;;  %v1486_v41 = vsel %vm2980_vm4, 0, %v1484_v60  ;;  %v2104_v21 = vadd.s32 4294967169, %v361_v15  ;;  %v27_v27 = vcombine.high %v2893_v55, %v2893_v55 }
  0xc6   :  { %v1471_v53 = vshrl.u32 %v1453_v5, %v1469_v45  ;;  %v1474_v9 = vadd.s32 127, %v1473_v12  ;;  %v1556_v62 = vmul.u32 %v1549_v63, %v1540_v0  ;;  %vm1558_vm1 = vc.u32 %v2973_v20, %v2975_v24 }
  0xc7   :  { %vm1181_vm10 = vcmp.eq.s32.totalorder %v2923_v7, 0  ;;  %v1559_v14 = vadd.s32 1, %v2976_v43  ;;  %v357_v56 = vand.u32 2147483647, %v2964_v35  ;;  %v367_v61 = vadd.s32 1, %v2104_v21 }
  0xc8   :  { %vm1184_vm13 = vcmp.eq.s32.totalorder %v2923_v7, 2  ;;  %v1472_v57 = vor.u32 %v1471_v53, %v1470_v37  ;;  %v1475_v6 = vshll.u32 %v1474_v9, 23  ;;  %v1490_v59 = vadd.s32 3, %v1486_v41 }
  0xc9   :  { %v2254_v1 = vpop.eup %2253  ;;  %v1560_v49 = vsel %vm1558_vm1, %v1559_v14, %v2976_v43  ;;  %vm368_vm6 = vcmp.gt.s32.totalorder %v367_v61, 0  ;;  %v33_v5 = vrot.slane %v27_v27, 5  ;;  %v41_v47 = vcombine.high %v2911_v31, %v2911_v31 }
  0xca   :  { %v2256_v3 = vpop.eup %2255  ;;  %v1185_v16 = vxor.u32 2147483648, %v2254_v1  ;;  %v1476_v11 = vor.u32 4788187, %v1475_v6  ;;  %v1479_v54 = vcvt.s32.f32 %v1472_v57  ;;  %v1561_v63 = vadd.s32 %v1560_v49, %v1556_v62 }
  0xcb   :  { %vm1180_vm7 = vcmp.lt.s32.totalorder %v2923_v7, 2  ;;  %v1182_v13 = vxor.u32 2147483648, %v2256_v3  ;;  %v364_v17 = vand.u32 8388607, %v357_v56  ;;  %v369_v18 = vsel %vm368_vm6, %v367_v61, 0 }
  0xcc   :  { %v1186_v23 = vsel %vm1184_vm13, %v1185_v16, %v2256_v3  ;;  %v1477_v26 = vand.u32 2147483647, %v1476_v11  ;;  %v3003_v33 = vand.u32 3, %v1490_v59  ;;  %v1562_v25 = vadd.s32 536870912, %v1561_v63 }
  0xcd   :  { %v1183_v32 = vsel %vm1181_vm10, %v2254_v1, %v1182_v13  ;;  %v3008_v30 = vadd.s32 %v2975_v24, %v2973_v20  ;;  %v371_v19 = vand.u32 31, %v369_v18  ;;  %v3010_v4 = vrot.slane %v41_v47, 2 }
  0xce   :  { %v1187_v36 = vsel %vm1180_vm7, %v1183_v32, %v1186_v23  ;;  %v1480_v60 = vmul.f32 %v1479_v54, %v1477_v26  ;;  %v1563_v22 = vshrl.u32 %v1562_v25, 30  ;;  %v114_v28 = vsel %vm110_vm0, %v27_v27, %v33_v5 }
  0xcf   :  { %v1188_v52 = vsel %vm1177_vm3, nan, %v1187_v36  ;;  %vm1503_vm8 = vcmp.lt.s32.totalorder %v2840_v29, 0  ;;  %v365_v0 = vor.u32 8388608, %v364_v17  ;;  %v372_v38 = vsub.s32 32, %v371_v19 }
  0xd0   :  { %v374_v7 = vshll.u32 %v2297_v42, %v371_v19  ;;  %1880 = vxpose.xlu1.b32.cont [3/4] (short) %v1188_v52, 128  ;;  %v1481_v20 = vxor.u32 2147483648, %v1480_v60  ;;  %v1564_v39 = vshll.u32 %v1563_v22, 30  ;;  %v377_v24 = vshll.u32 %v2298_v44, %v371_v19 }
  0xd1   :  { %v380_v43 = vshll.u32 %v2299_v46, %v371_v19  ;;  %v375_v15 = vshrl.u32 %v2298_v44, %v372_v38  ;;  %v378_v45 = vshrl.u32 %v2299_v46, %v372_v38  ;;  %v381_v8 = vshrl.u32 %v2300_v48, %v372_v38 }
  0xd2   :  { %vm3773_vm9 = vcmask 1045504   ;;  %v1482_v12 = vsel %vm1399_vm11, %v1481_v20, %v1480_v60  ;;  %v3028_v41 = vsub.s32 %v1561_v63, %v1564_v39  ;;  %v1587_v21 = vsub.s32 4, %v1563_v22 }
  0xd3   :  { %v3024_v37 = vsel %vm3773_vm9, %v114_v28, %v3010_v4  ;;  %v370_v27 = vshrl.u32 %v369_v18, 5  ;;  %v1485_v53 = vsel %vm2980_vm4, %v2761_v40, %v1482_v12  ;;  %v373_v9 = vshrl.u32 %v2297_v42, %v372_v38 }
  0xd4   :  { %v376_v62 = vor.u32 %v375_v15, %v374_v7  ;;  %v383_v14 = vshll.u32 %v2300_v48, %v371_v19  ;;  %2257 = vcosq.f32 %v1485_v53  ;;  %vm3037_vm2 = vcmp.le.f32.partialorder %v1501_v10, 0.7853982 }
  0xd5   :  { %v1567_v57 = vsub.s32 0, %v3028_v41  ;;  %v379_v6 = vor.u32 %v378_v45, %v377_v24  ;;  %v382_v59 = vor.u32 %v381_v8, %v380_v43  ;;  %2259 = vsinq.f32 %v1485_v53 }
  0xd6   :  { %v384_v51 = vshrl.u32 %v2301_v50, %v372_v38  ;;  %v386_v1 = vshll.u32 %v2301_v50, %v371_v19  ;;  %v387_v49 = vshrl.u32 %v2302_v58, %v372_v38  ;;  %vm389_vm11 = vcmp.lt.s32.totalorder %v370_v27, 1 }
  0xd7   :  { %v2149_v5 = vmin.u32 %v1567_v57, %v3028_v41  ;;  %v405_v47 = vshll.u32 %v365_v0, 8  ;;  %v464_v10 = vand.u32 2139095040, %v3024_v37  ;;  %vm391_vm5 = vcmp.lt.s32.totalorder %v370_v27, 3 }
  0xd8   :  { %v385_v3 = vor.u32 %v384_v51, %v383_v14  ;;  %v388_v16 = vor.u32 %v387_v49, %v386_v1  ;;  %vm392_vm4 = vcmp.lt.s32.totalorder %v370_v27, 4  ;;  %v1588_v54 = vsel %vm1503_vm8, %v1587_v21, %v1563_v22 }
  0xd9   :  { %v1569_v11 = vclz %v2149_v5  ;;  %vm390_vm3 = vcmp.lt.s32.totalorder %v370_v27, 2  ;;  %v393_v63 = vsel %vm389_vm11, %v373_v9, %v376_v62  ;;  %v394_v13 = vsel %vm392_vm4, %v382_v59, 2102212464 }
  0xda   :  { %v397_v17 = vsel %vm389_vm11, %v376_v62, %v379_v6  ;;  %v398_v18 = vsel %vm392_vm4, %v385_v3, 920167782  ;;  %v401_v23 = vsel %vm389_vm11, %v379_v6, %v382_v59  ;;  %v395_v25 = vsel %vm391_vm5, %v379_v6, %v394_v13 }
  0xdb   :  { %v2150_v26 = vadd.s32 4294967294, %v1569_v11  ;;  %v399_v32 = vsel %vm391_vm5, %v382_v59, %v398_v18  ;;  %v402_v19 = vsel %vm392_vm4, %v388_v16, 1326507024  ;;  %v396_v36 = vsel %vm390_vm3, %v393_v63, %v395_v25 }
  0xdc   :  { %v400_v60 = vsel %vm390_vm3, %v397_v17, %v399_v32  ;;  %v403_v28 = vsel %vm391_vm5, %v385_v3, %v402_v19  ;;  %v465_v52 = vshrl.u32 %v464_v10, 23  ;;  %v1590_v20 = vsel %vm3037_vm2, 0, %v1588_v54 }
  0xdd   :  { %vm2151_vm1 = vcmp.lt.s32.totalorder %v2150_v26, 0  ;;  %v404_v0 = vsel %vm390_vm3, %v401_v23, %v403_v28  ;;  %v3052_v22 = vmul.u32.u64.low %v405_v47, %v400_v60  ;;  %v3053_v38 = vmul.u32.u64.high %v405_v47, %v400_v60, %v3052_v22 }
  0xde   :  { %v1572_v7 = vsel %vm2151_vm1, 0, %v2150_v26  ;;  %v3057_v39 = vmul.u32.u64.low %v405_v47, %v404_v0  ;;  %v3058_v24 = vmul.u32.u64.high %v405_v47, %v404_v0, %v3057_v39  ;;  %v2108_v8 = vadd.s32 4294967169, %v465_v52 }
  0xdf   :  { %v1573_v43 = vsub.s32 32, %v1572_v7  ;;  %v1574_v15 = vshll.u32 %v3028_v41, %v1572_v7  ;;  %v1577_v45 = vsub.s32 4294967266, %v1572_v7  ;;  %vm1489_vm10 = vweird.f32 %v2761_v40 }
  0xe0   :  { %vm1493_vm13 = vcmp.eq.s32.totalorder %v3003_v33, 0  ;;  %vm1496_vm6 = vcmp.eq.s32.totalorder %v3003_v33, 2  ;;  %v412_v12 = vmul.u32 %v405_v47, %v396_v36  ;;  %v415_v53 = vadd.s32 1, %v3053_v38 }
  0xe1   :  { %v1575_v21 = vshrl.u32 %v3008_v30, %v1573_v43  ;;  %v1578_v27 = vadd.s32 127, %v1577_v45  ;;  %v471_v9 = vadd.s32 1, %v2108_v8  ;;  %v2258_v62 = vpop.eup %2257  ;;  %v1594_v14 = vadd.s32 3, %v1590_v20 }
  0xe2   :  { %vm414_vm7 = vc.u32 %v3058_v24, %v3052_v22  ;;  %v461_v41 = vand.u32 2147483647, %v3024_v37  ;;  %v3069_v57 = vmul.f32 2.0, %v2893_v55  ;;  %v2260_v6 = vpop.eup %2259  ;;  %v1497_v59 = vxor.u32 2147483648, %v2258_v62 }
  0xe3   :  { %v1576_v51 = vor.u32 %v1575_v21, %v1574_v15  ;;  %v1579_v1 = vshll.u32 %v1578_v27, 23  ;;  %v416_v49 = vsel %vm414_vm7, %v415_v53, %v3053_v38  ;;  %vm1492_vm9 = vcmp.lt.s32.totalorder %v3003_v33, 2 }
  0xe4   :  { %v1494_v30 = vxor.u32 2147483648, %v2260_v6  ;;  %v417_v5 = vadd.s32 %v416_v49, %v412_v12  ;;  %vm472_vm11 = vcmp.gt.s32.totalorder %v471_v9, 0  ;;  %v1498_v47 = vsel %vm1496_vm6, %v1497_v59, %v2260_v6 }
  0xe5   :  { %v1580_v10 = vor.u32 4788187, %v1579_v1  ;;  %v1583_v3 = vcvt.s32.f32 %v1576_v51  ;;  %v473_v16 = vsel %vm472_vm11, %v471_v9, 0  ;;  %v3077_v54 = vand.u32 3, %v1594_v14 }
  0xe6   :  { %v1495_v11 = vsel %vm1493_vm13, %v2258_v62, %v1494_v30  ;;  %v418_v63 = vadd.s32 536870912, %v417_v5  ;;  %v475_v13 = vand.u32 31, %v473_v16  ;;  %v468_v23 = vand.u32 8388607, %v461_v41 }
  0xe7   :  { %v1499_v17 = vsel %vm1492_vm9, %v1495_v11, %v1498_v47  ;;  %v1581_v18 = vand.u32 2147483647, %v1580_v10  ;;  %v3082_v26 = vadd.f32 1.5707964, %v3069_v57  ;;  %v3089_v33 = vmul.f32 4.0, %v2893_v55 }
  0xe8   :  { %v1500_v25 = vsel %vm1489_vm10, nan, %v1499_v17  ;;  %v3086_v32 = vshrl.u32 %v418_v63, 30  ;;  %v476_v19 = vsub.s32 32, %v475_v13  ;;  %v474_v60 = vshrl.u32 %v473_v16, 5 }
  0xe9   :  { %1849 = vxpose.xlu0.b32.end [4/4] (short) %v1500_v25, 128  ;;  %v1584_v36 = vmul.f32 %v1583_v3, %v1581_v18  ;;  %v478_v28 = vshll.u32 %v2297_v42, %v475_v13  ;;  %v481_v52 = vshll.u32 %v2298_v44, %v475_v13  ;;  %v484_v40 = vshll.u32 %v2299_v46, %v475_v13 }
  0xea   :  { %v420_v0 = vshll.u32 %v3086_v32, 30  ;;  %v479_v38 = vshrl.u32 %v2298_v44, %v476_v19  ;;  %v487_v7 = vshll.u32 %v2300_v48, %v475_v13  ;;  %v482_v39 = vshrl.u32 %v2299_v46, %v476_v19 }
  0xeb   :  { %v1585_v20 = vxor.u32 2147483648, %v1584_v36  ;;  %v485_v43 = vshrl.u32 %v2300_v48, %v476_v19  ;;  %v488_v15 = vshrl.u32 %v2301_v50, %v476_v19  ;;  %v413_v45 = vadd.s32 %v3052_v22, %v3058_v24 }
  0xec   :  { %v3101_v8 = vsub.s32 %v417_v5, %v420_v0  ;;  %v469_v12 = vor.u32 8388608, %v468_v23  ;;  %v56_v21 = vrot.slane %v3069_v57, 7  ;;  %v477_v53 = vshrl.u32 %v2297_v42, %v476_v19 }
  0xed   :  { %v1586_v27 = vsel %vm1503_vm8, %v1585_v20, %v1584_v36  ;;  %v480_v9 = vor.u32 %v479_v38, %v478_v28  ;;  %v490_v62 = vshll.u32 %v2301_v50, %v475_v13  ;;  %v483_v22 = vor.u32 %v482_v39, %v481_v52 }
  0xee   :  { %v1589_v14 = vsel %vm3037_vm2, %v2840_v29, %v1586_v27  ;;  %v423_v6 = vsub.s32 0, %v3101_v8  ;;  %v486_v24 = vor.u32 %v485_v43, %v484_v40  ;;  %v489_v59 = vor.u32 %v488_v15, %v487_v7 }
  0xef   :  { %2261 = vcosq.f32 %v1589_v14  ;;  %v491_v51 = vshrl.u32 %v2302_v58, %v476_v19  ;;  %vm493_vm5 = vcmp.lt.s32.totalorder %v474_v60, 1  ;;  %vm359_vm8 = vcmp.lt.s32.totalorder %v2964_v35, 0 }
  0xf0   :  { %2263 = vsinq.f32 %v1589_v14  ;;  %v2105_v1 = vmin.u32 %v423_v6, %v3101_v8  ;;  %v509_v49 = vshll.u32 %v469_v12, 8  ;;  %v65_v30 = vcombine.low %v3082_v26, %v3082_v26 }
  0xf1   :  { %v492_v61 = vor.u32 %v491_v51, %v490_v62  ;;  %vm495_vm2 = vcmp.lt.s32.totalorder %v474_v60, 3  ;;  %vm496_vm4 = vcmp.lt.s32.totalorder %v474_v60, 4  ;;  %v74_v5 = vrot.slane %v3089_v33, 1 }
  0xf2   :  { %v425_v47 = vclz %v2105_v1  ;;  %vm494_vm3 = vcmp.lt.s32.totalorder %v474_v60, 2  ;;  %v497_v10 = vsel %vm493_vm5, %v477_v53, %v480_v9  ;;  %v501_v3 = vsel %vm493_vm5, %v480_v9, %v483_v22 }
  0xf3   :  { %v498_v16 = vsel %vm496_vm4, %v486_v24, 2102212464  ;;  %v502_v11 = vsel %vm496_vm4, %v489_v59, 920167782  ;;  %v505_v63 = vsel %vm493_vm5, %v483_v22, %v486_v24  ;;  %v506_v13 = vsel %vm496_vm4, %v492_v61, 1326507024 }
  0xf4   :  { %v2106_v17 = vadd.s32 4294967294, %v425_v47  ;;  %v499_v18 = vsel %vm495_vm2, %v483_v22, %v498_v16  ;;  %v503_v23 = vsel %vm495_vm2, %v486_v24, %v502_v11  ;;  %v507_v25 = vsel %vm495_vm2, %v489_v59, %v506_v13 }
  0xf5   :  { %v443_v19 = vsub.s32 4, %v3086_v32  ;;  %v504_v36 = vsel %vm494_vm3, %v501_v3, %v503_v23  ;;  %v508_v28 = vsel %vm494_vm3, %v505_v63, %v507_v25  ;;  %vm3776_vm1 = vcmask 1040384  }
  0xf6   :  { %v123_v52 = vsel %vm3776_vm1, %v44_v34, %v56_v21  ;;  %vm2107_vm10 = vcmp.lt.s32.totalorder %v2106_v17, 0  ;;  %v500_v0 = vsel %vm494_vm3, %v497_v10, %v499_v18  ;;  %vm3777_vm13 = vcmask 1043456  }
  0xf7   :  { %v3128_v38 = vmul.u32.u64.low %v509_v49, %v508_v28  ;;  %v3129_v40 = vmul.u32.u64.high %v509_v49, %v508_v28, %v3128_v38  ;;  %v428_v7 = vsel %vm2107_vm10, 0, %v2106_v17  ;;  %v128_v43 = vsel %vm3777_vm13, %v123_v52, %v65_v30 }
  0xf8   :  { %v3131_v20 = vmul.u32.u64.low %v509_v49, %v504_v36  ;;  %v3132_v39 = vmul.u32.u64.high %v509_v49, %v504_v36, %v3131_v20  ;;  %v429_v15 = vsub.s32 32, %v428_v7  ;;  %v430_v12 = vshll.u32 %v3101_v8, %v428_v7 }
  0xf9   :  { %v433_v27 = vsub.s32 4294967266, %v428_v7  ;;  %vm3778_vm6 = vcmask 1046528   ;;  %vm3143_vm7 = vcmp.le.f32.partialorder %v357_v56, 0.7853982  ;;  %v444_v60 = vsel %vm359_vm8, %v443_v19, %v3086_v32 }
  0xfa   :  { %v3139_v31 = vsel %vm3778_vm6, %v128_v43, %v74_v5  ;;  %v431_v53 = vshrl.u32 %v413_v45, %v429_v15  ;;  %v516_v62 = vmul.u32 %v509_v49, %v500_v0  ;;  %vm518_vm9 = vc.u32 %v3129_v40, %v3131_v20 }
  0xfb   :  { %v773_v21 = vand.u32 2147483647, %v3139_v31  ;;  %v776_v8 = vand.u32 2139095040, %v3139_v31  ;;  %v434_v9 = vadd.s32 127, %v433_v27  ;;  %vm1596_vm11 = vcmp.lt.s32.totalorder %v3077_v54, 2 }
  0xfc   :  { %vm1597_vm5 = vcmp.eq.s32.totalorder %v3077_v54, 0  ;;  %v519_v56 = vadd.s32 1, %v3132_v39  ;;  %v2262_v6 = vpop.eup %2261  ;;  %vm1600_vm2 = vcmp.eq.s32.totalorder %v3077_v54, 2  ;;  %v432_v32 = vor.u32 %v431_v53, %v430_v12 }
  0xfd   :  { %v777_v14 = vshrl.u32 %v776_v8, 23  ;;  %v435_v22 = vshll.u32 %v434_v9, 23  ;;  %v446_v24 = vsel %vm3143_vm7, 0, %v444_v60  ;;  %v2264_v45 = vpop.eup %2263  ;;  %v1601_v59 = vxor.u32 2147483648, %v2262_v6 }
  0xfe   :  { %v520_v51 = vsel %vm518_vm9, %v519_v56, %v3132_v39  ;;  %v780_v49 = vand.u32 8388607, %v773_v21  ;;  %v1598_v30 = vxor.u32 2147483648, %v2264_v45  ;;  %v439_v47 = vcvt.s32.f32 %v432_v32 }
  0xff   :  { %v2120_v1 = vadd.s32 4294967169, %v777_v14  ;;  %v436_v61 = vor.u32 4788187, %v435_v22  ;;  %v521_v10 = vadd.s32 %v520_v51, %v516_v62  ;;  %vm1593_vm4 = vweird.f32 %v2840_v29 }
 0x100   :  { %v1602_v3 = vsel %vm1600_vm2, %v1601_v59, %v2264_v45  ;;  %v450_v16 = vadd.s32 3, %v446_v24  ;;  %v1599_v63 = vsel %vm1597_vm5, %v2262_v6, %v1598_v30  ;;  %v53_v18 = vcombine.high %v3069_v57, %v3069_v57 }
 0x101   :  { %v783_v11 = vadd.s32 1, %v2120_v1  ;;  %v437_v13 = vand.u32 2147483647, %v436_v61  ;;  %v522_v17 = vadd.s32 536870912, %v521_v10  ;;  %v1603_v23 = vsel %vm1596_vm11, %v1599_v63, %v1602_v3 }
 0x102   :  { %v781_v25 = vor.u32 8388608, %v780_v49  ;;  %v71_v19 = vcombine.high %v3089_v33, %v3089_v33  ;;  %v1604_v29 = vsel %vm1593_vm4, nan, %v1603_v23  ;;  %v3173_v0 = vand.u32 3, %v450_v16 }
 0x103   :  { %vm784_vm3 = vcmp.gt.s32.totalorder %v783_v11, 0  ;;  %v440_v36 = vmul.f32 %v439_v47, %v437_v13  ;;  %v3171_v28 = vshrl.u32 %v522_v17, 30  ;;  %1881 = vxpose.xlu1.b32.end [4/4] (short) %v1604_v29, 128  ;;  %v3176_v57 = vadd.s32 %v3131_v20, %v3129_v40 }
 0x104   :  { %v785_v52 = vsel %vm784_vm3, %v783_v11, 0  ;;  %v57_v39 = vrot.slane %v53_v18, 7  ;;  %v3179_v12 = vshll.u32 %v781_v25, 8  ;;  %v3181_v27 = vrot.slane %v71_v19, 1 }
 0x105   :  { %v787_v38 = vand.u32 31, %v785_v52  ;;  %v441_v7 = vxor.u32 2147483648, %v440_v36  ;;  %v524_v54 = vshll.u32 %v3171_v28, 30  ;;  %v786_v43 = vshrl.u32 %v785_v52, 5 }
 0x106   :  { %vm463_vm1 = vcmp.lt.s32.totalorder %v3024_v37, 0  ;;  %vm3208_vm13 = vcmp.le.f32.partialorder %v461_v41, 0.7853982  ;;  %vm3784_vm6 = vcmask 1043456   ;;  %v3216_v16 = vadd.f32 1.5707964, %v3089_v33 }
 0x107   :  { %v788_v15 = vsub.s32 32, %v787_v38  ;;  %v442_v60 = vsel %vm359_vm8, %v441_v7, %v440_v36  ;;  %v3185_v8 = vsub.s32 %v521_v10, %v524_v54  ;;  %v790_v53 = vshll.u32 %v2297_v42, %v787_v38 }
 0x108   :  { %v793_v9 = vshll.u32 %v2298_v44, %v787_v38  ;;  %v445_v40 = vsel %vm3143_vm7, %v2964_v35, %v442_v60  ;;  %v796_v62 = vshll.u32 %v2299_v46, %v787_v38  ;;  %v799_v56 = vshll.u32 %v2300_v48, %v787_v38 }
 0x109   :  { %v791_v20 = vshrl.u32 %v2298_v44, %v788_v15  ;;  %2265 = vcosq.f32 %v445_v40  ;;  %v527_v14 = vsub.s32 0, %v3185_v8  ;;  %v794_v6 = vshrl.u32 %v2299_v46, %v788_v15 }
 0x10a   :  { %vm3781_vm8 = vcmask 1040384   ;;  %2267 = vsinq.f32 %v445_v40  ;;  %v789_v34 = vshrl.u32 %v2297_v42, %v788_v15  ;;  %v797_v22 = vshrl.u32 %v2300_v48, %v788_v15 }
 0x10b   :  { %v124_v32 = vsel %vm3781_vm8, %v3010_v4, %v57_v39  ;;  %v800_v24 = vshrl.u32 %v2301_v50, %v788_v15  ;;  %v2109_v45 = vmin.u32 %v527_v14, %v3185_v8  ;;  %v792_v59 = vor.u32 %v791_v20, %v790_v53 }
 0x10c   :  { %v795_v51 = vor.u32 %v794_v6, %v793_v9  ;;  %v802_v1 = vshll.u32 %v2301_v50, %v787_v38  ;;  %v798_v49 = vor.u32 %v797_v22, %v796_v62  ;;  %v803_v61 = vshrl.u32 %v2302_v58, %v788_v15 }
 0x10d   :  { %v801_v30 = vor.u32 %v800_v24, %v799_v56  ;;  %vm805_vm10 = vcmp.lt.s32.totalorder %v786_v43, 1  ;;  %v529_v47 = vclz %v2109_v45  ;;  %v547_v10 = vsub.s32 4, %v3171_v28 }
 0x10e   :  { %v129_v3 = vsel %vm3784_vm6, %v124_v32, %v3082_v26  ;;  %v804_v11 = vor.u32 %v803_v61, %v802_v1  ;;  %vm806_vm7 = vcmp.lt.s32.totalorder %v786_v43, 2  ;;  %vm807_vm9 = vcmp.lt.s32.totalorder %v786_v43, 3 }
 0x10f   :  { %vm808_vm11 = vcmp.lt.s32.totalorder %v786_v43, 4  ;;  %vm453_vm5 = vcmp.eq.s32.totalorder %v3173_v0, 0  ;;  %v2110_v63 = vadd.s32 4294967294, %v529_v47  ;;  %v809_v41 = vsel %vm805_vm10, %v789_v34, %v792_v59 }
 0x110   :  { %v810_v13 = vsel %vm808_vm11, %v798_v49, 2102212464  ;;  %v813_v17 = vsel %vm805_vm10, %v792_v59, %v795_v51  ;;  %vm452_vm2 = vcmp.lt.s32.totalorder %v3173_v0, 2  ;;  %v814_v23 = vsel %vm808_vm11, %v801_v30, 920167782 }
 0x111   :  { %v811_v18 = vsel %vm807_vm9, %v795_v51, %v810_v13  ;;  %v817_v26 = vsel %vm805_vm10, %v795_v51, %v798_v49  ;;  %v818_v25 = vsel %vm808_vm11, %v804_v11, 1326507024  ;;  %vm449_vm4 = vweird.f32 %v2964_v35 }
 0x112   :  { %vm2111_vm3 = vcmp.lt.s32.totalorder %v2110_v63, 0  ;;  %v815_v19 = vsel %vm807_vm9, %v798_v49, %v814_v23  ;;  %v819_v29 = vsel %vm807_vm9, %v801_v30, %v818_v25  ;;  %vm3785_vm8 = vcmask 1046528  }
 0x113   :  { %v3226_v36 = vsel %vm3785_vm8, %v129_v3, %v3181_v27  ;;  %v532_v52 = vsel %vm2111_vm3, 0, %v2110_v63  ;;  %v548_v38 = vsel %vm463_vm1, %v547_v10, %v3171_v28  ;;  %v816_v7 = vsel %vm806_vm7, %v813_v17, %v815_v19 }
 0x114   :  { %v820_v54 = vsel %vm806_vm7, %v817_v26, %v819_v29  ;;  %v533_v39 = vsub.s32 32, %v532_v52  ;;  %v534_v15 = vshll.u32 %v3185_v8, %v532_v52  ;;  %v537_v60 = vsub.s32 4294967266, %v532_v52 }
 0x115   :  { %v812_v53 = vsel %vm806_vm7, %v809_v41, %v811_v18  ;;  %v3236_v9 = vmul.u32.u64.low %v3179_v12, %v820_v54  ;;  %v3237_v40 = vmul.u32.u64.high %v3179_v12, %v820_v54, %v3236_v9  ;;  %vm456_vm10 = vcmp.eq.s32.totalorder %v3173_v0, 2 }
 0x116   :  { %v3240_v20 = vmul.u32.u64.low %v3179_v12, %v816_v7  ;;  %v3241_v62 = vmul.u32.u64.high %v3179_v12, %v816_v7, %v3240_v20  ;;  %v535_v28 = vshrl.u32 %v3176_v57, %v533_v39  ;;  %v538_v56 = vadd.s32 127, %v537_v60  ;;  %v2266_v8 = vpop.eup %2265 }
 0x117   :  { %v3246_v14 = vmul.f32 8.0, %v2893_v55  ;;  %v550_v43 = vsel %vm3208_vm13, 0, %v548_v38  ;;  %v877_v6 = vand.u32 2147483647, %v3226_v36  ;;  %v880_v32 = vand.u32 2139095040, %v3226_v36  ;;  %v2268_v22 = vpop.eup %2267 }
 0x118   :  { %v86_v34 = vrot.slane %v3216_v16, 6  ;;  %v457_v24 = vxor.u32 2147483648, %v2266_v8  ;;  %v536_v45 = vor.u32 %v535_v28, %v534_v15  ;;  %v539_v59 = vshll.u32 %v538_v56, 23 }
 0x119   :  { %v828_v57 = vmul.u32 %v3179_v12, %v812_v53  ;;  %v454_v51 = vxor.u32 2147483648, %v2268_v22  ;;  %vm830_vm6 = vc.u32 %v3237_v40, %v3240_v20  ;;  %v831_v55 = vadd.s32 1, %v3241_v62 }
 0x11a   :  { %v98_v1 = vrot.slane %v3246_v14, 3  ;;  %v458_v49 = vsel %vm456_vm10, %v457_v24, %v2268_v22  ;;  %v540_v30 = vor.u32 4788187, %v539_v59  ;;  %v543_v61 = vcvt.s32.f32 %v536_v45 }
 0x11b   :  { %v881_v47 = vshrl.u32 %v880_v32, 23  ;;  %v455_v10 = vsel %vm453_vm5, %v2266_v8, %v454_v51  ;;  %v832_v3 = vsel %vm830_vm6, %v831_v55, %v3241_v62  ;;  %v884_v12 = vand.u32 8388607, %v877_v6 }
 0x11c   :  { %v138_v11 = vsel %vm135_vm12, %v74_v5, %v86_v34  ;;  %v459_v63 = vsel %vm452_vm2, %v455_v10, %v458_v49  ;;  %v541_v41 = vand.u32 2147483647, %v540_v30  ;;  %v833_v13 = vadd.s32 %v832_v3, %v828_v57 }
 0x11d   :  { %v2124_v17 = vadd.s32 4294967169, %v881_v47  ;;  %v460_v18 = vsel %vm449_vm4, nan, %v459_v63  ;;  %v554_v23 = vadd.s32 3, %v550_v43  ;;  %v3272_v26 = vsel %vm140_vm15, %v138_v11, %v98_v1 }
 0x11e   :  { %v1832_v25 = vsel %vm1818_vm14, %v2964_v35, %v460_v18  ;;  %v544_v33 = vmul.f32 %v543_v61, %v541_v41  ;;  %v834_v19 = vadd.s32 536870912, %v833_v13  ;;  %v885_v0 = vor.u32 8388608, %v884_v12 }
 0x11f   :  { %v887_v5 = vadd.s32 1, %v2124_v17  ;;  %1910 = vxpose.xlu0.b32.start [1/4] (short) %v1832_v25, 128  ;;  %vm775_vm9 = vcmp.lt.s32.totalorder %v3139_v31, 0  ;;  %v1192_v7 = vand.u32 2139095040, %v3272_v26  ;;  %v3281_v39 = vand.u32 3, %v554_v23 }
 0x120   :  { %v545_v29 = vxor.u32 2147483648, %v544_v33  ;;  %v835_v52 = vshrl.u32 %v834_v19, 30  ;;  %v3284_v35 = vadd.s32 %v3240_v20, %v3237_v40  ;;  %v3291_v62 = vshll.u32 %v885_v0, 8 }
 0x121   :  { %vm888_vm7 = vcmp.gt.s32.totalorder %v887_v5, 0  ;;  %v1189_v56 = vand.u32 2147483647, %v3272_v26  ;;  %v83_v8 = vcombine.high %v3216_v16, %v3216_v16  ;;  %v1193_v43 = vshrl.u32 %v1192_v7, 23 }
 0x122   :  { %v889_v38 = vsel %vm888_vm7, %v887_v5, 0  ;;  %v546_v54 = vsel %vm463_vm1, %v545_v29, %v544_v33  ;;  %v836_v15 = vshll.u32 %v835_v52, 30  ;;  %vm3301_vm1 = vcmp.le.f32.partialorder %v773_v21, 0.7853982 }
 0x123   :  { %v549_v60 = vsel %vm3208_vm13, %v3024_v37, %v546_v54  ;;  %v3289_v53 = vshrl.u32 %v889_v38, 5  ;;  %v891_v9 = vand.u32 31, %v889_v38  ;;  %v859_v34 = vsub.s32 4, %v835_v52 }
 0x124   :  { %2269 = vcosq.f32 %v549_v60  ;;  %v3293_v28 = vsub.s32 %v833_v13, %v836_v15  ;;  %vm560_vm11 = vcmp.eq.s32.totalorder %v3281_v39, 2  ;;  %vm557_vm5 = vcmp.eq.s32.totalorder %v3281_v39, 0 }
 0x125   :  { %2271 = vsinq.f32 %v549_v60  ;;  %v892_v40 = vsub.s32 32, %v891_v9  ;;  %v894_v20 = vshll.u32 %v2297_v42, %v891_v9  ;;  %v897_v22 = vshll.u32 %v2298_v44, %v891_v9 }
 0x126   :  { %v839_v32 = vsub.s32 0, %v3293_v28  ;;  %v900_v24 = vshll.u32 %v2299_v46, %v891_v9  ;;  %vm909_vm13 = vcmp.lt.s32.totalorder %v3289_v53, 1  ;;  %v903_v55 = vshll.u32 %v2300_v48, %v891_v9 }
 0x127   :  { %v895_v45 = vshrl.u32 %v2298_v44, %v892_v40  ;;  %v898_v59 = vshrl.u32 %v2299_v46, %v892_v40  ;;  %v901_v57 = vshrl.u32 %v2300_v48, %v892_v40  ;;  %v893_v51 = vshrl.u32 %v2297_v42, %v892_v40 }
 0x128   :  { %v2121_v21 = vmin.u32 %v839_v32, %v3293_v28  ;;  %v904_v1 = vshrl.u32 %v2301_v50, %v892_v40  ;;  %v906_v47 = vshll.u32 %v2301_v50, %v891_v9  ;;  %v860_v3 = vsel %vm775_vm9, %v859_v34, %v835_v52 }
 0x129   :  { %v896_v49 = vor.u32 %v895_v45, %v894_v20  ;;  %v899_v30 = vor.u32 %v898_v59, %v897_v22  ;;  %v902_v61 = vor.u32 %v901_v57, %v900_v24  ;;  %v2136_v12 = vadd.s32 4294967169, %v1193_v43 }
 0x12a   :  { %v841_v10 = vclz %v2121_v21  ;;  %v3323_v11 = vand.u32 8388607, %v1189_v56  ;;  %vm556_vm2 = vcmp.lt.s32.totalorder %v3281_v39, 2  ;;  %v905_v63 = vor.u32 %v904_v1, %v903_v55 }
 0x12b   :  { %v907_v41 = vshrl.u32 %v2302_v58, %v892_v40  ;;  %vm910_vm4 = vcmp.lt.s32.totalorder %v3289_v53, 2  ;;  %vm911_vm3 = vcmp.lt.s32.totalorder %v3289_v53, 3  ;;  %vm553_vm8 = vweird.f32 %v3024_v37 }
 0x12c   :  { %v2122_v13 = vadd.s32 4294967294, %v841_v10  ;;  %vm912_vm10 = vcmp.lt.s32.totalorder %v3289_v53, 4  ;;  %v913_v17 = vsel %vm909_vm13, %v893_v51, %v896_v49  ;;  %v917_v18 = vsel %vm909_vm13, %v896_v49, %v899_v30 }
 0x12d   :  { %v908_v23 = vor.u32 %v907_v41, %v906_v47  ;;  %v914_v25 = vsel %vm912_vm10, %v902_v61, 2102212464  ;;  %v918_v33 = vsel %vm912_vm10, %v905_v63, 920167782  ;;  %v921_v19 = vsel %vm909_vm13, %v899_v30, %v902_v61 }
 0x12e   :  { %vm2123_vm6 = vcmp.lt.s32.totalorder %v2122_v13, 0  ;;  %v915_v5 = vsel %vm911_vm3, %v899_v30, %v914_v25  ;;  %v919_v0 = vsel %vm911_vm3, %v902_v61, %v918_v33  ;;  %v1199_v29 = vadd.s32 1, %v2136_v12 }
 0x12f   :  { %v844_v52 = vsel %vm2123_vm6, 0, %v2122_v13  ;;  %v862_v38 = vsel %vm3301_vm1, 0, %v860_v3  ;;  %v920_v7 = vsel %vm910_vm4, %v917_v18, %v919_v0  ;;  %v922_v54 = vsel %vm912_vm10, %v908_v23, 1326507024 }
 0x130   :  { %v845_v15 = vsub.s32 32, %v844_v52  ;;  %v846_v60 = vshll.u32 %v3293_v28, %v844_v52  ;;  %v849_v9 = vsub.s32 4294967266, %v844_v52  ;;  %v923_v40 = vsel %vm911_vm3, %v905_v63, %v922_v54 }
 0x131   :  { %v2270_v20 = vpop.eup %2269  ;;  %v916_v43 = vsel %vm910_vm4, %v913_v17, %v915_v5  ;;  %v924_v32 = vsel %vm910_vm4, %v921_v19, %v923_v40  ;;  %v3353_v34 = vmul.u32.u64.low %v3291_v62, %v920_v7  ;;  %v3354_v22 = vmul.u32.u64.high %v3291_v62, %v920_v7, %v3353_v34 }
 0x132   :  { %v2272_v24 = vpop.eup %2271  ;;  %v561_v45 = vxor.u32 2147483648, %v2270_v20  ;;  %v847_v28 = vshrl.u32 %v3284_v35, %v845_v15  ;;  %v850_v59 = vadd.s32 127, %v849_v9  ;;  %vm1200_vm7 = vcmp.gt.s32.totalorder %v1199_v29, 0 }
 0x133   :  { %v558_v57 = vxor.u32 2147483648, %v2272_v24  ;;  %v3359_v21 = vmul.u32.u64.low %v3291_v62, %v924_v32  ;;  %v3360_v51 = vmul.u32.u64.high %v3291_v62, %v924_v32, %v3359_v21  ;;  %v1201_v55 = vsel %vm1200_vm7, %v1199_v29, 0 }
 0x134   :  { %v562_v53 = vsel %vm560_vm11, %v561_v45, %v2272_v24  ;;  %v848_v1 = vor.u32 %v847_v28, %v846_v60  ;;  %v851_v49 = vshll.u32 %v850_v59, 23  ;;  %v1197_v30 = vor.u32 8388608, %v3323_v11 }
 0x135   :  { %v559_v61 = vsel %vm557_vm5, %v2270_v20, %v558_v57  ;;  %v932_v35 = vmul.u32 %v3291_v62, %v916_v43  ;;  %v935_v47 = vadd.s32 1, %v3354_v22  ;;  %v1203_v10 = vand.u32 31, %v1201_v55 }
 0x136   :  { %v563_v3 = vsel %vm556_vm2, %v559_v61, %v562_v53  ;;  %v852_v12 = vor.u32 4788187, %v851_v49  ;;  %v855_v63 = vcvt.s32.f32 %v848_v1  ;;  %v866_v41 = vadd.s32 3, %v862_v38 }
 0x137   :  { %v564_v13 = vsel %vm553_vm8, nan, %v563_v3  ;;  %vm934_vm13 = vc.u32 %v3360_v51, %v3353_v34  ;;  %v1202_v11 = vshrl.u32 %v1201_v55, 5  ;;  %v1204_v17 = vsub.s32 32, %v1203_v10 }
 0x138   :  { %v1833_v62 = vsel %vm1818_vm14, %v3024_v37, %v564_v13  ;;  %v853_v18 = vand.u32 2147483647, %v852_v12  ;;  %v936_v23 = vsel %vm934_vm13, %v935_v47, %v3354_v22  ;;  %v1206_v39 = vshll.u32 %v2297_v42, %v1203_v10 }
 0x139   :  { %1942 = vxpose.xlu1.b32.start [1/4] (short) %v1833_v62, 128  ;;  %v937_v25 = vadd.s32 %v936_v23, %v932_v35  ;;  %v1207_v33 = vshrl.u32 %v2298_v44, %v1204_v17  ;;  %v1209_v19 = vshll.u32 %v2298_v44, %v1203_v10  ;;  %v3382_v5 = vshll.u32 %v1197_v30, 8 }
 0x13a   :  { %v856_v0 = vmul.f32 %v855_v63, %v853_v18  ;;  %v1210_v29 = vshrl.u32 %v2299_v46, %v1204_v17  ;;  %v1212_v52 = vshll.u32 %v2299_v46, %v1203_v10  ;;  %v1213_v2 = vshrl.u32 %v2300_v48, %v1204_v17 }
 0x13b   :  { %v938_v37 = vadd.s32 536870912, %v937_v25  ;;  %v1215_v38 = vshll.u32 %v2300_v48, %v1203_v10  ;;  %v1216_v7 = vshrl.u32 %v2301_v50, %v1204_v17  ;;  %vm1221_vm14 = vcmp.lt.s32.totalorder %v1202_v11, 1 }
 0x13c   :  { %v857_v54 = vxor.u32 2147483648, %v856_v0  ;;  %v1208_v15 = vor.u32 %v1207_v33, %v1206_v39  ;;  %v1211_v60 = vor.u32 %v1210_v29, %v1209_v19  ;;  %v1218_v9 = vshll.u32 %v2301_v50, %v1203_v10 }
 0x13d   :  { %v939_v40 = vshrl.u32 %v938_v37, 30  ;;  %v1205_v20 = vshrl.u32 %v2297_v42, %v1204_v17  ;;  %v1217_v43 = vor.u32 %v1216_v7, %v1215_v38  ;;  %v1219_v32 = vshrl.u32 %v2302_v58, %v1204_v17 }
 0x13e   :  { %v858_v22 = vsel %vm775_vm9, %v857_v54, %v856_v0  ;;  %v1214_v24 = vor.u32 %v1213_v2, %v1212_v52  ;;  %vm1222_vm11 = vcmp.lt.s32.totalorder %v1202_v11, 2  ;;  %vm1224_vm5 = vcmp.lt.s32.totalorder %v1202_v11, 4 }
 0x13f   :  { %v861_v45 = vsel %vm3301_vm1, %v3139_v31, %v858_v22  ;;  %v940_v28 = vshll.u32 %v939_v40, 30  ;;  %v1220_v59 = vor.u32 %v1219_v32, %v1218_v9  ;;  %vm1223_vm2 = vcmp.lt.s32.totalorder %v1202_v11, 3 }
 0x140   :  { %2273 = vcosq.f32 %v861_v45  ;;  %v1226_v57 = vsel %vm1224_vm5, %v1214_v24, 2102212464  ;;  %v1229_v21 = vsel %vm1221_vm14, %v1208_v15, %v1211_v60  ;;  %v1230_v55 = vsel %vm1224_vm5, %v1217_v43, 920167782 }
 0x141   :  { %2275 = vsinq.f32 %v861_v45  ;;  %v3400_v53 = vsub.s32 %v937_v25, %v940_v28  ;;  %v87_v1 = vrot.slane %v83_v8, 6  ;;  %v1225_v4 = vsel %vm1221_vm14, %v1205_v20, %v1208_v15 }
 0x142   :  { %v1227_v49 = vsel %vm1223_vm2, %v1211_v60, %v1226_v57  ;;  %v1231_v30 = vsel %vm1223_vm2, %v1214_v24, %v1230_v55  ;;  %v1233_v61 = vsel %vm1221_vm14, %v1211_v60, %v1214_v24  ;;  %v867_v35 = vand.u32 3, %v866_v41 }
 0x143   :  { %v943_v47 = vsub.s32 0, %v3400_v53  ;;  %v1232_v10 = vsel %vm1222_vm11, %v1229_v21, %v1231_v30  ;;  %v1234_v3 = vsel %vm1224_vm5, %v1220_v59, 1326507024  ;;  %v963_v12 = vsub.s32 4, %v939_v40 }
 0x144   :  { %v1235_v63 = vsel %vm1223_vm2, %v1217_v43, %v1234_v3  ;;  %v3414_v16 = vmul.u32.u64.low %v3382_v5, %v1232_v10  ;;  %v3415_v8 = vmul.u32.u64.high %v3382_v5, %v1232_v10, %v3414_v16  ;;  %v1228_v17 = vsel %vm1222_vm11, %v1225_v4, %v1227_v49 }
 0x145   :  { %v2125_v13 = vmin.u32 %v943_v47, %v3400_v53  ;;  %v1236_v41 = vsel %vm1222_vm11, %v1233_v61, %v1235_v63  ;;  %v95_v62 = vcombine.high %v3246_v14, %v3246_v14  ;;  %vm879_vm9 = vcmp.lt.s32.totalorder %v3226_v36, 0 }
 0x146   :  { %v3424_v18 = vmul.u32.u64.low %v3382_v5, %v1236_v41  ;;  %v3425_v23 = vmul.u32.u64.high %v3382_v5, %v1236_v41, %v3424_v18  ;;  %v139_v25 = vsel %vm135_vm12, %v3181_v27, %v87_v1  ;;  %vm865_vm1 = vweird.f32 %v3139_v31 }
 0x147   :  { %v945_v39 = vclz %v2125_v13  ;;  %v1244_v33 = vmul.u32 %v3382_v5, %v1228_v17  ;;  %v1247_v11 = vadd.s32 1, %v3415_v8  ;;  %v99_v19 = vrot.slane %v95_v62, 3 }
 0x148   :  { %v3434_v0 = vadd.f32 1.5707964, %v3246_v14  ;;  %vm868_vm4 = vcmp.lt.s32.totalorder %v867_v35, 2  ;;  %vm3438_vm3 = vcmp.le.f32.partialorder %v877_v6, 0.7853982  ;;  %v964_v27 = vsel %vm879_vm9, %v963_v12, %v939_v40 }
 0x149   :  { %v2126_v52 = vadd.s32 4294967294, %v945_v39  ;;  %vm872_vm12 = vcmp.eq.s32.totalorder %v867_v35, 2  ;;  %vm1246_vm8 = vc.u32 %v3425_v23, %v3414_v16  ;;  %v3447_v5 = vsel %vm140_vm15, %v139_v25, %v99_v19 }
 0x14a   :  { %v3451_v14 = vsel %vm110_vm0, %v3434_v0, 0.0  ;;  %v933_v6 = vadd.s32 %v3353_v34, %v3360_v51  ;;  %v1248_v2 = vsel %vm1246_vm8, %v1247_v11, %v3415_v8  ;;  %v1293_v37 = vand.u32 2147483647, %v3447_v5 }
 0x14b   :  { %vm2127_vm10 = vcmp.lt.s32.totalorder %v2126_v52, 0  ;;  %v966_v7 = vsel %vm3438_vm3, 0, %v964_v27  ;;  %v1249_v54 = vadd.s32 %v1248_v2, %v1244_v33  ;;  %v1296_v15 = vand.u32 2139095040, %v3447_v5 }
 0x14c   :  { %v948_v38 = vsel %vm2127_vm10, 0, %v2126_v52  ;;  %v1608_v43 = vand.u32 2139095040, %v3451_v14  ;;  %vm869_vm15 = vcmp.eq.s32.totalorder %v867_v35, 0  ;;  %v1300_v59 = vand.u32 8388607, %v1293_v37 }
 0x14d   :  { %v2274_v60 = vpop.eup %2273  ;;  %v949_v9 = vsub.s32 32, %v948_v38  ;;  %v950_v40 = vshll.u32 %v3400_v53, %v948_v38  ;;  %v953_v20 = vsub.s32 4294967266, %v948_v38  ;;  %v1250_v32 = vadd.s32 536870912, %v1249_v54 }
 0x14e   :  { %v2276_v34 = vpop.eup %2275  ;;  %v873_v51 = vxor.u32 2147483648, %v2274_v60  ;;  %v1297_v22 = vshrl.u32 %v1296_v15, 23  ;;  %v970_v21 = vadd.s32 3, %v966_v7  ;;  %v1609_v30 = vshrl.u32 %v1608_v43, 23 }
 0x14f   :  { %v870_v24 = vxor.u32 2147483648, %v2276_v34  ;;  %v951_v45 = vshrl.u32 %v933_v6, %v949_v9  ;;  %v954_v28 = vadd.s32 127, %v953_v20  ;;  %v1251_v55 = vshrl.u32 %v1250_v32, 30 }
 0x150   :  { %v874_v57 = vsel %vm872_vm12, %v873_v51, %v2276_v34  ;;  %v2140_v1 = vadd.s32 4294967169, %v1297_v22  ;;  %v1301_v13 = vor.u32 8388608, %v1300_v59  ;;  %vm1191_vm6 = vcmp.lt.s32.totalorder %v3272_v26, 0 }
 0x151   :  { %v871_v53 = vsel %vm869_vm15, %v2274_v60, %v870_v24  ;;  %v952_v4 = vor.u32 %v951_v45, %v950_v40  ;;  %v955_v49 = vshll.u32 %v954_v28, 23  ;;  %v1252_v47 = vshll.u32 %v1251_v55, 30 }
 0x152   :  { %v875_v61 = vsel %vm868_vm4, %v871_v53, %v874_v57  ;;  %v1275_v10 = vsub.s32 4, %v1251_v55  ;;  %v1303_v3 = vadd.s32 1, %v2140_v1  ;;  %v1605_v41 = vand.u32 2147483647, %v3451_v14 }
 0x153   :  { %v876_v12 = vsel %vm865_vm1, nan, %v875_v61  ;;  %v956_v63 = vor.u32 4788187, %v955_v49  ;;  %v959_v8 = vcvt.s32.f32 %v952_v4  ;;  %v3469_v17 = vsub.s32 %v1249_v54, %v1252_v47 }
 0x154   :  { %1911 = vxpose.xlu0.b32.cont [2/4] (short) %v876_v12, 128  ;;  %vm1304_vm7 = vcmp.gt.s32.totalorder %v1303_v3, 0  ;;  %vm3474_vm13 = vcmp.le.f32.partialorder %v1189_v56, 0.7853982  ;;  %v3480_v31 = vsel %vm1191_vm6, %v1275_v10, %v1251_v55  ;;  %v3482_v39 = vand.u32 3, %v970_v21 }
 0x155   :  { %v957_v62 = vand.u32 2147483647, %v956_v63  ;;  %v1305_v18 = vsel %vm1304_vm7, %v1303_v3, 0  ;;  %v1255_v25 = vsub.s32 0, %v3469_v17  ;;  %v2152_v11 = vadd.s32 4294967169, %v1609_v30 }
 0x156   :  { %v1307_v33 = vand.u32 31, %v1305_v18  ;;  %v1245_v52 = vadd.s32 %v3414_v16, %v3425_v23  ;;  %v3487_v27 = vshll.u32 %v1301_v13, 8  ;;  %v107_v56 = vcombine.high %v3434_v0, %v3434_v0 }
 0x157   :  { %v960_v19 = vmul.f32 %v959_v8, %v957_v62  ;;  %v2137_v6 = vmin.u32 %v1255_v25, %v3469_v17  ;;  %v1278_v2 = vsel %vm3474_vm13, 0, %v3480_v31  ;;  %v3497_v7 = vand.u32 8388607, %v1605_v41 }
 0x158   :  { %v1308_v38 = vsub.s32 32, %v1307_v33  ;;  %v1306_v15 = vshrl.u32 %v1305_v18, 5  ;;  %v1310_v16 = vshll.u32 %v2297_v42, %v1307_v33  ;;  %v1313_v23 = vshll.u32 %v2298_v44, %v1307_v33 }
 0x159   :  { %v961_v54 = vxor.u32 2147483648, %v960_v19  ;;  %v1257_v60 = vclz %v2137_v6  ;;  %v1316_v9 = vshll.u32 %v2299_v46, %v1307_v33  ;;  %v1319_v40 = vshll.u32 %v2300_v48, %v1307_v33  ;;  %v3508_v22 = vpop.trf.xlu0 }
 0x15a   :  { %v1615_v20 = vadd.s32 1, %v2152_v11  ;;  %v1309_v34 = vshrl.u32 %v2297_v42, %v1308_v38  ;;  %v1311_v51 = vshrl.u32 %v2298_v44, %v1308_v38  ;;  %v1314_v32 = vshrl.u32 %v2299_v46, %v1308_v38 }
 0x15b   :  { %v962_v43 = vsel %vm879_vm9, %v961_v54, %v960_v19  ;;  %v2138_v45 = vadd.s32 4294967294, %v1257_v60  ;;  %v1317_v28 = vshrl.u32 %v2300_v48, %v1308_v38  ;;  %v1320_v59 = vshrl.u32 %v2301_v50, %v1308_v38 }
 0x15c   :  { %v965_v24 = vsel %vm3438_vm3, %v3226_v36, %v962_v43  ;;  %v1312_v57 = vor.u32 %v1311_v51, %v1310_v16  ;;  %v1315_v21 = vor.u32 %v1314_v32, %v1313_v23  ;;  %v1322_v55 = vshll.u32 %v2301_v50, %v1307_v33 }
 0x15d   :  { %2277 = vcosq.f32 %v965_v24  ;;  %vm2139_vm14 = vcmp.lt.s32.totalorder %v2138_v45, 0  ;;  %v1318_v1 = vor.u32 %v1317_v28, %v1316_v9  ;;  %v1321_v53 = vor.u32 %v1320_v59, %v1319_v40  ;;  %v3517_v29 = vpop.trf.xlu0 }
 0x15e   :  { %2279 = vsinq.f32 %v965_v24  ;;  %v1260_v4 = vsel %vm2139_vm14, 0, %v2138_v45  ;;  %v1323_v49 = vshrl.u32 %v2302_v58, %v1308_v38  ;;  %vm1325_vm11 = vcmp.lt.s32.totalorder %v1306_v15, 1 }
 0x15f   :  { %vm1326_vm5 = vcmp.lt.s32.totalorder %v1306_v15, 2  ;;  %v1261_v30 = vsub.s32 32, %v1260_v4  ;;  %v1262_v61 = vshll.u32 %v3469_v17, %v1260_v4  ;;  %v1265_v47 = vsub.s32 4294967266, %v1260_v4 }
 0x160   :  { %vm1327_vm2 = vcmp.lt.s32.totalorder %v1306_v15, 3  ;;  %v1324_v10 = vor.u32 %v1323_v49, %v1322_v55  ;;  %vm1328_vm9 = vcmp.lt.s32.totalorder %v1306_v15, 4  ;;  %v1329_v3 = vsel %vm1325_vm11, %v1309_v34, %v1312_v57 }
 0x161   :  { %v1333_v12 = vsel %vm1325_vm11, %v1312_v57, %v1315_v21  ;;  %v1263_v63 = vshrl.u32 %v1245_v52, %v1261_v30  ;;  %v1266_v8 = vadd.s32 127, %v1265_v47  ;;  %v1330_v13 = vsel %vm1328_vm9, %v1318_v1, 2102212464  ;;  %v3525_v17 = vpop.trf.xlu0 }
 0x162   :  { %v1334_v62 = vsel %vm1328_vm9, %v1321_v53, 920167782  ;;  %v1331_v18 = vsel %vm1327_vm2, %v1315_v21, %v1330_v13  ;;  %v1337_v33 = vsel %vm1325_vm11, %v1315_v21, %v1318_v1  ;;  %v1338_v11 = vsel %vm1328_vm9, %v1324_v10, 1326507024 }
 0x163   :  { %v1335_v25 = vsel %vm1327_vm2, %v1318_v1, %v1334_v62  ;;  %v1264_v19 = vor.u32 %v1263_v63, %v1262_v61  ;;  %v1267_v6 = vshll.u32 %v1266_v8, 23  ;;  %v1613_v54 = vor.u32 8388608, %v3497_v7 }
 0x164   :  { %v1336_v38 = vsel %vm1326_vm5, %v1333_v12, %v1335_v25  ;;  %v1332_v52 = vsel %vm1326_vm5, %v1329_v3, %v1331_v18  ;;  %v1339_v16 = vsel %vm1327_vm2, %v1321_v53, %v1338_v11  ;;  %vm1616_vm1 = vcmp.gt.s32.totalorder %v1615_v20, 0 }
 0x165   :  { %v3532_v23 = vmul.u32.u64.low %v3487_v27, %v1336_v38  ;;  %v3533_v60 = vmul.u32.u64.high %v3487_v27, %v1336_v38, %v3532_v23  ;;  %v1268_v9 = vor.u32 4788187, %v1267_v6  ;;  %v1271_v40 = vcvt.s32.f32 %v1264_v19  ;;  %v3542_v32 = vpop.trf.xlu0 }
 0x166   :  { %v1340_v43 = vsel %vm1326_vm5, %v1337_v33, %v1339_v16  ;;  %vm969_vm4 = vweird.f32 %v3226_v36  ;;  %v1617_v7 = vsel %vm1616_vm1, %v1615_v20, 0  ;;  %vm972_vm3 = vcmp.lt.s32.totalorder %v3482_v39, 2 }
 0x167   :  { %v3539_v34 = vmul.u32.u64.low %v3487_v27, %v1340_v43  ;;  %v3540_v51 = vmul.u32.u64.high %v3487_v27, %v1340_v43, %v3539_v34  ;;  %vm973_vm12 = vcmp.eq.s32.totalorder %v3482_v39, 0  ;;  %v1269_v24 = vand.u32 2147483647, %v1268_v9 }
 0x168   :  { %v1619_v45 = vand.u32 31, %v1617_v7  ;;  %vm976_vm8 = vcmp.eq.s32.totalorder %v3482_v39, 2  ;;  %v3551_v15 = vadd.s32 3, %v1278_v2  ;;  %v1348_v28 = vmul.u32 %v3487_v27, %v1332_v52 }
 0x169   :  { %v1351_v20 = vadd.s32 1, %v3533_v60  ;;  %v1272_v57 = vmul.f32 %v1271_v40, %v1269_v24  ;;  %v3555_v55 = vshll.u32 %v1613_v54, 8  ;;  %v3561_v1 = vsel %vm110_vm0, %v107_v56, 0.0  ;;  %v3566_v2 = vpop.trf.xlu0 }
 0x16a   :  { %v2278_v59 = vpop.eup %2277  ;;  %v1620_v21 = vsub.s32 32, %v1619_v45  ;;  %vm1350_vm10 = vc.u32 %v3540_v51, %v3532_v23  ;;  %v1618_v31 = vshrl.u32 %v1617_v7, 5  ;;  %v1622_v27 = vshll.u32 %v2297_v42, %v1619_v45 }
 0x16b   :  { %v2280_v53 = vpop.eup %2279  ;;  %v977_v4 = vxor.u32 2147483648, %v2278_v59  ;;  %v1273_v30 = vxor.u32 2147483648, %v1272_v57  ;;  %v1352_v61 = vsel %vm1350_vm10, %v1351_v20, %v3533_v60  ;;  %v1625_v47 = vshll.u32 %v2298_v44, %v1619_v45 }
 0x16c   :  { %v974_v49 = vxor.u32 2147483648, %v2280_v53  ;;  %v1353_v56 = vadd.s32 %v1352_v61, %v1348_v28  ;;  %v1623_v10 = vshrl.u32 %v2298_v44, %v1620_v21  ;;  %v1626_v3 = vshrl.u32 %v2299_v46, %v1620_v21 }
 0x16d   :  { %v978_v0 = vsel %vm976_vm8, %v977_v4, %v2280_v53  ;;  %v1274_v63 = vsel %vm1191_vm6, %v1273_v30, %v1272_v57  ;;  %v1628_v8 = vshll.u32 %v2299_v46, %v1619_v45  ;;  %v1629_v13 = vshrl.u32 %v2300_v48, %v1620_v21  ;;  %v1867_v11 = vpop.trf.xlu0 }
 0x16e   :  { %v975_v12 = vsel %vm973_vm12, %v2278_v59, %v974_v49  ;;  %v1277_v18 = vsel %vm3474_vm13, %v3272_v26, %v1274_v63  ;;  %v1354_v25 = vadd.s32 536870912, %v1353_v56  ;;  %v1631_v33 = vshll.u32 %v2300_v48, %v1619_v45 }
 0x16f   :  { %v979_v62 = vsel %vm972_vm3, %v975_v12, %v978_v0  ;;  %2281 = vcosq.f32 %v1277_v18  ;;  %v1624_v6 = vor.u32 %v1623_v10, %v1622_v27  ;;  %v1627_v38 = vor.u32 %v1626_v3, %v1625_v47 }
 0x170   :  { %v980_v19 = vsel %vm969_vm4, nan, %v979_v62  ;;  %2283 = vsinq.f32 %v1277_v18  ;;  %v3588_v54 = vshrl.u32 %v1354_v25, 30  ;;  %v1632_v39 = vshrl.u32 %v2301_v50, %v1620_v21 }
 0x171   :  { %1943 = vxpose.xlu1.b32.cont [2/4] (short) %v980_v19, 128  ;;  %v1634_v52 = vshll.u32 %v2301_v50, %v1619_v45  ;;  %v1621_v35 = vshrl.u32 %v2297_v42, %v1620_v21  ;;  %v1630_v16 = vor.u32 %v1629_v13, %v1628_v8  ;;  %v1635_v60 = vshrl.u32 %v2302_v58, %v1620_v21  ;;  %v1868_v40 = vpop.trf.xlu0 }
 0x172   :  { %vm1637_vm0 = vcmp.lt.s32.totalorder %v1618_v31, 1  ;;  %v1356_v36 = vshll.u32 %v3588_v54, 30  ;;  %v1633_v9 = vor.u32 %v1632_v39, %v1631_v33  ;;  %vm1639_vm15 = vcmp.lt.s32.totalorder %v1618_v31, 3 }
 0x173   :  { %vm1640_vm6 = vcmp.lt.s32.totalorder %v1618_v31, 4  ;;  %v1636_v43 = vor.u32 %v1635_v60, %v1634_v52  ;;  %vm1638_vm7 = vcmp.lt.s32.totalorder %v1618_v31, 2  ;;  %v1645_v7 = vsel %vm1637_vm0, %v1624_v6, %v1627_v38  ;;  %v1894_v20 = vpop.trf.xlu1 }
 0x174   :  { %v1642_v34 = vsel %vm1640_vm6, %v1630_v16, 2102212464  ;;  %v3597_v24 = vsub.s32 %v1353_v56, %v1356_v36  ;;  %v1646_v45 = vsel %vm1640_vm6, %v1633_v9, 920167782  ;;  %v1712_v28 = vand.u32 2139095040, %v3561_v1 }
 0x175   :  { %v1641_v59 = vsel %vm1637_vm0, %v1621_v35, %v1624_v6  ;;  %v1643_v57 = vsel %vm1639_vm15, %v1627_v38, %v1642_v34  ;;  %v1647_v21 = vsel %vm1639_vm15, %v1630_v16, %v1646_v45  ;;  %v1649_v53 = vsel %vm1637_vm0, %v1627_v38, %v1630_v16  ;;  %v1869_v61 = vpop.trf.xlu0 }
 0x176   :  { %v1283_v4 = vand.u32 3, %v3551_v15  ;;  %v1359_v27 = vsub.s32 0, %v3597_v24  ;;  %v1648_v49 = vsel %vm1638_vm7, %v1645_v7, %v1647_v21  ;;  %v1650_v30 = vsel %vm1640_vm6, %v1636_v43, 1326507024 }
 0x177   :  { %v1651_v47 = vsel %vm1639_vm15, %v1633_v9, %v1650_v30  ;;  %v3611_v0 = vmul.u32.u64.low %v3555_v55, %v1648_v49  ;;  %v3612_v56 = vmul.u32.u64.high %v3555_v55, %v1648_v49, %v3611_v0  ;;  %v1644_v3 = vsel %vm1638_vm7, %v1641_v59, %v1643_v57  ;;  %v1895_v12 = vpop.trf.xlu1 }
 0x178   :  { %v2141_v10 = vmin.u32 %v1359_v27, %v3597_v24  ;;  %v1652_v15 = vsel %vm1638_vm7, %v1649_v53, %v1651_v47  ;;  %v1713_v13 = vshrl.u32 %v1712_v28, 23  ;;  %vm1281_vm13 = vweird.f32 %v3272_v26 }
 0x179   :  { %v3619_v63 = vmul.u32.u64.low %v3555_v55, %v1652_v15  ;;  %v3620_v8 = vmul.u32.u64.high %v3555_v55, %v1652_v15, %v3619_v63  ;;  %vm1284_vm14 = vcmp.lt.s32.totalorder %v1283_v4, 2  ;;  %v1870_v18 = vpop.trf.xlu0  ;;  %v1660_v25 = vmul.u32 %v3555_v55, %v1644_v3 }
 0x17a   :  { %v1361_v62 = vclz %v2141_v10  ;;  %v1663_v33 = vadd.s32 1, %v3612_v56  ;;  %v2156_v11 = vadd.s32 4294967169, %v1713_v13  ;;  %vm1974_vm11 = vcmask 220160  }
 0x17b   :  { %vm1285_vm5 = vcmp.eq.s32.totalorder %v1283_v4, 0  ;;  %vm1288_vm2 = vcmp.eq.s32.totalorder %v1283_v4, 2  ;;  %1975 = vst.msk [vmem:[#allocation2] sm:$0xff] %vm1974_vm11, %v3508_v22  ;;  %1976 = vst.msk [vmem:[#allocation2 + $0x8] sm:$0xff] %vm1974_vm11, %v3517_v29  ;;  %v1896_v6 = vpop.trf.xlu1  ;;  %v1349_v39 = vadd.s32 %v3532_v23, %v3540_v51  ;;  %vm1662_vm9 = vc.u32 %v3620_v8, %v3611_v0 }
 0x17c   :  { %v2282_v19 = vpop.eup %2281  ;;  %v2142_v31 = vadd.s32 4294967294, %v1361_v62  ;;  %1977 = vst.msk [vmem:[#allocation2 + $0x10] sm:$0xff] %vm1974_vm11, %v3525_v17  ;;  %1978 = vst.msk [vmem:[#allocation2 + $0x18] sm:$0xff] %vm1974_vm11, %v3542_v32  ;;  %v1719_v52 = vadd.s32 1, %v2156_v11  ;;  %v1379_v22 = vsub.s32 4, %v3588_v54  ;;  %v1664_v29 = vsel %vm1662_vm9, %v1663_v33, %v3612_v56 }
 0x17d   :  { %1979 = vst.msk [vmem:[#allocation2 + $0x20] sm:$0xff] %vm1974_vm11, %v3566_v2  ;;  %v2284_v55 = vpop.eup %2283  ;;  %v1289_v38 = vxor.u32 2147483648, %v2282_v19  ;;  %v1871_v17 = vpop.trf.xlu0  ;;  %v1665_v2 = vadd.s32 %v1664_v29, %v1660_v25  ;;  %v1709_v34 = vand.u32 2147483647, %v3561_v1  ;;  %vm1295_vm3 = vcmp.lt.s32.totalorder %v3447_v5, 0 }
 0x17e   :  { %v1286_v35 = vxor.u32 2147483648, %v2284_v55  ;;  %vm2143_vm1 = vcmp.lt.s32.totalorder %v2142_v31, 0  ;;  %vm1720_vm4 = vcmp.gt.s32.totalorder %v1719_v52, 0  ;;  %vm3662_vm12 = vcmp.le.f32.partialorder %v1293_v37, 0.7853982 }
 0x17f   :  { %v1290_v32 = vsel %vm1288_vm2, %v1289_v38, %v2284_v55  ;;  %v1364_v16 = vsel %vm2143_vm1, 0, %v2142_v31  ;;  %v1897_v9 = vpop.trf.xlu1  ;;  %v1666_v43 = vadd.s32 536870912, %v1665_v2  ;;  %v1721_v7 = vsel %vm1720_vm4, %v1719_v52, 0 }
 0x180   :  { %v1287_v60 = vsel %vm1285_vm5, %v2282_v19, %v1286_v35  ;;  %v1365_v36 = vsub.s32 32, %v1364_v16  ;;  %v1366_v23 = vshll.u32 %v3597_v24, %v1364_v16  ;;  %v1369_v51 = vsub.s32 4294967266, %v1364_v16 }
 0x181   :  { %v1291_v40 = vsel %vm1284_vm14, %v1287_v60, %v1290_v32  ;;  %v1872_v59 = vpop.trf.xlu0  ;;  %v3647_v24 = vsel %vm1295_vm3, %v1379_v22, %v3588_v54  ;;  %v3649_v57 = vshrl.u32 %v1666_v43, 30  ;;  %v1723_v21 = vand.u32 31, %v1721_v7 }
 0x182   :  { %v1292_v45 = vsel %vm1281_vm13, nan, %v1291_v40  ;;  %v1367_v28 = vshrl.u32 %v1349_v39, %v1365_v36  ;;  %v1370_v20 = vadd.s32 127, %v1369_v51  ;;  %v2077_v53 = vld [vmem:[#allocation2] sm:$0xff]  ;;  %v2079_v4 = vld [vmem:[#allocation2 + $0x8] sm:$0xff]  ;;  %v1716_v10 = vand.u32 8388607, %v1709_v34 }
 0x183   :  { %1912 = vxpose.xlu0.b32.cont [3/4] (short) %v1292_v45, 128  ;;  %v2081_v27 = vld [vmem:[#allocation2 + $0x10] sm:$0xff]  ;;  %2078 = vst [vmem:[%s3753_s1] sm:$0xff] %v2077_v53  ;;  %2080 = vst [vmem:[%s3753_s1 + $0x8] sm:$0xff] %v2079_v4  ;;  %v2083_v54 = vld [vmem:[#allocation2 + $0x18] sm:$0xff]  ;;  %v1898_v61 = vpop.trf.xlu1  ;;  %v1668_v56 = vshll.u32 %v3649_v57, 30  ;;  %v1724_v3 = vsub.s32 32, %v1723_v21  ;;  %v1382_v37 = vsel %vm3662_vm12, 0, %v3647_v24  ;;  %v1726_v63 = vshll.u32 %v2297_v42, %v1723_v21 }
 0x184   :  { %v1368_v49 = vor.u32 %v1367_v28, %v1366_v23  ;;  %v1371_v26 = vshll.u32 %v1370_v20, 23  ;;  %2082 = vst [vmem:[%s3753_s1 + $0x10] sm:$0xff] %v2081_v27  ;;  %v2085_v30 = vld [vmem:[#allocation2 + $0x20] sm:$0xff]  ;;  %2084 = vst [vmem:[%s3753_s1 + $0x18] sm:$0xff] %v2083_v54  ;;  %v1722_v18 = vshrl.u32 %v1721_v7, 5  ;;  %v1729_v33 = vshll.u32 %v2298_v44, %v1723_v21 }
 0x185   :  { %2086 = vst [vmem:[%s3753_s1 + $0x20] sm:$0xff] %v2085_v30  ;;  %v1873_v13 = vpop.trf.xlu0  ;;  %v3679_v62 = vsub.s32 %v1665_v2, %v1668_v56  ;;  %v1727_v25 = vshrl.u32 %v2298_v44, %v1724_v3  ;;  %v1730_v19 = vshrl.u32 %v2299_v46, %v1724_v3  ;;  %v1732_v31 = vshll.u32 %v2299_v46, %v1723_v21 }
 0x186   :  { %v1372_v15 = vor.u32 4788187, %v1371_v26  ;;  %v1375_v12 = vcvt.s32.f32 %v1368_v49  ;;  %v1733_v6 = vshrl.u32 %v2300_v48, %v1724_v3  ;;  %v1661_v38 = vadd.s32 %v3611_v0, %v3620_v8 }
 0x187   :  { %v1899_v55 = vpop.trf.xlu1  ;;  %v1671_v39 = vsub.s32 0, %v3679_v62  ;;  %v1717_v52 = vor.u32 8388608, %v1716_v10  ;;  %v1735_v35 = vshll.u32 %v2300_v48, %v1723_v21  ;;  %v1725_v29 = vshrl.u32 %v2297_v42, %v1724_v3 }
 0x188   :  { %v1373_v11 = vand.u32 2147483647, %v1372_v15  ;;  %v1728_v44 = vor.u32 %v1727_v25, %v1726_v63  ;;  %v1736_v17 = vshrl.u32 %v2301_v50, %v1724_v3  ;;  %v1731_v16 = vor.u32 %v1730_v19, %v1729_v33 }
 0x189   :  { %v1874_v32 = vpop.trf.xlu0  ;;  %v2153_v46 = vmin.u32 %v1671_v39, %v3679_v62  ;;  %v1738_v2 = vshll.u32 %v2301_v50, %v1723_v21  ;;  %v1739_v60 = vshrl.u32 %v2302_v58, %v1724_v3  ;;  %v1734_v8 = vor.u32 %v1733_v6, %v1732_v31 }
 0x18a   :  { %v1376_v22 = vmul.f32 %v1375_v12, %v1373_v11  ;;  %v1737_v36 = vor.u32 %v1736_v17, %v1735_v35  ;;  %vm1741_vm8 = vcmp.lt.s32.totalorder %v1722_v18, 1  ;;  %vm1742_vm10 = vcmp.lt.s32.totalorder %v1722_v18, 2 }
 0x18b   :  { %v1900_v23 = vpop.trf.xlu1  ;;  %v1673_v48 = vclz %v2153_v46  ;;  %vm1743_vm0 = vcmp.lt.s32.totalorder %v1722_v18, 3  ;;  %vm1744_vm15 = vcmp.lt.s32.totalorder %v1722_v18, 4  ;;  %v1740_v51 = vor.u32 %v1739_v60, %v1738_v2 }
 0x18c   :  { %v1377_v0 = vxor.u32 2147483648, %v1376_v22  ;;  %v1745_v9 = vsel %vm1741_vm8, %v1725_v29, %v1728_v44  ;;  %v1746_v40 = vsel %vm1744_vm15, %v1734_v8, 2102212464  ;;  %v1749_v45 = vsel %vm1741_vm8, %v1728_v44, %v1731_v16 }
 0x18d   :  { %v1875_v50 = vpop.trf.xlu0  ;;  %v2154_v43 = vadd.s32 4294967294, %v1673_v48  ;;  %v1747_v7 = vsel %vm1743_vm0, %v1731_v16, %v1746_v40  ;;  %v1750_v28 = vsel %vm1744_vm15, %v1737_v36, 920167782  ;;  %v1753_v20 = vsel %vm1741_vm8, %v1731_v16, %v1734_v8 }
 0x18e   :  { %v1378_v42 = vsel %vm1295_vm3, %v1377_v0, %v1376_v22  ;;  %v1757_v59 = vshll.u32 %v1717_v52, 8  ;;  %v1751_v53 = vsel %vm1743_vm0, %v1734_v8, %v1750_v28  ;;  %v1754_v4 = vsel %vm1744_vm15, %v1740_v51, 1326507024 }
 0x18f   :  { %v1381_v58 = vsel %vm3662_vm12, %v3447_v5, %v1378_v42  ;;  %v1901_v21 = vpop.trf.xlu1  ;;  %vm2155_vm6 = vcmp.lt.s32.totalorder %v2154_v43, 0  ;;  %v1748_v49 = vsel %vm1742_vm10, %v1745_v9, %v1747_v7  ;;  %v1752_v26 = vsel %vm1742_vm10, %v1749_v45, %v1751_v53 }
 0x190   :  { %2285 = vcosq.f32 %v1381_v58  ;;  %v1676_v27 = vsel %vm2155_vm6, 0, %v2154_v43  ;;  %v1755_v54 = vsel %vm1743_vm0, %v1737_v36, %v1754_v4  ;;  %v1386_v33 = vadd.s32 3, %v1382_v37 }
 0x191   :  { %2287 = vsinq.f32 %v1381_v58  ;;  %v1876_v30 = vpop.trf.xlu0  ;;  %v1677_v61 = vsub.s32 32, %v1676_v27  ;;  %v1678_v56 = vshll.u32 %v3679_v62, %v1676_v27  ;;  %v1681_v10 = vsub.s32 4294967266, %v1676_v27 }
 0x192   :  { %v1756_v3 = vsel %vm1742_vm10, %v1753_v20, %v1755_v54  ;;  %v3716_v63 = vmul.u32.u64.low %v1757_v59, %v1752_v26  ;;  %v3717_v13 = vmul.u32.u64.high %v1757_v59, %v1752_v26, %v3716_v63  ;;  %v1764_v55 = vmul.u32 %v1757_v59, %v1748_v49 }
 0x193   :  { %v3713_v15 = vmul.u32.u64.low %v1757_v59, %v1756_v3  ;;  %v3714_v12 = vmul.u32.u64.high %v1757_v59, %v1756_v3, %v3713_v15  ;;  %v1902_v25 = vpop.trf.xlu1  ;;  %v1679_v11 = vshrl.u32 %v1661_v38, %v1677_v61  ;;  %v1682_v19 = vadd.s32 127, %v1681_v10 }
 0x194   :  { %v1767_v18 = vadd.s32 1, %v3717_v13  ;;  %v1387_v52 = vand.u32 3, %v1386_v33  ;;  %vm1607_vm14 = vcmp.lt.s32.totalorder %v3451_v14, 0  ;;  %vm3729_vm5 = vcmp.le.f32.partialorder %v1605_v41, 0.7853982 }
 0x195   :  { %v1877_v31 = vpop.trf.xlu0  ;;  %v1680_v6 = vor.u32 %v1679_v11, %v1678_v56  ;;  %v1683_v62 = vshll.u32 %v1682_v19, 23  ;;  %vm1766_vm7 = vc.u32 %v3714_v12, %v3716_v63  ;;  %v1691_v2 = vsub.s32 4, %v3649_v57 }
 0x196   :  { %v1768_v29 = vsel %vm1766_vm7, %v1767_v18, %v3717_v13  ;;  %vm1392_vm13 = vcmp.eq.s32.totalorder %v1387_v52, 2  ;;  %vm1389_vm11 = vcmp.eq.s32.totalorder %v1387_v52, 0  ;;  %vm1388_vm2 = vcmp.lt.s32.totalorder %v1387_v52, 2 }
 0x197   :  { %v1903_v39 = vpop.trf.xlu1  ;;  %v1684_v35 = vor.u32 4788187, %v1683_v62  ;;  %v1687_v22 = vcvt.s32.f32 %v1680_v6  ;;  %v1769_v44 = vadd.s32 %v1768_v29, %v1764_v55  ;;  %vm1385_vm9 = vweird.f32 %v3447_v5 }
 0x198   :  { %v1692_v41 = vsel %vm1607_vm14, %v1691_v2, %v3649_v57  ;;  %v1765_v4 = vadd.s32 %v3716_v63, %v3714_v12  ;;  %vm1697_vm8 = vweird.f32 %v3451_v14  ;;  %vm1711_vm10 = vcmp.lt.s32.totalorder %v3561_v1, 0 }
 0x199   :  { %v1685_v47 = vand.u32 2147483647, %v1684_v35  ;;  %v1770_v17 = vadd.s32 536870912, %v1769_v44  ;;  %v1694_v43 = vsel %vm3729_vm5, 0, %v1692_v41  ;;  %vm1710_vm0 = vcmp.le.f32.partialorder %v1709_v34, 0.7853982 }
 0x19a   :  { %v1698_v28 = vadd.s32 3, %v1694_v43 }
 0x19b   :  { %v1904_v24 = vpop.trf.xlu1  ;;  %v1688_v38 = vmul.f32 %v1687_v22, %v1685_v47  ;;  %v1771_v8 = vshrl.u32 %v1770_v17, 30 }
 0x19c   :  { %v1699_v57 = vand.u32 3, %v1698_v28 }
 0x19d   :  { %v2286_v37 = vpop.eup %2285  ;;  %v1689_v0 = vxor.u32 2147483648, %v1688_v38  ;;  %v1772_v51 = vshll.u32 %v1771_v8, 30  ;;  %v1795_v18 = vsub.s32 4, %v1771_v8 }
 0x19e   :  { %v2288_v32 = vpop.eup %2287  ;;  %v1393_v46 = vxor.u32 2147483648, %v2286_v37  ;;  %vm1704_vm4 = vcmp.eq.s32.totalorder %v1699_v57, 2  ;;  %vm1701_vm3 = vcmp.eq.s32.totalorder %v1699_v57, 0  ;;  %vm1700_vm12 = vcmp.lt.s32.totalorder %v1699_v57, 2 }
 0x19f   :  { %v1390_v60 = vxor.u32 2147483648, %v2288_v32  ;;  %v1905_v23 = vpop.trf.xlu1  ;;  %v1690_v42 = vsel %vm1607_vm14, %v1689_v0, %v1688_v38  ;;  %v1773_v58 = vsub.s32 %v1769_v44, %v1772_v51 }
 0x1a0   :  { %v1394_v36 = vsel %vm1392_vm13, %v1393_v46, %v2288_v32  ;;  %v1693_v40 = vsel %vm3729_vm5, %v3451_v14, %v1690_v42  ;;  %v1796_v14 = vsel %vm1711_vm10, %v1795_v18, %v1771_v8  ;;  %vm1801_vm13 = vweird.f32 %v3561_v1 }
 0x1a1   :  { %v1391_v48 = vsel %vm1389_vm11, %v2286_v37, %v1390_v60  ;;  %2289 = vcosq.f32 %v1693_v40  ;;  %v1775_v7 = vsub.s32 0, %v1773_v58  ;;  %v1798_v22 = vsel %vm1710_vm0, 0, %v1796_v14 }
 0x1a2   :  { %v1395_v9 = vsel %vm1388_vm2, %v1391_v48, %v1394_v36  ;;  %2291 = vsinq.f32 %v1693_v40  ;;  %v1802_v29 = vadd.s32 3, %v1798_v22 }
 0x1a3   :  { %v1396_v50 = vsel %vm1385_vm9, nan, %v1395_v9  ;;  %v1906_v5 = vpop.trf.xlu1  ;;  %v2157_v45 = vmin.u32 %v1775_v7, %v1773_v58 }
 0x1a4   :  { %1944 = vxpose.xlu1.b32.cont [3/4] (short) %v1396_v50, 128  ;;  %v1803_v47 = vand.u32 3, %v1802_v29 }
 0x1a5   :  { %v1777_v59 = vclz %v2157_v45 }
 0x1a6   :  { %vm1808_vm15 = vcmp.eq.s32.totalorder %v1803_v47, 2  ;;  %vm1805_vm6 = vcmp.eq.s32.totalorder %v1803_v47, 0  ;;  %vm1804_vm7 = vcmp.lt.s32.totalorder %v1803_v47, 2 }
 0x1a7   :  { %v1907_v20 = vpop.trf.xlu1  ;;  %v2158_v21 = vadd.s32 4294967294, %v1777_v59 }
 0x1a9   :  { %vm2159_vm1 = vcmp.lt.s32.totalorder %v2158_v21, 0 }
 0x1aa   :  { %v1780_v27 = vsel %vm2159_vm1, 0, %v2158_v21 }
 0x1ab   :  { %v1908_v53 = vpop.trf.xlu1  ;;  %v1781_v49 = vsub.s32 32, %v1780_v27  ;;  %v1782_v26 = vshll.u32 %v1773_v58, %v1780_v27  ;;  %v1785_v54 = vsub.s32 4294967266, %v1780_v27 }
 0x1ad   :  { %v1783_v3 = vshrl.u32 %v1765_v4, %v1781_v49  ;;  %v1786_v15 = vadd.s32 127, %v1785_v54 }
 0x1ae   :  { %v2290_v30 = vpop.eup %2289 }
 0x1af   :  { %v1909_v61 = vpop.trf.xlu1  ;;  %v2292_v56 = vpop.eup %2291  ;;  %v1705_v10 = vxor.u32 2147483648, %v2290_v30  ;;  %v1784_v33 = vor.u32 %v1783_v3, %v1782_v26  ;;  %v1787_v12 = vshll.u32 %v1786_v15, 23 }
 0x1b0   :  { %v1702_v13 = vxor.u32 2147483648, %v2292_v56 }
 0x1b1   :  { %v1706_v25 = vsel %vm1704_vm4, %v1705_v10, %v2292_v56  ;;  %v1788_v19 = vor.u32 4788187, %v1787_v12  ;;  %v1791_v31 = vcvt.s32.f32 %v1784_v33 }
 0x1b2   :  { %v1703_v63 = vsel %vm1701_vm3, %v2290_v30, %v1702_v13 }
 0x1b3   :  { %v1707_v11 = vsel %vm1700_vm12, %v1703_v63, %v1706_v25  ;;  %v1789_v62 = vand.u32 2147483647, %v1788_v19 }
 0x1b4   :  { %v1708_v6 = vsel %vm1697_vm8, nan, %v1707_v11 }
 0x1b5   :  { %1913 = vxpose.xlu0.b32.end [4/4] (short) %v1708_v6, 128  ;;  %v1792_v55 = vmul.f32 %v1791_v31, %v1789_v62 }
 0x1b7   :  { %v1793_v39 = vxor.u32 2147483648, %v1792_v55 }
 0x1b9   :  { %v1794_v52 = vsel %vm1711_vm10, %v1793_v39, %v1792_v55 }
 0x1ba   :  { %v1797_v35 = vsel %vm1710_vm0, %v3561_v1, %v1794_v52 }
 0x1bb   :  { %2293 = vcosq.f32 %v1797_v35 }
 0x1bc   :  { %2295 = vsinq.f32 %v1797_v35 }
 0x1c8   :  { %v2294_v44 = vpop.eup %2293 }
 0x1c9   :  { %v2296_v24 = vpop.eup %2295  ;;  %v1809_v37 = vxor.u32 2147483648, %v2294_v44 }
 0x1ca   :  { %v1806_v38 = vxor.u32 2147483648, %v2296_v24 }
 0x1cb   :  { %v1810_v34 = vsel %vm1808_vm15, %v1809_v37, %v2296_v24 }
 0x1cc   :  { %v1807_v17 = vsel %vm1805_vm6, %v2294_v44, %v1806_v38 }
 0x1cd   :  { %v1811_v32 = vsel %vm1804_vm7, %v1807_v17, %v1810_v34 }
 0x1ce   :  { %v1812_v46 = vsel %vm1801_vm13, nan, %v1811_v32 }
 0x1cf   :  { %1945 = vxpose.xlu1.b32.end [4/4] (short) %v1812_v46, 128 }
 0x225   :  { %v1926_v16 = vpop.trf.xlu0 }
 0x229   :  { %v1927_v2 = vpop.trf.xlu0 }
 0x22d   :  { %v1928_v60 = vpop.trf.xlu0 }
 0x231   :  { %v1929_v0 = vpop.trf.xlu0 }
 0x235   :  { %v1930_v8 = vpop.trf.xlu0 }
 0x239   :  { %v1931_v36 = vpop.trf.xlu0 }
 0x23d   :  { %v1932_v23 = vpop.trf.xlu0 }
 0x23f   :  { %v1958_v48 = vpop.trf.xlu1 }
 0x241   :  { %v1933_v42 = vpop.trf.xlu0 }
 0x243   :  { %v1959_v51 = vpop.trf.xlu1 }
 0x245   :  { %v1934_v9 = vpop.trf.xlu0 }
 0x247   :  { %v1960_v41 = vpop.trf.xlu1 }
 0x249   :  { %v1935_v40 = vpop.trf.xlu0 }
 0x24b   :  { %v1961_v50 = vpop.trf.xlu1 }
 0x24d   :  { %v1936_v1 = vpop.trf.xlu0 }
 0x24f   :  { %v1962_v58 = vpop.trf.xlu1 }
 0x251   :  { %v1937_v5 = vpop.trf.xlu0 }
 0x253   :  { %v1963_v43 = vpop.trf.xlu1 }
 0x255   :  { %v1938_v7 = vpop.trf.xlu0 }
 0x257   :  { %v1964_v45 = vpop.trf.xlu1 }
 0x259   :  { %v1939_v28 = vpop.trf.xlu0 }
 0x25b   :  { %v1965_v20 = vpop.trf.xlu1 }
 0x25d   :  { %v1940_v59 = vpop.trf.xlu0 }
 0x25f   :  { %v1966_v21 = vpop.trf.xlu1 }
 0x261   :  { %v1941_v57 = vpop.trf.xlu0 }
 0x263   :  { %v1967_v53 = vpop.trf.xlu1 }
 0x267   :  { %v1968_v4 = vpop.trf.xlu1 }
 0x26b   :  { %v1969_v27 = vpop.trf.xlu1 }
 0x26f   :  { %v1970_v49 = vpop.trf.xlu1 }
 0x273   :  { %v1971_v26 = vpop.trf.xlu1 }
 0x277   :  { %v1972_v54 = vpop.trf.xlu1 }
 0x27b   :  { %v1973_v30 = vpop.trf.xlu1 }

// kernel: embed.1
= control target key start
LH: loop header
LB: loop body
LE: loop exit
PB: predicated region body
PF: predicated region fallthrough
CT: control target
= control target key end

     0   :  { %v3683_v28 = vmov 683565275   ;;  %v3684_v30 = vmov 2475754826   ;;  %v3685_v32 = vmov 2131351028   ;;  %s5390_s0 = inlined_call_operand.vmem [shape: f32[8,512], index: 0, kind: input, shape index: {}]   ;;  %s5391_s1 = inlined_call_operand.vmem [shape: f32[9,8,512], index: 1, kind: output, shape index: {}]  }
   0x1   :  { %v3702_v0 = vld [vmem:[%s5390_s0] sm:$0xff]  ;;  %v3707_v1 = vld [vmem:[%s5390_s0 + $0x8] sm:$0xff]  ;;  %v3712_v2 = vld [vmem:[%s5390_s0 + $0x10] sm:$0xff]  ;;  %v3686_v34 = vmov 2102212464  }
   0x2   :  { %12 = vst [vmem:[%s5391_s1] sm:$0xff] %v3702_v0  ;;  %13 = vst [vmem:[%s5391_s1 + $0x8] sm:$0xff] %v3707_v1  ;;  %v3729_v3 = vld [vmem:[%s5390_s0 + $0x18] sm:$0xff]  ;;  %v16_v4 = vand.u32 2147483647, %v3702_v0  ;;  %v19_v5 = vand.u32 2139095040, %v3702_v0  ;;  %v123_v9 = vand.u32 2139095040, %v3707_v1 }
   0x3   :  { %14 = vst [vmem:[%s5391_s1 + $0x10] sm:$0xff] %v3712_v2  ;;  %15 = vst [vmem:[%s5391_s1 + $0x18] sm:$0xff] %v3729_v3  ;;  %v120_v6 = vand.u32 2147483647, %v3707_v1  ;;  %v227_v12 = vand.u32 2139095040, %v3712_v2  ;;  %vm18_vm12 = vcmp.lt.s32.totalorder %v3702_v0, 0 }
   0x4   :  { %v20_v7 = vshrl.u32 %v19_v5, 23  ;;  %v23_v8 = vand.u32 8388607, %v16_v4  ;;  %v124_v13 = vshrl.u32 %v123_v9, 23  ;;  %v224_v23 = vand.u32 2147483647, %v3712_v2 }
   0x5   :  { %v127_v10 = vand.u32 8388607, %v120_v6  ;;  %v228_v18 = vshrl.u32 %v227_v12, 23  ;;  %v3687_v36 = vmov 920167782  }
   0x6   :  { %v3384_v11 = vadd.s32 4294967169, %v20_v7  ;;  %v24_v15 = vor.u32 8388608, %v23_v8  ;;  %v3388_v16 = vadd.s32 4294967169, %v124_v13  ;;  %v3688_v43 = vmov 1326507024  }
   0x7   :  { %v128_v17 = vor.u32 8388608, %v127_v10  ;;  %v3749_v26 = vadd.s32 4294967169, %v228_v18  ;;  %vm3826_vm14 = vcmp.le.f32.partialorder %v16_v4, 0.7853982 }
   0x8   :  { %v26_v14 = vadd.s32 1, %v3384_v11  ;;  %v130_v20 = vadd.s32 1, %v3388_v16  ;;  %v3745_v24 = vshll.u32 %v24_v15, 8 }
   0x9   :  { %v3747_v25 = vshll.u32 %v128_v17, 8 }
   0xa   :  { %vm27_vm0 = vcmp.gt.s32.totalorder %v26_v14, 0  ;;  %vm131_vm1 = vcmp.gt.s32.totalorder %v130_v20, 0 }
   0xb   :  { %v28_v19 = vsel %vm27_vm0, %v26_v14, 0  ;;  %v132_v48 = vsel %vm131_vm1, %v130_v20, 0 }
   0xc   :  { %v29_v21 = vshrl.u32 %v28_v19, 5  ;;  %v30_v22 = vand.u32 31, %v28_v19  ;;  %v133_v51 = vshrl.u32 %v132_v48, 5  ;;  %v134_v52 = vand.u32 31, %v132_v48 }
   0xe   :  { %v31_v27 = vsub.s32 32, %v30_v22  ;;  %v33_v29 = vshll.u32 %v3683_v28, %v30_v22  ;;  %v36_v31 = vshll.u32 %v3684_v30, %v30_v22  ;;  %v39_v33 = vshll.u32 %v3685_v32, %v30_v22 }
   0xf   :  { %v42_v35 = vshll.u32 %v3686_v34, %v30_v22  ;;  %v45_v37 = vshll.u32 %v3687_v36, %v30_v22  ;;  %vm48_vm2 = vcmp.lt.s32.totalorder %v29_v21, 1  ;;  %vm49_vm3 = vcmp.lt.s32.totalorder %v29_v21, 2 }
  0x10   :  { %v32_v38 = vshrl.u32 %v3683_v28, %v31_v27  ;;  %v34_v39 = vshrl.u32 %v3684_v30, %v31_v27  ;;  %v37_v40 = vshrl.u32 %v3685_v32, %v31_v27  ;;  %v40_v41 = vshrl.u32 %v3686_v34, %v31_v27 }
  0x11   :  { %v43_v42 = vshrl.u32 %v3687_v36, %v31_v27  ;;  %v46_v44 = vshrl.u32 %v3688_v43, %v31_v27  ;;  %vm50_vm4 = vcmp.lt.s32.totalorder %v29_v21, 3  ;;  %vm51_vm5 = vcmp.lt.s32.totalorder %v29_v21, 4 }
  0x12   :  { %v35_v45 = vor.u32 %v34_v39, %v33_v29  ;;  %v38_v46 = vor.u32 %v37_v40, %v36_v31  ;;  %v41_v47 = vor.u32 %v40_v41, %v39_v33  ;;  %v135_v60 = vsub.s32 32, %v134_v52 }
  0x13   :  { %v44_v49 = vor.u32 %v43_v42, %v42_v35  ;;  %v47_v50 = vor.u32 %v46_v44, %v45_v37  ;;  %v137_v5 = vshll.u32 %v3683_v28, %v134_v52  ;;  %v140_v16 = vshll.u32 %v3684_v30, %v134_v52 }
  0x14   :  { %v52_v53 = vsel %vm48_vm2, %v32_v38, %v35_v45  ;;  %v53_v54 = vsel %vm51_vm5, %v41_v47, 2102212464  ;;  %v56_v55 = vsel %vm48_vm2, %v35_v45, %v38_v46  ;;  %v60_v56 = vsel %vm48_vm2, %v38_v46, %v41_v47 }
  0x15   :  { %v54_v57 = vsel %vm50_vm4, %v38_v46, %v53_v54  ;;  %v57_v58 = vsel %vm51_vm5, %v44_v49, 920167782  ;;  %v61_v59 = vsel %vm51_vm5, %v47_v50, 1326507024  ;;  %v136_v10 = vshrl.u32 %v3683_v28, %v135_v60 }
  0x16   :  { %v55_v61 = vsel %vm49_vm3, %v52_v53, %v54_v57  ;;  %v58_v62 = vsel %vm50_vm4, %v41_v47, %v57_v58  ;;  %v62_v63 = vsel %vm50_vm4, %v44_v49, %v61_v59  ;;  %v138_v15 = vshrl.u32 %v3684_v30, %v135_v60 }
  0x17   :  { %v59_v7 = vsel %vm49_vm3, %v56_v55, %v58_v62  ;;  %v63_v8 = vsel %vm49_vm3, %v60_v56, %v62_v63  ;;  %v71_v9 = vmul.u32 %v3745_v24, %v55_v61  ;;  %v141_v17 = vshrl.u32 %v3685_v32, %v135_v60 }
  0x18   :  { %v3776_v11 = vmul.u32.u64.low %v3745_v24, %v63_v8  ;;  %v3777_v12 = vmul.u32.u64.high %v3745_v24, %v63_v8, %v3776_v11  ;;  %v3780_v13 = vmul.u32.u64.low %v3745_v24, %v59_v7  ;;  %v3781_v14 = vmul.u32.u64.high %v3745_v24, %v59_v7, %v3780_v13 }
  0x19   :  { %v143_v18 = vshll.u32 %v3685_v32, %v134_v52  ;;  %v144_v19 = vshrl.u32 %v3686_v34, %v135_v60  ;;  %v146_v20 = vshll.u32 %v3686_v34, %v134_v52  ;;  %v147_v21 = vshrl.u32 %v3687_v36, %v135_v60 }
  0x1a   :  { %v149_v22 = vshll.u32 %v3687_v36, %v134_v52  ;;  %v139_v27 = vor.u32 %v138_v15, %v137_v5  ;;  %v142_v24 = vor.u32 %v141_v17, %v140_v16  ;;  %v150_v29 = vshrl.u32 %v3688_v43, %v135_v60 }
  0x1b   :  { %vm152_vm6 = vcmp.lt.s32.totalorder %v133_v51, 1  ;;  %vm73_vm7 = vc.u32 %v3777_v12, %v3780_v13  ;;  %v74_v31 = vadd.s32 1, %v3781_v14  ;;  %v145_v33 = vor.u32 %v144_v19, %v143_v18 }
  0x1c   :  { %v234_v35 = vadd.s32 1, %v3749_v26  ;;  %v148_v37 = vor.u32 %v147_v21, %v146_v20  ;;  %v151_v38 = vor.u32 %v150_v29, %v149_v22  ;;  %vm153_vm8 = vcmp.lt.s32.totalorder %v133_v51, 2 }
  0x1d   :  { %vm154_vm9 = vcmp.lt.s32.totalorder %v133_v51, 3  ;;  %v75_v39 = vsel %vm73_vm7, %v74_v31, %v3781_v14  ;;  %vm155_vm10 = vcmp.lt.s32.totalorder %v133_v51, 4  ;;  %v156_v40 = vsel %vm152_vm6, %v136_v10, %v139_v27 }
  0x1e   :  { %v160_v41 = vsel %vm152_vm6, %v139_v27, %v142_v24  ;;  %v76_v42 = vadd.s32 %v75_v39, %v71_v9  ;;  %v157_v44 = vsel %vm155_vm10, %v145_v33, 2102212464  ;;  %v161_v45 = vsel %vm155_vm10, %v148_v37, 920167782 }
  0x1f   :  { %v164_v46 = vsel %vm152_vm6, %v142_v24, %v145_v33  ;;  %v158_v47 = vsel %vm154_vm9, %v142_v24, %v157_v44  ;;  %v162_v48 = vsel %vm154_vm9, %v145_v33, %v161_v45  ;;  %v165_v49 = vsel %vm155_vm10, %v151_v38, 1326507024 }
  0x20   :  { %vm235_vm11 = vcmp.gt.s32.totalorder %v234_v35, 0  ;;  %v77_v26 = vadd.s32 536870912, %v76_v42  ;;  %v163_v50 = vsel %vm153_vm8, %v160_v41, %v162_v48  ;;  %v166_v52 = vsel %vm154_vm9, %v148_v37, %v165_v49 }
  0x21   :  { %v159_v53 = vsel %vm153_vm8, %v156_v40, %v158_v47  ;;  %v167_v54 = vsel %vm153_vm8, %v164_v46, %v166_v52  ;;  %v3805_v55 = vmul.u32.u64.low %v3747_v25, %v163_v50  ;;  %v3806_v56 = vmul.u32.u64.high %v3747_v25, %v163_v50, %v3805_v55 }
  0x22   :  { %v78_v57 = vshrl.u32 %v77_v26, 30  ;;  %v3810_v58 = vmul.u32.u64.low %v3747_v25, %v167_v54  ;;  %v3811_v59 = vmul.u32.u64.high %v3747_v25, %v167_v54, %v3810_v58  ;;  %v236_v60 = vsel %vm235_vm11, %v234_v35, 0 }
  0x23   :  { %v231_v61 = vand.u32 8388607, %v224_v23  ;;  %v238_v62 = vand.u32 31, %v236_v60  ;;  %v328_v63 = vand.u32 2147483647, %v3729_v3  ;;  %v175_v51 = vmul.u32 %v3747_v25, %v159_v53 }
  0x24   :  { %v79_v5 = vshll.u32 %v78_v57, 30  ;;  %v331_v7 = vand.u32 2139095040, %v3729_v3  ;;  %v102_v8 = vsub.s32 4, %v78_v57  ;;  %v178_v9 = vadd.s32 1, %v3806_v56 }
  0x25   :  { %vm177_vm13 = vc.u32 %v3811_v59, %v3805_v55  ;;  %v239_v11 = vsub.s32 32, %v238_v62  ;;  %v232_v15 = vor.u32 8388608, %v231_v61  ;;  %v3833_v16 = vand.u32 8388607, %v328_v63 }
  0x26   :  { %v3820_v10 = vsub.s32 %v76_v42, %v79_v5  ;;  %v179_v25 = vsel %vm177_vm13, %v178_v9, %v3806_v56  ;;  %v3836_v19 = vshrl.u32 %v236_v60, 5  ;;  %v332_v20 = vshrl.u32 %v331_v7, 23 }
  0x27   :  { %v180_v18 = vadd.s32 %v179_v25, %v175_v51  ;;  %v103_v21 = vsel %vm18_vm12, %v102_v8, %v78_v57  ;;  %v241_v4 = vshll.u32 %v3683_v28, %v238_v62  ;;  %v244_v22 = vshll.u32 %v3684_v30, %v238_v62 }
  0x28   :  { %v82_v17 = vsub.s32 0, %v3820_v10  ;;  %v250_v27 = vshll.u32 %v3686_v34, %v238_v62  ;;  %v242_v31 = vshrl.u32 %v3684_v30, %v239_v11  ;;  %v245_v33 = vshrl.u32 %v3685_v32, %v239_v11 }
  0x29   :  { %v181_v29 = vadd.s32 536870912, %v180_v18  ;;  %v247_v35 = vshll.u32 %v3685_v32, %v238_v62  ;;  %v248_v37 = vshrl.u32 %v3686_v34, %v239_v11  ;;  %v251_v38 = vshrl.u32 %v3687_v36, %v239_v11 }
  0x2a   :  { %v3385_v24 = vmin.u32 %v82_v17, %v3820_v10  ;;  %v3849_v39 = vshll.u32 %v232_v15, 8  ;;  %v72_v40 = vadd.s32 %v3780_v13, %v3777_v12  ;;  %v253_v42 = vshll.u32 %v3687_v36, %v238_v62 }
  0x2b   :  { %v254_v44 = vshrl.u32 %v3688_v43, %v239_v11  ;;  %v3857_v45 = vsel %vm3826_vm14, 0, %v103_v21  ;;  %v182_v46 = vshrl.u32 %v181_v29, 30  ;;  %v252_v47 = vor.u32 %v251_v38, %v250_v27 }
  0x2c   :  { %v84_v41 = vclz %v3385_v24  ;;  %v3396_v48 = vadd.s32 4294967169, %v332_v20  ;;  %v243_v26 = vor.u32 %v242_v31, %v241_v4  ;;  %v246_v50 = vor.u32 %v245_v33, %v244_v22 }
  0x2d   :  { %vm259_vm15 = vcmp.lt.s32.totalorder %v3836_v19, 4  ;;  %v183_v52 = vshll.u32 %v182_v46, 30  ;;  %v240_v12 = vshrl.u32 %v3683_v28, %v239_v11  ;;  %v249_v13 = vor.u32 %v248_v37, %v247_v35 }
  0x2e   :  { %v3386_v49 = vadd.s32 4294967294, %v84_v41  ;;  %vm256_vm0 = vcmp.lt.s32.totalorder %v3836_v19, 1  ;;  %v255_v53 = vor.u32 %v254_v44, %v253_v42  ;;  %vm258_vm2 = vcmp.lt.s32.totalorder %v3836_v19, 3 }
  0x2f   :  { %v265_v54 = vsel %vm259_vm15, %v252_v47, 920167782  ;;  %v3865_v57 = vsub.s32 %v180_v18, %v183_v52  ;;  %vm257_vm3 = vcmp.lt.s32.totalorder %v3836_v19, 2  ;;  %v261_v58 = vsel %vm259_vm15, %v249_v13, 2102212464 }
  0x30   :  { %vm3387_vm1 = vcmp.lt.s32.totalorder %v3386_v49, 0  ;;  %vm122_vm4 = vcmp.lt.s32.totalorder %v3707_v1, 0  ;;  %v264_v5 = vsel %vm256_vm0, %v243_v26, %v246_v50  ;;  %v260_v7 = vsel %vm256_vm0, %v240_v12, %v243_v26 }
  0x31   :  { %v87_v56 = vsel %vm3387_vm1, 0, %v3386_v49  ;;  %v186_v51 = vsub.s32 0, %v3865_v57  ;;  %v266_v8 = vsel %vm258_vm2, %v249_v13, %v265_v54  ;;  %v268_v9 = vsel %vm256_vm0, %v246_v50, %v249_v13 }
  0x32   :  { %v88_v60 = vsub.s32 32, %v87_v56  ;;  %v89_v61 = vshll.u32 %v3820_v10, %v87_v56  ;;  %v92_v62 = vsub.s32 4294967266, %v87_v56  ;;  %v262_v10 = vsel %vm258_vm2, %v246_v50, %v261_v58 }
  0x33   :  { %v269_v15 = vsel %vm259_vm15, %v255_v53, 1326507024  ;;  %vm3887_vm5 = vcmp.le.f32.partialorder %v120_v6, 0.7853982  ;;  %v3389_v18 = vmin.u32 %v186_v51, %v3865_v57  ;;  %v267_v20 = vsel %vm257_vm3, %v264_v5, %v266_v8 }
  0x34   :  { %v90_v11 = vshrl.u32 %v72_v40, %v88_v60  ;;  %v93_v25 = vadd.s32 127, %v92_v62  ;;  %v270_v21 = vsel %vm258_vm2, %v252_v47, %v269_v15  ;;  %v336_v4 = vor.u32 8388608, %v3833_v16 }
  0x35   :  { %v271_v24 = vsel %vm257_vm3, %v268_v9, %v270_v21  ;;  %v338_v29 = vadd.s32 1, %v3396_v48  ;;  %v109_v6 = vadd.s32 3, %v3857_v45  ;;  %v188_v31 = vclz %v3389_v18 }
  0x36   :  { %v91_v22 = vor.u32 %v90_v11, %v89_v61  ;;  %v94_v27 = vshll.u32 %v93_v25, 23  ;;  %v206_v33 = vsub.s32 4, %v182_v46  ;;  %v263_v35 = vsel %vm257_vm3, %v260_v7, %v262_v10 }
  0x37   :  { %v3903_v40 = vmul.u32.u64.low %v3849_v39, %v271_v24  ;;  %v3904_v41 = vmul.u32.u64.high %v3849_v39, %v271_v24, %v3903_v40  ;;  %v3390_v16 = vadd.s32 4294967294, %v188_v31  ;;  %vm339_vm6 = vcmp.gt.s32.totalorder %v338_v29, 0 }
  0x38   :  { %v95_v37 = vor.u32 4788187, %v94_v27  ;;  %v98_v38 = vcvt.s32.f32 %v91_v22  ;;  %v3907_v42 = vmul.u32.u64.low %v3849_v39, %v267_v20  ;;  %v3908_v44 = vmul.u32.u64.high %v3849_v39, %v267_v20, %v3907_v42 }
  0x39   :  { %v176_v48 = vadd.s32 %v3805_v55, %v3811_v59  ;;  %v340_v49 = vsel %vm339_vm6, %v338_v29, 0  ;;  %v3913_v19 = vshll.u32 %v336_v4, 8  ;;  %v3915_v26 = vand.u32 3, %v109_v6 }
  0x3a   :  { %v96_v47 = vand.u32 2147483647, %v95_v37  ;;  %vm3391_vm7 = vcmp.lt.s32.totalorder %v3390_v16, 0  ;;  %v207_v50 = vsel %vm122_vm4, %v206_v33, %v182_v46  ;;  %v342_v52 = vand.u32 31, %v340_v49 }
  0x3b   :  { %v191_v13 = vsel %vm3391_vm7, 0, %v3390_v16  ;;  %v279_v53 = vmul.u32 %v3849_v39, %v263_v35  ;;  %vm281_vm8 = vc.u32 %v3904_v41, %v3907_v42  ;;  %v282_v56 = vadd.s32 1, %v3908_v44 }
  0x3c   :  { %v99_v12 = vmul.f32 %v98_v38, %v96_v47  ;;  %v192_v54 = vsub.s32 32, %v191_v13  ;;  %v193_v55 = vshll.u32 %v3865_v57, %v191_v13  ;;  %v196_v59 = vsub.s32 4294967266, %v191_v13 }
  0x3d   :  { %v3926_v60 = vsel %vm3887_vm5, 0, %v207_v50  ;;  %v3928_v46 = vshrl.u32 %v340_v49, 5  ;;  %v343_v61 = vsub.s32 32, %v342_v52  ;;  %v283_v39 = vsel %vm281_vm8, %v282_v56, %v3908_v44 }
  0x3e   :  { %v100_v58 = vxor.u32 2147483648, %v99_v12  ;;  %v194_v62 = vshrl.u32 %v176_v48, %v192_v54  ;;  %v197_v5 = vadd.s32 127, %v196_v59  ;;  %v345_v51 = vshll.u32 %v3683_v28, %v342_v52 }
  0x3f   :  { %v284_v7 = vadd.s32 %v283_v39, %v279_v53  ;;  %v346_v8 = vshrl.u32 %v3684_v30, %v343_v61  ;;  %v348_v9 = vshll.u32 %v3684_v30, %v342_v52  ;;  %v349_v15 = vshrl.u32 %v3685_v32, %v343_v61 }
  0x40   :  { %v101_v57 = vsel %vm18_vm12, %v100_v58, %v99_v12  ;;  %v195_v25 = vor.u32 %v194_v62, %v193_v55  ;;  %v198_v10 = vshll.u32 %v197_v5, 23  ;;  %v351_v20 = vshll.u32 %v3685_v32, %v342_v52 }
  0x41   :  { %v104_v11 = vsel %vm3826_vm14, %v3702_v0, %v101_v57  ;;  %v285_v18 = vadd.s32 536870912, %v284_v7  ;;  %v352_v21 = vshrl.u32 %v3686_v34, %v343_v61  ;;  %v344_v27 = vshrl.u32 %v3683_v28, %v343_v61 }
  0x42   :  { %3614 = vcosq.f32 %v104_v11  ;;  %v199_v4 = vor.u32 4788187, %v198_v10  ;;  %v202_v22 = vcvt.s32.f32 %v195_v25  ;;  %v347_v29 = vor.u32 %v346_v8, %v345_v51 }
  0x43   :  { %3616 = vsinq.f32 %v104_v11  ;;  %v3943_v24 = vshrl.u32 %v285_v18, 30  ;;  %v354_v14 = vshll.u32 %v3686_v34, %v342_v52  ;;  %v355_v6 = vshrl.u32 %v3687_v36, %v343_v61 }
  0x44   :  { %v200_v31 = vand.u32 2147483647, %v199_v4  ;;  %v350_v33 = vor.u32 %v349_v15, %v348_v9  ;;  %v357_v35 = vshll.u32 %v3687_v36, %v342_v52  ;;  %v358_v37 = vshrl.u32 %v3688_v43, %v343_v61 }
  0x45   :  { %v287_v38 = vshll.u32 %v3943_v24, 30  ;;  %v353_v40 = vor.u32 %v352_v21, %v351_v20  ;;  %v356_v16 = vor.u32 %v355_v6, %v354_v14  ;;  %vm360_vm9 = vcmp.lt.s32.totalorder %v3928_v46, 1 }
  0x46   :  { %v203_v44 = vmul.f32 %v202_v22, %v200_v31  ;;  %v359_v47 = vor.u32 %v358_v37, %v357_v35  ;;  %vm363_vm10 = vcmp.lt.s32.totalorder %v3928_v46, 4  ;;  %v3953_v48 = vmul.f32 2.0, %v3702_v0 }
  0x47   :  { %vm112_vm11 = vcmp.eq.s32.totalorder %v3915_v26, 0  ;;  %v3956_v49 = vsub.s32 %v284_v7, %v287_v38  ;;  %vm362_vm12 = vcmp.lt.s32.totalorder %v3928_v46, 3  ;;  %v365_v50 = vsel %vm363_vm10, %v353_v40, 2102212464 }
  0x48   :  { %vm111_vm13 = vcmp.lt.s32.totalorder %v3915_v26, 2  ;;  %v204_v52 = vxor.u32 2147483648, %v203_v44  ;;  %v213_v12 = vadd.s32 3, %v3926_v60  ;;  %vm361_vm14 = vcmp.lt.s32.totalorder %v3928_v46, 2 }
  0x49   :  { %v368_v13 = vsel %vm360_vm9, %v347_v29, %v350_v33  ;;  %vm108_vm15 = vweird.f32 %v3702_v0  ;;  %v290_v53 = vsub.s32 0, %v3956_v49  ;;  %v364_v54 = vsel %vm360_vm9, %v344_v27, %v347_v29 }
  0x4a   :  { %v369_v55 = vsel %vm363_vm10, %v356_v16, 920167782  ;;  %v530_v59 = vand.u32 3, %v3857_v45  ;;  %v205_v56 = vsel %vm122_vm4, %v204_v52, %v203_v44  ;;  %v366_v58 = vsel %vm362_vm12, %v350_v33, %v365_v50 }
  0x4b   :  { %v370_v61 = vsel %vm362_vm12, %v353_v40, %v369_v55  ;;  %v373_v62 = vsel %vm363_vm10, %v359_v47, 1326507024  ;;  %v208_v5 = vsel %vm3887_vm5, %v3707_v1, %v205_v56  ;;  %v3393_v39 = vmin.u32 %v290_v53, %v3956_v49 }
  0x4c   :  { %v371_v45 = vsel %vm361_vm14, %v368_v13, %v370_v61  ;;  %v372_v51 = vsel %vm360_vm9, %v350_v33, %v353_v40  ;;  %3618 = vcosq.f32 %v208_v5  ;;  %v374_v57 = vsel %vm362_vm12, %v356_v16, %v373_v62 }
  0x4d   :  { %v3992_v7 = vmul.u32.u64.low %v3913_v19, %v371_v45  ;;  %v3993_v8 = vmul.u32.u64.high %v3913_v19, %v371_v45, %v3992_v7  ;;  %vm115_vm0 = vcmp.eq.s32.totalorder %v3915_v26, 2  ;;  %3620 = vsinq.f32 %v208_v5 }
  0x4e   :  { %v3997_v17 = vand.u32 3, %v213_v12  ;;  %v292_v9 = vclz %v3393_v39  ;;  %v280_v25 = vadd.s32 %v3907_v42, %v3904_v41  ;;  %v367_v10 = vsel %vm361_vm14, %v364_v54, %v366_v58 }
  0x4f   :  { %v3615_v11 = vpop.eup %3614  ;;  %v375_v15 = vsel %vm361_vm14, %v372_v51, %v374_v57  ;;  %v4006_v18 = vand.u32 3, %v3926_v60  ;;  %vm531_vm1 = vcmp.lt.s32.totalorder %v530_v59, 2  ;;  %vm532_vm2 = vcmp.eq.s32.totalorder %v530_v59, 0 }
  0x50   :  { %v3617_v20 = vpop.eup %3616  ;;  %v116_v21 = vxor.u32 2147483648, %v3615_v11  ;;  %v3394_v4 = vadd.s32 4294967294, %v292_v9  ;;  %v4009_v22 = vmul.u32.u64.low %v3913_v19, %v375_v15  ;;  %v4010_v27 = vmul.u32.u64.high %v3913_v19, %v375_v15, %v4009_v22 }
  0x51   :  { %v113_v29 = vxor.u32 2147483648, %v3617_v20  ;;  %vm535_vm3 = vcmp.eq.s32.totalorder %v530_v59, 2  ;;  %v386_v42 = vadd.s32 1, %v3993_v8  ;;  %v383_v6 = vmul.u32 %v3913_v19, %v367_v10 }
  0x52   :  { %v117_v41 = vsel %vm115_vm0, %v116_v21, %v3617_v20  ;;  %vm3395_vm4 = vcmp.lt.s32.totalorder %v3394_v4, 0  ;;  %v537_v46 = vsel %vm535_vm3, %v116_v21, %v3617_v20  ;;  %v310_v16 = vsub.s32 4, %v3943_v24 }
  0x53   :  { %v114_v60 = vsel %vm112_vm11, %v3615_v11, %v113_v29  ;;  %v295_v14 = vsel %vm3395_vm4, 0, %v3394_v4  ;;  %v534_v31 = vsel %vm532_vm2, %v3615_v11, %v113_v29  ;;  %vm385_vm5 = vc.u32 %v4010_v27, %v3992_v7 }
  0x54   :  { %v118_v33 = vsel %vm111_vm13, %v114_v60, %v117_v41  ;;  %v296_v35 = vsub.s32 32, %v295_v14  ;;  %v297_v37 = vshll.u32 %v3956_v49, %v295_v14  ;;  %v300_v38 = vsub.s32 4294967266, %v295_v14 }
  0x55   :  { %v119_v40 = vsel %vm108_vm15, nan, %v118_v33  ;;  %v538_v44 = vsel %vm531_vm1, %v534_v31, %v537_v46  ;;  %v387_v47 = vsel %vm385_vm5, %v386_v42, %v3993_v8  ;;  %vm212_vm6 = vweird.f32 %v3707_v1 }
  0x56   :  { %3400 = vst [vmem:[%s5391_s1 + $0x20] sm:$0xff] %v119_v40  ;;  %v298_v19 = vshrl.u32 %v280_v25, %v296_v35  ;;  %v301_v26 = vadd.s32 127, %v300_v38  ;;  %v539_v49 = vsel %vm108_vm15, nan, %v538_v44  ;;  %vm4036_vm7 = vcmp.le.f32.partialorder %v224_v23, 0.7853982 }
  0x57   :  { %vm226_vm8 = vcmp.lt.s32.totalorder %v3712_v2, 0  ;;  %v388_v52 = vadd.s32 %v387_v47, %v383_v6  ;;  %3420 = vst [vmem:[%s5391_s1 + $0x40] sm:$0xff] %v539_v49  ;;  %vm215_vm9 = vcmp.lt.s32.totalorder %v3997_v17, 2  ;;  %v861_v13 = vand.u32 2139095040, %v3953_v48 }
  0x58   :  { %v299_v12 = vor.u32 %v298_v19, %v297_v37  ;;  %v302_v0 = vshll.u32 %v301_v26, 23  ;;  %vm216_vm10 = vcmp.eq.s32.totalorder %v3997_v17, 0  ;;  %vm219_vm11 = vcmp.eq.s32.totalorder %v3997_v17, 2 }
  0x59   :  { %v311_v23 = vsel %vm226_vm8, %v310_v16, %v3943_v24  ;;  %v389_v53 = vadd.s32 536870912, %v388_v52  ;;  %v3619_v54 = vpop.eup %3618  ;;  %vm638_vm12 = vcmp.eq.s32.totalorder %v4006_v18, 2  ;;  %v862_v56 = vshrl.u32 %v861_v13, 23 }
  0x5a   :  { %v303_v55 = vor.u32 4788187, %v302_v0  ;;  %v306_v59 = vcvt.s32.f32 %v299_v12  ;;  %v3621_v58 = vpop.eup %3620  ;;  %v220_v61 = vxor.u32 2147483648, %v3619_v54  ;;  %vm635_vm13 = vcmp.eq.s32.totalorder %v4006_v18, 0 }
  0x5b   :  { %v390_v62 = vshrl.u32 %v389_v53, 30  ;;  %v858_v5 = vand.u32 2147483647, %v3953_v48  ;;  %v217_v39 = vxor.u32 2147483648, %v3621_v58  ;;  %vm634_vm14 = vcmp.lt.s32.totalorder %v4006_v18, 2 }
  0x5c   :  { %v304_v45 = vand.u32 2147483647, %v303_v55  ;;  %v3424_v51 = vadd.s32 4294967169, %v862_v56  ;;  %v221_v24 = vsel %vm219_vm11, %v220_v61, %v3621_v58  ;;  %v313_v57 = vsel %vm4036_vm7, 0, %v311_v23 }
  0x5d   :  { %v391_v8 = vshll.u32 %v390_v62, 30  ;;  %v640_v9 = vsel %vm638_vm12, %v220_v61, %v3621_v58  ;;  %v218_v11 = vsel %vm216_vm10, %v3619_v54, %v217_v39  ;;  %v637_v10 = vsel %vm635_vm13, %v3619_v54, %v217_v39 }
  0x5e   :  { %v307_v25 = vmul.f32 %v306_v59, %v304_v45  ;;  %v868_v15 = vadd.s32 1, %v3424_v51  ;;  %v222_v20 = vsel %vm215_vm9, %v218_v11, %v221_v24  ;;  %v641_v18 = vsel %vm634_vm14, %v637_v10, %v640_v9 }
  0x5f   :  { %v4063_v21 = vsub.s32 %v388_v52, %v391_v8  ;;  %v865_v4 = vand.u32 8388607, %v858_v5  ;;  %v223_v22 = vsel %vm212_vm6, nan, %v222_v20  ;;  %v642_v41 = vsel %vm212_vm6, nan, %v641_v18 }
  0x60   :  { %v308_v29 = vxor.u32 2147483648, %v307_v25  ;;  %3401 = vst [vmem:[%s5391_s1 + $0x28] sm:$0xff] %v223_v22  ;;  %v317_v42 = vadd.s32 3, %v313_v57  ;;  %3421 = vst [vmem:[%s5391_s1 + $0x48] sm:$0xff] %v642_v41  ;;  %vm869_vm15 = vcmp.gt.s32.totalorder %v868_v15, 0  ;;  %v414_v60 = vsub.s32 4, %v390_v62 }
  0x61   :  { %v394_v17 = vsub.s32 0, %v4063_v21  ;;  %v866_v31 = vor.u32 8388608, %v865_v4  ;;  %v870_v33 = vsel %vm869_vm15, %v868_v15, 0  ;;  %vm330_vm0 = vcmp.lt.s32.totalorder %v3729_v3, 0 }
  0x62   :  { %v309_v46 = vsel %vm226_vm8, %v308_v29, %v307_v25  ;;  %v4085_v35 = vshrl.u32 %v870_v33, 5  ;;  %v4088_v37 = vmul.f32 2.0, %v3707_v1  ;;  %v4090_v38 = vand.u32 3, %v317_v42 }
  0x63   :  { %v312_v14 = vsel %vm4036_vm7, %v3712_v2, %v309_v46  ;;  %v3397_v6 = vmin.u32 %v394_v17, %v4063_v21  ;;  %v4092_v16 = vand.u32 3, %v313_v57  ;;  %v384_v44 = vadd.s32 %v3992_v7, %v4010_v27 }
  0x64   :  { %3622 = vcosq.f32 %v312_v14  ;;  %v415_v19 = vsel %vm330_vm0, %v414_v60, %v390_v62  ;;  %v872_v26 = vand.u32 31, %v870_v33  ;;  %v962_v47 = vand.u32 2147483647, %v4088_v37 }
  0x65   :  { %3624 = vsinq.f32 %v312_v14  ;;  %v396_v40 = vclz %v3397_v6  ;;  %vm890_vm1 = vcmp.lt.s32.totalorder %v4085_v35, 1  ;;  %vm892_vm2 = vcmp.lt.s32.totalorder %v4085_v35, 3 }
  0x66   :  { %v4101_v1 = vshll.u32 %v866_v31, 8  ;;  %vm4105_vm3 = vcmp.le.f32.partialorder %v328_v63, 0.7853982  ;;  %v873_v7 = vsub.s32 32, %v872_v26  ;;  %v875_v27 = vshll.u32 %v3683_v28, %v872_v26 }
  0x67   :  { %v3398_v49 = vadd.s32 4294967294, %v396_v40  ;;  %v878_v52 = vshll.u32 %v3684_v30, %v872_v26  ;;  %v881_v12 = vshll.u32 %v3685_v32, %v872_v26  ;;  %vm891_vm4 = vcmp.lt.s32.totalorder %v4085_v35, 2 }
  0x68   :  { %vm323_vm5 = vcmp.eq.s32.totalorder %v4090_v38, 2  ;;  %vm741_vm7 = vcmp.eq.s32.totalorder %v4092_v16, 2  ;;  %v884_v0 = vshll.u32 %v3686_v34, %v872_v26  ;;  %v887_v63 = vshll.u32 %v3687_v36, %v872_v26 }
  0x69   :  { %vm3399_vm6 = vcmp.lt.s32.totalorder %v3398_v49, 0  ;;  %v965_v13 = vand.u32 2139095040, %v4088_v37  ;;  %vm320_vm8 = vcmp.eq.s32.totalorder %v4090_v38, 0  ;;  %vm738_vm9 = vcmp.eq.s32.totalorder %v4092_v16, 0 }
  0x6a   :  { %v399_v23 = vsel %vm3399_vm6, 0, %v3398_v49  ;;  %v874_v53 = vshrl.u32 %v3683_v28, %v873_v7  ;;  %v876_v54 = vshrl.u32 %v3684_v30, %v873_v7  ;;  %v879_v55 = vshrl.u32 %v3685_v32, %v873_v7 }
  0x6b   :  { %vm319_vm10 = vcmp.lt.s32.totalorder %v4090_v38, 2  ;;  %v400_v59 = vsub.s32 32, %v399_v23  ;;  %v401_v56 = vshll.u32 %v4063_v21, %v399_v23  ;;  %v404_v58 = vsub.s32 4294967266, %v399_v23 }
  0x6c   :  { %vm737_vm11 = vcmp.lt.s32.totalorder %v4092_v16, 2  ;;  %v882_v61 = vshrl.u32 %v3686_v34, %v873_v7  ;;  %vm316_vm12 = vweird.f32 %v3712_v2  ;;  %v877_v62 = vor.u32 %v876_v54, %v875_v27 }
  0x6d   :  { %v880_v39 = vor.u32 %v879_v55, %v878_v52  ;;  %v885_v45 = vshrl.u32 %v3687_v36, %v873_v7  ;;  %v888_v51 = vshrl.u32 %v3688_v43, %v873_v7  ;;  %v402_v24 = vshrl.u32 %v384_v44, %v400_v59 }
  0x6e   :  { %v405_v57 = vadd.s32 127, %v404_v58  ;;  %v883_v8 = vor.u32 %v882_v61, %v881_v12  ;;  %vm893_vm13 = vcmp.lt.s32.totalorder %v4085_v35, 4  ;;  %v894_v25 = vsel %vm890_vm1, %v874_v53, %v877_v62 }
  0x6f   :  { %v886_v9 = vor.u32 %v885_v45, %v884_v0  ;;  %v889_v11 = vor.u32 %v888_v51, %v887_v63  ;;  %v966_v10 = vshrl.u32 %v965_v13, 23  ;;  %v403_v15 = vor.u32 %v402_v24, %v401_v56 }
  0x70   :  { %v406_v20 = vshll.u32 %v405_v57, 23  ;;  %v895_v21 = vsel %vm893_vm13, %v883_v8, 2102212464  ;;  %v898_v18 = vsel %vm890_vm1, %v877_v62, %v880_v39  ;;  %v902_v29 = vsel %vm890_vm1, %v880_v39, %v883_v8 }
  0x71   :  { %v896_v4 = vsel %vm892_vm2, %v880_v39, %v895_v21  ;;  %v899_v22 = vsel %vm893_vm13, %v886_v9, 920167782  ;;  %v903_v41 = vsel %vm893_vm13, %v889_v11, 1326507024  ;;  %v3623_v42 = vpop.eup %3622  ;;  %v410_v46 = vcvt.s32.f32 %v403_v15 }
  0x72   :  { %v407_v17 = vor.u32 4788187, %v406_v20  ;;  %v417_v60 = vsel %vm4105_vm3, 0, %v415_v19  ;;  %v900_v14 = vsel %vm892_vm2, %v883_v8, %v899_v22  ;;  %v3625_v6 = vpop.eup %3624  ;;  %v324_v31 = vxor.u32 2147483648, %v3623_v42 }
  0x73   :  { %v897_v33 = vsel %vm891_vm4, %v894_v25, %v896_v4  ;;  %v904_v40 = vsel %vm892_vm2, %v886_v9, %v903_v41  ;;  %v3428_v44 = vadd.s32 4294967169, %v966_v10  ;;  %v321_v26 = vxor.u32 2147483648, %v3625_v6 }
  0x74   :  { %v408_v49 = vand.u32 2147483647, %v407_v17  ;;  %v901_v7 = vsel %vm891_vm4, %v898_v18, %v900_v14  ;;  %v905_v19 = vsel %vm891_vm4, %v902_v29, %v904_v40  ;;  %v325_v27 = vsel %vm323_vm5, %v324_v31, %v3625_v6 }
  0x75   :  { %v743_v52 = vsel %vm741_vm7, %v324_v31, %v3625_v6  ;;  %v4156_v12 = vmul.u32.u64.low %v4101_v1, %v905_v19  ;;  %v4157_v0 = vmul.u32.u64.high %v4101_v1, %v905_v19, %v4156_v12  ;;  %v322_v63 = vsel %vm320_vm8, %v3623_v42, %v321_v26 }
  0x76   :  { %v411_v13 = vmul.f32 %v410_v46, %v408_v49  ;;  %v740_v23 = vsel %vm738_vm9, %v3623_v42, %v321_v26  ;;  %v969_v35 = vand.u32 8388607, %v962_v47  ;;  %v326_v53 = vsel %vm319_vm10, %v322_v63, %v325_v27 }
  0x77   :  { %v744_v54 = vsel %vm737_vm11, %v740_v23, %v743_v52  ;;  %v4170_v55 = vmul.u32.u64.low %v4101_v1, %v901_v7  ;;  %v4171_v59 = vmul.u32.u64.high %v4101_v1, %v901_v7, %v4170_v55  ;;  %v327_v56 = vsel %vm316_vm12, nan, %v326_v53 }
  0x78   :  { %v412_v58 = vxor.u32 2147483648, %v411_v13  ;;  %v745_v61 = vsel %vm316_vm12, nan, %v744_v54  ;;  %v972_v62 = vadd.s32 1, %v3428_v44  ;;  %3402 = vst [vmem:[%s5391_s1 + $0x30] sm:$0xff] %v327_v56  ;;  %v421_v38 = vadd.s32 3, %v417_v60 }
  0x79   :  { %3422 = vst [vmem:[%s5391_s1 + $0x50] sm:$0xff] %v745_v61  ;;  %v913_v39 = vmul.u32 %v4101_v1, %v897_v33  ;;  %vm915_vm14 = vc.u32 %v4157_v0, %v4170_v55  ;;  %v916_v51 = vadd.s32 1, %v4171_v59  ;;  %v970_v24 = vor.u32 8388608, %v969_v35 }
  0x7a   :  { %v413_v16 = vsel %vm330_vm0, %v412_v58, %v411_v13  ;;  %vm973_vm15 = vcmp.gt.s32.totalorder %v972_v62, 0  ;;  %v4193_v8 = vand.u32 3, %v417_v60  ;;  %v4195_v11 = vand.u32 3, %v421_v38 }
  0x7b   :  { %v416_v45 = vsel %vm4105_vm3, %v3729_v3, %v413_v16  ;;  %v974_v57 = vsel %vm973_vm15, %v972_v62, 0  ;;  %v917_v1 = vsel %vm915_vm14, %v916_v51, %v4171_v59  ;;  %v4205_v4 = vshll.u32 %v970_v24, 8 }
  0x7c   :  { %3626 = vcosq.f32 %v416_v45  ;;  %v976_v9 = vand.u32 31, %v974_v57  ;;  %v4198_v25 = vshrl.u32 %v974_v57, 5  ;;  %v918_v10 = vadd.s32 %v917_v1, %v913_v39 }
  0x7d   :  { %3628 = vsinq.f32 %v416_v45  ;;  %v4210_v42 = vmul.f32 2.0, %v3712_v2  ;;  %vm840_vm2 = vcmp.lt.s32.totalorder %v4193_v8, 2  ;;  %v4222_v2 = vld [vmem:[%s5391_s1 + $0x18] sm:$0xff]  ;;  %vm860_vm5 = vcmp.lt.s32.totalorder %v3953_v48, 0 }
  0x7e   :  { %v977_v15 = vsub.s32 32, %v976_v9  ;;  %v979_v50 = vshll.u32 %v3683_v28, %v976_v9  ;;  %v982_v3 = vshll.u32 %v3684_v30, %v976_v9  ;;  %v985_v20 = vshll.u32 %v3685_v32, %v976_v9 }
  0x7f   :  { %v988_v21 = vshll.u32 %v3686_v34, %v976_v9  ;;  %v991_v18 = vshll.u32 %v3687_v36, %v976_v9  ;;  %v919_v22 = vadd.s32 536870912, %v918_v10  ;;  %vm994_vm0 = vcmp.lt.s32.totalorder %v4198_v25, 1 }
  0x80   :  { %v980_v29 = vshrl.u32 %v3684_v30, %v977_v15  ;;  %v983_v41 = vshrl.u32 %v3685_v32, %v977_v15  ;;  %v986_v17 = vshrl.u32 %v3686_v34, %v977_v15  ;;  %v989_v46 = vshrl.u32 %v3687_v36, %v977_v15 }
  0x81   :  { %v992_v60 = vshrl.u32 %v3688_v43, %v977_v15  ;;  %v920_v14 = vshrl.u32 %v919_v22, 30  ;;  %vm996_vm1 = vcmp.lt.s32.totalorder %v4198_v25, 3  ;;  %vm997_vm3 = vcmp.lt.s32.totalorder %v4198_v25, 4 }
  0x82   :  { %v981_v6 = vor.u32 %v980_v29, %v979_v50  ;;  %v984_v31 = vor.u32 %v983_v41, %v982_v3  ;;  %v987_v33 = vor.u32 %v986_v17, %v985_v20  ;;  %v990_v40 = vor.u32 %v989_v46, %v988_v21 }
  0x83   :  { %v993_v44 = vor.u32 %v992_v60, %v991_v18  ;;  %vm420_vm4 = vweird.f32 %v4222_v2  ;;  %v921_v26 = vshll.u32 %v920_v14, 30  ;;  %v978_v49 = vshrl.u32 %v3683_v28, %v977_v15 }
  0x84   :  { %vm995_vm6 = vcmp.lt.s32.totalorder %v4198_v25, 2  ;;  %v1002_v7 = vsel %vm994_vm0, %v981_v6, %v984_v31  ;;  %v999_v19 = vsel %vm997_vm3, %v987_v33, 2102212464  ;;  %v1003_v27 = vsel %vm997_vm3, %v990_v40, 920167782 }
  0x85   :  { %v1006_v52 = vsel %vm994_vm0, %v984_v31, %v987_v33  ;;  %v1007_v12 = vsel %vm997_vm3, %v993_v44, 1326507024  ;;  %vm427_vm7 = vcmp.eq.s32.totalorder %v4195_v11, 2  ;;  %vm844_vm8 = vcmp.eq.s32.totalorder %v4193_v8, 2 }
  0x86   :  { %v4234_v63 = vsub.s32 %v918_v10, %v921_v26  ;;  %v1004_v13 = vsel %vm996_vm1, %v987_v33, %v1003_v27  ;;  %vm4240_vm9 = vcmp.le.f32.partialorder %v858_v5, 0.7853982  ;;  %v944_v35 = vsub.s32 4, %v920_v14 }
  0x87   :  { %v1005_v53 = vsel %vm995_vm6, %v1002_v7, %v1004_v13  ;;  %v1008_v54 = vsel %vm996_vm1, %v990_v40, %v1007_v12  ;;  %v1069_v59 = vand.u32 2139095040, %v4210_v42  ;;  %v998_v58 = vsel %vm994_vm0, %v978_v49, %v981_v6 }
  0x88   :  { %v924_v56 = vsub.s32 0, %v4234_v63  ;;  %v1000_v5 = vsel %vm996_vm1, %v984_v31, %v999_v19  ;;  %v1009_v61 = vsel %vm995_vm6, %v1006_v52, %v1008_v54  ;;  %vm424_vm10 = vcmp.eq.s32.totalorder %v4195_v11, 0 }
  0x89   :  { %v3627_v62 = vpop.eup %3626  ;;  %v4257_v38 = vmul.u32.u64.low %v4205_v4, %v1009_v61  ;;  %v4258_v16 = vmul.u32.u64.high %v4205_v4, %v1009_v61, %v4257_v38  ;;  %v4261_v39 = vmul.u32.u64.low %v4205_v4, %v1005_v53  ;;  %v4262_v45 = vmul.u32.u64.high %v4205_v4, %v1005_v53, %v4261_v39 }
  0x8a   :  { %v3629_v51 = vpop.eup %3628  ;;  %v428_v24 = vxor.u32 2147483648, %v3627_v62  ;;  %vm841_vm11 = vcmp.eq.s32.totalorder %v4193_v8, 0  ;;  %v3425_v57 = vmin.u32 %v924_v56, %v4234_v63  ;;  %vm423_vm12 = vcmp.lt.s32.totalorder %v4195_v11, 2 }
  0x8b   :  { %v425_v9 = vxor.u32 2147483648, %v3629_v51  ;;  %v914_v1 = vadd.s32 %v4170_v55, %v4157_v0  ;;  %v1001_v10 = vsel %vm995_vm6, %v998_v58, %v1000_v5  ;;  %v1070_v20 = vshrl.u32 %v1069_v59, 23 }
  0x8c   :  { %v429_v15 = vsel %vm427_vm7, %v428_v24, %v3629_v51  ;;  %v846_v50 = vsel %vm844_vm8, %v428_v24, %v3629_v51  ;;  %v926_v3 = vclz %v3425_v57  ;;  %v945_v22 = vsel %vm860_vm5, %v944_v35, %v920_v14 }
  0x8d   :  { %v426_v21 = vsel %vm424_vm10, %v3627_v62, %v425_v9  ;;  %v843_v18 = vsel %vm841_vm11, %v3627_v62, %v425_v9  ;;  %v4279_v29 = vmul.f32 2.0, %v4222_v2  ;;  %v1017_v11 = vmul.u32 %v4205_v4, %v1001_v10 }
  0x8e   :  { %v430_v0 = vsel %vm423_vm12, %v426_v21, %v429_v15  ;;  %v847_v55 = vsel %vm840_vm2, %v843_v18, %v846_v50  ;;  %v3426_v25 = vadd.s32 4294967294, %v926_v3  ;;  %vm1019_vm13 = vc.u32 %v4258_v16, %v4261_v39 }
  0x8f   :  { %v431_v41 = vsel %vm420_vm4, nan, %v430_v0  ;;  %v848_v17 = vsel %vm420_vm4, nan, %v847_v55  ;;  %v1020_v46 = vadd.s32 1, %v4262_v45  ;;  %v4298_v8 = vsel %vm4240_vm9, 0, %v945_v22 }
  0x90   :  { %3403 = vst [vmem:[%s5391_s1 + $0x38] sm:$0xff] %v431_v41  ;;  %3423 = vst [vmem:[%s5391_s1 + $0x58] sm:$0xff] %v848_v17  ;;  %vm3427_vm14 = vcmp.lt.s32.totalorder %v3426_v25, 0  ;;  %v1066_v4 = vand.u32 2147483647, %v4210_v42  ;;  %v3432_v60 = vadd.s32 4294967169, %v1070_v20 }
  0x91   :  { %v929_v14 = vsel %vm3427_vm14, 0, %v3426_v25  ;;  %v1021_v6 = vsel %vm1019_vm13, %v1020_v46, %v4262_v45  ;;  %v1173_v31 = vand.u32 2139095040, %v4279_v29  ;;  %v951_v49 = vadd.s32 3, %v4298_v8 }
  0x92   :  { %v930_v33 = vsub.s32 32, %v929_v14  ;;  %v931_v40 = vshll.u32 %v4234_v63, %v929_v14  ;;  %v934_v44 = vsub.s32 4294967266, %v929_v14  ;;  %v1022_v26 = vadd.s32 %v1021_v6, %v1017_v11 }
  0x93   :  { %v1076_v7 = vadd.s32 1, %v3432_v60  ;;  %v1073_v12 = vand.u32 8388607, %v1066_v4  ;;  %v1174_v13 = vshrl.u32 %v1173_v31, 23  ;;  %v4307_v56 = vand.u32 3, %v951_v49 }
  0x94   :  { %v932_v19 = vshrl.u32 %v914_v1, %v930_v33  ;;  %v935_v27 = vadd.s32 127, %v934_v44  ;;  %v1023_v52 = vadd.s32 536870912, %v1022_v26  ;;  %vm964_vm0 = vcmp.lt.s32.totalorder %v4088_v37, 0 }
  0x95   :  { %vm1077_vm15 = vcmp.gt.s32.totalorder %v1076_v7, 0  ;;  %v4311_v63 = vadd.s32 %v4261_v39, %v4258_v16  ;;  %v1074_v38 = vor.u32 8388608, %v1073_v12  ;;  %v1170_v24 = vand.u32 2147483647, %v4279_v29 }
  0x96   :  { %v933_v35 = vor.u32 %v932_v19, %v931_v40  ;;  %v936_v53 = vshll.u32 %v935_v27, 23  ;;  %v1024_v54 = vshrl.u32 %v1023_v52, 30  ;;  %v1078_v59 = vsel %vm1077_vm15, %v1076_v7, 0 }
  0x97   :  { %v1080_v58 = vand.u32 31, %v1078_v59  ;;  %v1079_v45 = vshrl.u32 %v1078_v59, 5  ;;  %v3436_v57 = vadd.s32 4294967169, %v1174_v13  ;;  %vm4323_vm1 = vcmp.le.f32.partialorder %v962_v47, 0.7853982 }
  0x98   :  { %v937_v5 = vor.u32 4788187, %v936_v53  ;;  %v940_v61 = vcvt.s32.f32 %v933_v35  ;;  %v1025_v62 = vshll.u32 %v1024_v54, 30  ;;  %v1048_v10 = vsub.s32 4, %v1024_v54 }
  0x99   :  { %v1081_v51 = vsub.s32 32, %v1080_v58  ;;  %v1083_v15 = vshll.u32 %v3683_v28, %v1080_v58  ;;  %v1086_v16 = vshll.u32 %v3684_v30, %v1080_v58  ;;  %v1092_v3 = vshll.u32 %v3686_v34, %v1080_v58 }
  0x9a   :  { %v938_v9 = vand.u32 2147483647, %v937_v5  ;;  %v4314_v1 = vsub.s32 %v1022_v26, %v1025_v62  ;;  %v1089_v22 = vshll.u32 %v3685_v32, %v1080_v58  ;;  %v1095_v25 = vshll.u32 %v3687_v36, %v1080_v58 }
  0x9b   :  { %v1084_v50 = vshrl.u32 %v3684_v30, %v1081_v51  ;;  %v1087_v39 = vshrl.u32 %v3685_v32, %v1081_v51  ;;  %v1090_v0 = vshrl.u32 %v3686_v34, %v1081_v51  ;;  %v1093_v55 = vshrl.u32 %v3687_v36, %v1081_v51 }
  0x9c   :  { %v941_v20 = vmul.f32 %v940_v61, %v938_v9  ;;  %v1028_v18 = vsub.s32 0, %v4314_v1  ;;  %v4332_v11 = vshll.u32 %v1074_v38, 8  ;;  %v1180_v41 = vadd.s32 1, %v3436_v57 }
  0x9d   :  { %v1049_v47 = vsel %vm964_vm0, %v1048_v10, %v1024_v54  ;;  %v1082_v60 = vshrl.u32 %v3683_v28, %v1081_v51  ;;  %v1085_v14 = vor.u32 %v1084_v50, %v1083_v15  ;;  %v1088_v6 = vor.u32 %v1087_v39, %v1086_v16 }
  0x9e   :  { %v942_v17 = vxor.u32 2147483648, %v941_v20  ;;  %v3429_v46 = vmin.u32 %v1028_v18, %v4314_v1  ;;  %v1094_v31 = vor.u32 %v1093_v55, %v1092_v3  ;;  %v1096_v33 = vshrl.u32 %v3688_v43, %v1081_v51 }
  0x9f   :  { %v1091_v26 = vor.u32 %v1090_v0, %v1089_v22  ;;  %vm1098_vm2 = vcmp.lt.s32.totalorder %v1079_v45, 1  ;;  %vm1099_vm3 = vcmp.lt.s32.totalorder %v1079_v45, 2  ;;  %vm1100_vm4 = vcmp.lt.s32.totalorder %v1079_v45, 3 }
  0xa0   :  { %v943_v40 = vsel %vm860_vm5, %v942_v17, %v941_v20  ;;  %v1030_v44 = vclz %v3429_v46  ;;  %v1097_v7 = vor.u32 %v1096_v33, %v1095_v25  ;;  %vm1101_vm6 = vcmp.lt.s32.totalorder %v1079_v45, 4 }
  0xa1   :  { %v946_v49 = vsel %vm4240_vm9, %v3953_v48, %v943_v40  ;;  %v1102_v27 = vsel %vm1098_vm2, %v1082_v60, %v1085_v14  ;;  %v1103_v52 = vsel %vm1101_vm6, %v1091_v26, 2102212464  ;;  %v1106_v12 = vsel %vm1098_vm2, %v1085_v14, %v1088_v6 }
  0xa2   :  { %3630 = vcosq.f32 %v946_v49  ;;  %v3430_v19 = vadd.s32 4294967294, %v1030_v44  ;;  %v1107_v13 = vsel %vm1101_vm6, %v1094_v31, 920167782  ;;  %v1104_v35 = vsel %vm1100_vm4, %v1088_v6, %v1103_v52 }
  0xa3   :  { %3632 = vsinq.f32 %v946_v49  ;;  %v1108_v53 = vsel %vm1100_vm4, %v1091_v26, %v1107_v13  ;;  %v1110_v23 = vsel %vm1098_vm2, %v1088_v6, %v1091_v26  ;;  %v4351_v59 = vsel %vm4323_vm1, 0, %v1049_v47 }
  0xa4   :  { %vm3431_vm5 = vcmp.lt.s32.totalorder %v3430_v19, 0  ;;  %v1109_v58 = vsel %vm1099_vm3, %v1106_v12, %v1108_v53  ;;  %v1111_v5 = vsel %vm1101_vm6, %v1097_v7, 1326507024  ;;  %v1105_v57 = vsel %vm1099_vm3, %v1102_v27, %v1104_v35 }
  0xa5   :  { %v1033_v54 = vsel %vm3431_vm5, 0, %v3430_v19  ;;  %v1112_v51 = vsel %vm1100_vm4, %v1094_v31, %v1111_v5  ;;  %v4359_v10 = vmul.u32.u64.low %v4332_v11, %v1109_v58  ;;  %v4360_v15 = vmul.u32.u64.high %v4332_v11, %v1109_v58, %v4359_v10 }
  0xa6   :  { %v1034_v61 = vsub.s32 32, %v1033_v54  ;;  %v1035_v62 = vshll.u32 %v4314_v1, %v1033_v54  ;;  %v1038_v38 = vsub.s32 4294967266, %v1033_v54  ;;  %v1113_v9 = vsel %vm1099_vm3, %v1110_v23, %v1112_v51 }
  0xa7   :  { %v4365_v39 = vmul.u32.u64.low %v4332_v11, %v1113_v9  ;;  %v4366_v3 = vmul.u32.u64.high %v4332_v11, %v1113_v9, %v4365_v39  ;;  %vm953_vm7 = vcmp.lt.s32.totalorder %v4307_v56, 2  ;;  %v1055_v1 = vadd.s32 3, %v4351_v59 }
  0xa8   :  { %v1036_v50 = vshrl.u32 %v4311_v63, %v1034_v61  ;;  %v1039_v16 = vadd.s32 127, %v1038_v38  ;;  %v1177_v45 = vand.u32 8388607, %v1170_v24  ;;  %vm1181_vm8 = vcmp.gt.s32.totalorder %v1180_v41, 0 }
  0xa9   :  { %vm950_vm9 = vweird.f32 %v3953_v48  ;;  %v1121_v22 = vmul.u32 %v4332_v11, %v1105_v57  ;;  %v1182_v63 = vsel %vm1181_vm8, %v1180_v41, 0  ;;  %vm954_vm10 = vcmp.eq.s32.totalorder %v4307_v56, 0 }
  0xaa   :  { %v1037_v20 = vor.u32 %v1036_v50, %v1035_v62  ;;  %v1040_v18 = vshll.u32 %v1039_v16, 23  ;;  %vm957_vm11 = vcmp.eq.s32.totalorder %v4307_v56, 2  ;;  %v1124_v0 = vadd.s32 1, %v4360_v15 }
  0xab   :  { %v1184_v55 = vand.u32 31, %v1182_v63  ;;  %vm1123_vm12 = vc.u32 %v4366_v3, %v4359_v10  ;;  %v4380_v46 = vand.u32 3, %v4298_v8  ;;  %v4382_v47 = vand.u32 3, %v1055_v1 }
  0xac   :  { %v1041_v25 = vor.u32 4788187, %v1040_v18  ;;  %v1044_v17 = vcvt.s32.f32 %v1037_v20  ;;  %v1125_v11 = vsel %vm1123_vm12, %v1124_v0, %v4360_v15  ;;  %v1178_v41 = vor.u32 8388608, %v1177_v45 }
  0xad   :  { %v1185_v60 = vsub.s32 32, %v1184_v55  ;;  %v1126_v6 = vadd.s32 %v1125_v11, %v1121_v22  ;;  %v4385_v31 = vshrl.u32 %v1182_v63, 5  ;;  %v1187_v33 = vshll.u32 %v3683_v28, %v1184_v55 }
  0xae   :  { %v1042_v14 = vand.u32 2147483647, %v1041_v25  ;;  %v1190_v26 = vshll.u32 %v3684_v30, %v1184_v55  ;;  %v1196_v49 = vshll.u32 %v3686_v34, %v1184_v55  ;;  %v1193_v53 = vshll.u32 %v3685_v32, %v1184_v55 }
  0xaf   :  { %v4388_v40 = vpop.eup %3630  ;;  %v1188_v44 = vshrl.u32 %v3684_v30, %v1185_v60  ;;  %v1191_v8 = vshrl.u32 %v3685_v32, %v1185_v60  ;;  %v1127_v52 = vadd.s32 536870912, %v1126_v6  ;;  %v1197_v12 = vshrl.u32 %v3687_v36, %v1185_v60 }
  0xb0   :  { %v3633_v7 = vpop.eup %3632  ;;  %v958_v19 = vxor.u32 2147483648, %v4388_v40  ;;  %v1045_v27 = vmul.f32 %v1044_v17, %v1042_v14  ;;  %v1186_v35 = vshrl.u32 %v3683_v28, %v1185_v60  ;;  %v1194_v23 = vshrl.u32 %v3686_v34, %v1185_v60 }
  0xb1   :  { %v955_v13 = vxor.u32 2147483648, %v3633_v7  ;;  %v4401_v5 = vshrl.u32 %v1127_v52, 30  ;;  %v1189_v61 = vor.u32 %v1188_v44, %v1187_v33  ;;  %v1192_v38 = vor.u32 %v1191_v8, %v1190_v26 }
  0xb2   :  { %v959_v54 = vsel %vm957_vm11, %v958_v19, %v3633_v7  ;;  %v1046_v58 = vxor.u32 2147483648, %v1045_v27  ;;  %v1199_v51 = vshll.u32 %v3687_v36, %v1184_v55  ;;  %v1200_v57 = vshrl.u32 %v3688_v43, %v1185_v60 }
  0xb3   :  { %v956_v62 = vsel %vm954_vm10, %v4388_v40, %v955_v13  ;;  %v1129_v50 = vshll.u32 %v4401_v5, 30  ;;  %v1198_v16 = vor.u32 %v1197_v12, %v1196_v49  ;;  %vm1202_vm13 = vcmp.lt.s32.totalorder %v4385_v31, 1  ;;  %v4457_v49 = vld [vmem:[%s5391_s1] sm:$0xff] }
  0xb4   :  { %v960_v9 = vsel %vm953_vm7, %v956_v62, %v959_v54  ;;  %v1047_v15 = vsel %vm964_vm0, %v1046_v58, %v1045_v27  ;;  %v1201_v45 = vor.u32 %v1200_v57, %v1199_v51  ;;  %v1195_v20 = vor.u32 %v1194_v23, %v1193_v53 }
  0xb5   :  { %v961_v39 = vsel %vm950_vm9, nan, %v960_v9  ;;  %v1050_v1 = vsel %vm4323_vm1, %v4088_v37, %v1047_v15  ;;  %v4422_v56 = vsub.s32 %v1126_v6, %v1129_v50  ;;  %v4424_v18 = vshll.u32 %v1178_v41, 8 }
  0xb6   :  { %3440 = vst [vmem:[%s5391_s1 + $0x60] sm:$0xff] %v961_v39  ;;  %3634 = vcosq.f32 %v1050_v1  ;;  %vm1204_vm14 = vcmp.lt.s32.totalorder %v4385_v31, 3  ;;  %vm1205_vm15 = vcmp.lt.s32.totalorder %v4385_v31, 4  ;;  %vm1374_vm0 = vcmp.eq.s32.totalorder %v4380_v46, 0 }
  0xb7   :  { %3636 = vsinq.f32 %v1050_v1  ;;  %v1132_v21 = vsub.s32 0, %v4422_v56  ;;  %vm1203_vm1 = vcmp.lt.s32.totalorder %v4385_v31, 2  ;;  %v1207_v22 = vsel %vm1205_vm15, %v1195_v20, 2102212464 }
  0xb8   :  { %v1210_v63 = vsel %vm1202_vm13, %v1189_v61, %v1192_v38  ;;  %v1206_v0 = vsel %vm1202_vm13, %v1186_v35, %v1189_v61  ;;  %v1208_v55 = vsel %vm1204_vm14, %v1192_v38, %v1207_v22  ;;  %v1211_v25 = vsel %vm1205_vm15, %v1198_v16, 920167782 }
  0xb9   :  { %v1215_v17 = vsel %vm1205_vm15, %v1201_v45, 1326507024  ;;  %v3433_v11 = vmin.u32 %v1132_v21, %v4422_v56  ;;  %v1212_v41 = vsel %vm1204_vm14, %v1195_v20, %v1211_v25  ;;  %v1214_v60 = vsel %vm1202_vm13, %v1192_v38, %v1195_v20 }
  0xba   :  { %vm1377_vm2 = vcmp.eq.s32.totalorder %v4380_v46, 2  ;;  %v1213_v14 = vsel %vm1203_vm1, %v1210_v63, %v1212_v41  ;;  %v1216_v6 = vsel %vm1204_vm14, %v1198_v16, %v1215_v17  ;;  %vm1373_vm3 = vcmp.lt.s32.totalorder %v4380_v46, 2 }
  0xbb   :  { %v1376_v33 = vsel %vm1374_vm0, %v4388_v40, %v955_v13  ;;  %v1134_v44 = vclz %v3433_v11  ;;  %v1152_v26 = vsub.s32 4, %v4401_v5  ;;  %v1209_v8 = vsel %vm1203_vm1, %v1206_v0, %v1208_v55 }
  0xbc   :  { %v4460_v27 = vmul.f32 4.0, %v4457_v49  ;;  %v1217_v52 = vsel %vm1203_vm1, %v1214_v60, %v1216_v6  ;;  %v4465_v46 = vmul.u32.u64.low %v4424_v18, %v1213_v14  ;;  %v4466_v40 = vmul.u32.u64.high %v4424_v18, %v1213_v14, %v4465_v46 }
  0xbd   :  { %v1379_v12 = vsel %vm1377_vm2, %v958_v19, %v3633_v7  ;;  %vm1054_vm4 = vweird.f32 %v4088_v37  ;;  %v3434_v13 = vadd.s32 4294967294, %v1134_v44  ;;  %vm1057_vm6 = vcmp.lt.s32.totalorder %v4382_v47, 2 }
  0xbe   :  { %v4471_v35 = vmul.u32.u64.low %v4424_v18, %v1217_v52  ;;  %v4472_v53 = vmul.u32.u64.high %v4424_v18, %v1217_v52, %v4471_v35  ;;  %v1380_v23 = vsel %vm1373_vm3, %v1376_v33, %v1379_v12  ;;  %vm1068_vm5 = vcmp.lt.s32.totalorder %v4210_v42, 0 }
  0xbf   :  { %v1381_v31 = vsel %vm950_vm9, nan, %v1380_v23  ;;  %v1475_v54 = vand.u32 3, %v4351_v59  ;;  %vm1058_vm7 = vcmp.eq.s32.totalorder %v4382_v47, 0  ;;  %vm1061_vm8 = vcmp.eq.s32.totalorder %v4382_v47, 2 }
  0xc0   :  { %vm4483_vm10 = vcmp.le.f32.partialorder %v1066_v4, 0.7853982  ;;  %v1122_v19 = vadd.s32 %v4359_v10, %v4366_v3  ;;  %vm3435_vm11 = vcmp.lt.s32.totalorder %v3434_v13, 0  ;;  %3460 = vst [vmem:[%s5391_s1 + $0x80] sm:$0xff] %v1381_v31  ;;  %v1225_v59 = vmul.u32 %v4424_v18, %v1209_v8 }
  0xc1   :  { %v1137_v48 = vsel %vm3435_vm11, 0, %v3434_v13  ;;  %v1228_v58 = vadd.s32 1, %v4466_v40  ;;  %v1703_v61 = vand.u32 2139095040, %v4460_v27  ;;  %v1153_v10 = vsel %vm1068_vm5, %v1152_v26, %v4401_v5 }
  0xc2   :  { %v1138_v62 = vsub.s32 32, %v1137_v48  ;;  %v1139_v4 = vshll.u32 %v4422_v56, %v1137_v48  ;;  %v1142_v38 = vsub.s32 4294967266, %v1137_v48  ;;  %vm1227_vm9 = vc.u32 %v4472_v53, %v4465_v46 }
  0xc3   :  { %v3635_v3 = vpop.eup %3634  ;;  %vm1476_vm12 = vcmp.lt.s32.totalorder %v1475_v54, 2  ;;  %vm1477_vm13 = vcmp.eq.s32.totalorder %v1475_v54, 0  ;;  %vm1480_vm14 = vcmp.eq.s32.totalorder %v1475_v54, 2  ;;  %v1229_v50 = vsel %vm1227_vm9, %v1228_v58, %v4466_v40 }
  0xc4   :  { %v3637_v51 = vpop.eup %3636  ;;  %v1062_v57 = vxor.u32 2147483648, %v3635_v3  ;;  %v1140_v9 = vshrl.u32 %v1122_v19, %v1138_v62  ;;  %v1143_v15 = vadd.s32 127, %v1142_v38  ;;  %v1230_v39 = vadd.s32 %v1229_v50, %v1225_v59  ;;  %v4546_v62 = vld [vmem:[%s5391_s1 + $0x8] sm:$0xff] }
  0xc5   :  { %v1059_v16 = vxor.u32 2147483648, %v3637_v51  ;;  %v1700_v1 = vand.u32 2147483647, %v4460_v27  ;;  %v1704_v45 = vshrl.u32 %v1703_v61, 23  ;;  %v1155_v60 = vsel %vm4483_vm10, 0, %v1153_v10 }
  0xc6   :  { %v1063_v5 = vsel %vm1061_vm8, %v1062_v57, %v3637_v51  ;;  %v1141_v56 = vor.u32 %v1140_v9, %v1139_v4  ;;  %v1144_v20 = vshll.u32 %v1143_v15, 23  ;;  %v1482_v18 = vsel %vm1480_vm14, %v1062_v57, %v3637_v51 }
  0xc7   :  { %v1060_v21 = vsel %vm1058_vm7, %v3635_v3, %v1059_v16  ;;  %v1231_v22 = vadd.s32 536870912, %v1230_v39  ;;  %v1479_v63 = vsel %vm1477_vm13, %v3635_v3, %v1059_v16  ;;  %v3464_v0 = vadd.s32 4294967169, %v1704_v45 }
  0xc8   :  { %v1064_v55 = vsel %vm1057_vm6, %v1060_v21, %v1063_v5  ;;  %v1145_v25 = vor.u32 4788187, %v1144_v20  ;;  %v1148_v17 = vcvt.s32.f32 %v1141_v56  ;;  %v1483_v11 = vsel %vm1476_vm12, %v1479_v63, %v1482_v18 }
  0xc9   :  { %v1065_v41 = vsel %vm1054_vm4, nan, %v1064_v55  ;;  %v4515_v14 = vshrl.u32 %v1231_v22, 30  ;;  %v1484_v6 = vsel %vm1054_vm4, nan, %v1483_v11  ;;  %v1710_v33 = vadd.s32 1, %v3464_v0 }
  0xca   :  { %3441 = vst [vmem:[%s5391_s1 + $0x68] sm:$0xff] %v1065_v41  ;;  %v1146_v47 = vand.u32 2147483647, %v1145_v25  ;;  %3461 = vst [vmem:[%s5391_s1 + $0x88] sm:$0xff] %v1484_v6  ;;  %v1707_v26 = vand.u32 8388607, %v1700_v1  ;;  %v1226_v58 = vadd.s32 %v4465_v46, %v4472_v53  ;;  %vm1158_vm9 = vweird.f32 %v4210_v42 }
  0xcb   :  { %v1233_v44 = vshll.u32 %v4515_v14, 30  ;;  %v1159_v52 = vadd.s32 3, %v1155_v60  ;;  %vm1711_vm15 = vcmp.gt.s32.totalorder %v1710_v33, 0  ;;  %v4535_v19 = vand.u32 3, %v1155_v60 }
  0xcc   :  { %v1149_v8 = vmul.f32 %v1148_v17, %v1146_v47  ;;  %v1712_v40 = vsel %vm1711_vm15, %v1710_v33, 0  ;;  %v1708_v23 = vor.u32 8388608, %v1707_v26  ;;  %v4549_v4 = vmul.f32 4.0, %v4546_v62 }
  0xcd   :  { %v4528_v37 = vsub.s32 %v1230_v39, %v1233_v44  ;;  %v1714_v13 = vand.u32 31, %v1712_v40  ;;  %v4533_v54 = vand.u32 3, %v1159_v52  ;;  %v1256_v38 = vsub.s32 4, %v4515_v14 }
  0xce   :  { %v1150_v12 = vxor.u32 2147483648, %v1149_v8  ;;  %vm1172_vm0 = vcmp.lt.s32.totalorder %v4279_v29, 0  ;;  %v1713_v53 = vshrl.u32 %v1712_v40, 5  ;;  %v4555_v3 = vshll.u32 %v1708_v23, 8 }
  0xcf   :  { %v1236_v35 = vsub.s32 0, %v4528_v37  ;;  %v1715_v48 = vsub.s32 32, %v1714_v13  ;;  %v1717_v10 = vshll.u32 %v3683_v28, %v1714_v13  ;;  %v1720_v7 = vshll.u32 %v3684_v30, %v1714_v13 }
  0xd0   :  { %v1151_v31 = vsel %vm1068_vm5, %v1150_v12, %v1149_v8  ;;  %v1723_v15 = vshll.u32 %v3685_v32, %v1714_v13  ;;  %v1726_v39 = vshll.u32 %v3686_v34, %v1714_v13  ;;  %v1729_v20 = vshll.u32 %v3687_v36, %v1714_v13 }
  0xd1   :  { %v1154_v59 = vsel %vm4483_vm10, %v4210_v42, %v1151_v31  ;;  %v3437_v61 = vmin.u32 %v1236_v35, %v4528_v37  ;;  %v1716_v51 = vshrl.u32 %v3683_v28, %v1715_v48  ;;  %v1718_v57 = vshrl.u32 %v3684_v30, %v1715_v48  ;;  %v4633_v42 = vld [vmem:[%s5391_s1 + $0x10] sm:$0xff] }
  0xd2   :  { %3638 = vcosq.f32 %v1154_v59  ;;  %v1721_v9 = vshrl.u32 %v3685_v32, %v1715_v48  ;;  %v1724_v16 = vshrl.u32 %v3686_v34, %v1715_v48  ;;  %v1727_v45 = vshrl.u32 %v3687_v36, %v1715_v48 }
  0xd3   :  { %3640 = vsinq.f32 %v1154_v59  ;;  %v1238_v46 = vclz %v3437_v61  ;;  %v1719_v5 = vor.u32 %v1718_v57, %v1717_v10  ;;  %v1730_v18 = vshrl.u32 %v3688_v43, %v1715_v48 }
  0xd4   :  { %v1722_v56 = vor.u32 %v1721_v9, %v1720_v7  ;;  %vm1165_vm1 = vcmp.eq.s32.totalorder %v4533_v54, 2  ;;  %vm1583_vm3 = vcmp.eq.s32.totalorder %v4535_v19, 2  ;;  %v1725_v21 = vor.u32 %v1724_v16, %v1723_v15 }
  0xd5   :  { %v3438_v50 = vadd.s32 4294967294, %v1238_v46  ;;  %v1728_v22 = vor.u32 %v1727_v45, %v1726_v39  ;;  %vm1732_vm4 = vcmp.lt.s32.totalorder %v1713_v53, 1  ;;  %vm1162_vm6 = vcmp.eq.s32.totalorder %v4533_v54, 0 }
  0xd6   :  { %vm4571_vm5 = vcmp.le.f32.partialorder %v1170_v24, 0.7853982  ;;  %v1731_v55 = vor.u32 %v1730_v18, %v1729_v20  ;;  %vm1733_vm7 = vcmp.lt.s32.totalorder %v1713_v53, 2  ;;  %vm1734_vm8 = vcmp.lt.s32.totalorder %v1713_v53, 3 }
  0xd7   :  { %vm3439_vm2 = vcmp.lt.s32.totalorder %v3438_v50, 0  ;;  %vm1161_vm10 = vcmp.lt.s32.totalorder %v4533_v54, 2  ;;  %vm1735_vm11 = vcmp.lt.s32.totalorder %v1713_v53, 4  ;;  %v1736_v41 = vsel %vm1732_vm4, %v1716_v51, %v1719_v5 }
  0xd8   :  { %v1241_v0 = vsel %vm3439_vm2, 0, %v3438_v50  ;;  %v1737_v60 = vsel %vm1735_vm11, %v1725_v21, 2102212464  ;;  %v1740_v24 = vsel %vm1732_vm4, %v1719_v5, %v1722_v56  ;;  %v1741_v6 = vsel %vm1735_vm11, %v1728_v22, 920167782 }
  0xd9   :  { %v1242_v25 = vsub.s32 32, %v1241_v0  ;;  %v1243_v17 = vshll.u32 %v4528_v37, %v1241_v0  ;;  %v1246_v11 = vsub.s32 4294967266, %v1241_v0  ;;  %v1738_v44 = vsel %vm1734_vm8, %v1722_v56, %v1737_v60 }
  0xda   :  { %v1742_v26 = vsel %vm1734_vm8, %v1725_v21, %v1741_v6  ;;  %v1257_v8 = vsel %vm1172_vm0, %v1256_v38, %v4515_v14  ;;  %v1744_v37 = vsel %vm1732_vm4, %v1722_v56, %v1725_v21  ;;  %v1745_v40 = vsel %vm1735_vm11, %v1731_v55, 1326507024 }
  0xdb   :  { %v1244_v47 = vshrl.u32 %v1226_v58, %v1242_v25  ;;  %v1247_v33 = vadd.s32 127, %v1246_v11  ;;  %v1743_v52 = vsel %vm1733_vm7, %v1740_v24, %v1742_v26  ;;  %v1739_v35 = vsel %vm1733_vm7, %v1736_v41, %v1738_v44 }
  0xdc   :  { %v1746_v23 = vsel %vm1734_vm8, %v1728_v22, %v1745_v40  ;;  %v4591_v48 = vmul.u32.u64.low %v4555_v3, %v1743_v52  ;;  %v4592_v59 = vmul.u32.u64.high %v4555_v3, %v1743_v52, %v4591_v48  ;;  %v1807_v58 = vand.u32 2139095040, %v4549_v4 }
  0xdd   :  { %v1245_v12 = vor.u32 %v1244_v47, %v1243_v17  ;;  %v1248_v13 = vshll.u32 %v1247_v33, 23  ;;  %v1747_v31 = vsel %vm1733_vm7, %v1744_v37, %v1746_v23  ;;  %vm1579_vm12 = vcmp.lt.s32.totalorder %v4535_v19, 2 }
  0xde   :  { %v4596_v10 = vmul.u32.u64.low %v4555_v3, %v1747_v31  ;;  %v4597_v7 = vmul.u32.u64.high %v4555_v3, %v1747_v31, %v4596_v10  ;;  %vm1580_vm13 = vcmp.eq.s32.totalorder %v4535_v19, 0  ;;  %v1808_v53 = vshrl.u32 %v1807_v58, 23 }
  0xdf   :  { %v3639_v14 = vpop.eup %3638  ;;  %v1249_v61 = vor.u32 4788187, %v1248_v13  ;;  %v1252_v38 = vcvt.s32.f32 %v1245_v12  ;;  %v1259_v15 = vsel %vm4571_vm5, 0, %v1257_v8  ;;  %v1755_v50 = vmul.u32 %v4555_v3, %v1739_v35 }
  0xe0   :  { %v3641_v46 = vpop.eup %3640  ;;  %v1166_v51 = vxor.u32 2147483648, %v3639_v14  ;;  %v1758_v45 = vadd.s32 1, %v4592_v59  ;;  %v3468_v5 = vadd.s32 4294967169, %v1808_v53  ;;  %v1804_v21 = vand.u32 2147483647, %v4549_v4 }
  0xe1   :  { %v1163_v57 = vxor.u32 2147483648, %v3641_v46  ;;  %v1250_v9 = vand.u32 2147483647, %v1249_v61  ;;  %v1263_v3 = vadd.s32 3, %v1259_v15  ;;  %vm1757_vm14 = vc.u32 %v4597_v7, %v4591_v48 }
  0xe2   :  { %v1167_v16 = vsel %vm1165_vm1, %v1166_v51, %v3641_v46  ;;  %v1585_v39 = vsel %vm1583_vm3, %v1166_v51, %v3641_v46  ;;  %v1759_v11 = vsel %vm1757_vm14, %v1758_v45, %v4592_v59  ;;  %v1814_v19 = vadd.s32 1, %v3468_v5 }
  0xe3   :  { %v1164_v56 = vsel %vm1162_vm6, %v3639_v14, %v1163_v57  ;;  %v1253_v20 = vmul.f32 %v1252_v38, %v1250_v9  ;;  %v1582_v18 = vsel %vm1580_vm13, %v3639_v14, %v1163_v57  ;;  %v1760_v54 = vadd.s32 %v1759_v11, %v1755_v50 }
  0xe4   :  { %v1168_v22 = vsel %vm1161_vm10, %v1164_v56, %v1167_v16  ;;  %v1586_v0 = vsel %vm1579_vm12, %v1582_v18, %v1585_v39  ;;  %v4636_v60 = vmul.f32 4.0, %v4633_v42  ;;  %v1811_v47 = vand.u32 8388607, %v1804_v21 }
  0xe5   :  { %v1169_v55 = vsel %vm1158_vm9, nan, %v1168_v22  ;;  %v1254_v25 = vxor.u32 2147483648, %v1253_v20  ;;  %v1587_v17 = vsel %vm1158_vm9, nan, %v1586_v0  ;;  %v1761_v6 = vadd.s32 536870912, %v1760_v54 }
  0xe6   :  { %3442 = vst [vmem:[%s5391_s1 + $0x70] sm:$0xff] %v1169_v55  ;;  %3462 = vst [vmem:[%s5391_s1 + $0x90] sm:$0xff] %v1587_v17  ;;  %vm1815_vm15 = vcmp.gt.s32.totalorder %v1814_v19, 0  ;;  %v4643_v33 = vand.u32 3, %v1263_v3  ;;  %v4645_v44 = vand.u32 3, %v1259_v15  ;;  %v4649_v40 = vadd.s32 %v4591_v48, %v4597_v7 }
  0xe7   :  { %v1255_v41 = vsel %vm1172_vm0, %v1254_v25, %v1253_v20  ;;  %v1816_v26 = vsel %vm1815_vm15, %v1814_v19, 0  ;;  %v1762_v8 = vshrl.u32 %v1761_v6, 30  ;;  %v1908_v37 = vand.u32 2147483647, %v4636_v60 }
  0xe8   :  { %v1258_v24 = vsel %vm4571_vm5, %v4279_v29, %v1255_v41  ;;  %v1818_v52 = vand.u32 31, %v1816_v26  ;;  %v1911_v63 = vand.u32 2139095040, %v4636_v60  ;;  %v4653_v12 = vmul.f32 4.0, %v4222_v2 }
  0xe9   :  { %3642 = vcosq.f32 %v1258_v24  ;;  %v1763_v13 = vshll.u32 %v1762_v8, 30  ;;  %v1812_v35 = vor.u32 8388608, %v1811_v47  ;;  %v1817_v59 = vshrl.u32 %v1816_v26, 5 }
  0xea   :  { %3644 = vsinq.f32 %v1258_v24  ;;  %v1819_v23 = vsub.s32 32, %v1818_v52  ;;  %v1821_v31 = vshll.u32 %v3683_v28, %v1818_v52  ;;  %v1824_v58 = vshll.u32 %v3684_v30, %v1818_v52 }
  0xeb   :  { %v1827_v14 = vshll.u32 %v3685_v32, %v1818_v52  ;;  %v1830_v61 = vshll.u32 %v3686_v34, %v1818_v52  ;;  %vm1269_vm0 = vcmp.eq.s32.totalorder %v4643_v33, 2  ;;  %vm1686_vm1 = vcmp.eq.s32.totalorder %v4645_v44, 2 }
  0xec   :  { %vm1702_vm2 = vcmp.lt.s32.totalorder %v4460_v27, 0  ;;  %v4662_v2 = vsub.s32 %v1760_v54, %v1763_v13  ;;  %v1822_v48 = vshrl.u32 %v3684_v30, %v1819_v23  ;;  %v1833_v38 = vshll.u32 %v3687_v36, %v1818_v52 }
  0xed   :  { %v4668_v10 = vand.u32 8388607, %v1908_v37  ;;  %vm1266_vm3 = vcmp.eq.s32.totalorder %v4643_v33, 0  ;;  %vm1683_vm4 = vcmp.eq.s32.totalorder %v4645_v44, 0  ;;  %v1825_v7 = vshrl.u32 %v3685_v32, %v1819_v23 }
  0xee   :  { %v1828_v46 = vshrl.u32 %v3686_v34, %v1819_v23  ;;  %v1831_v51 = vshrl.u32 %v3687_v36, %v1819_v23  ;;  %v1912_v53 = vshrl.u32 %v1911_v63, 23  ;;  %vm1265_vm6 = vcmp.lt.s32.totalorder %v4643_v33, 2 }
  0xef   :  { %vm1682_vm5 = vcmp.lt.s32.totalorder %v4645_v44, 2  ;;  %v1766_v57 = vsub.s32 0, %v4662_v2  ;;  %v1820_v9 = vshrl.u32 %v3683_v28, %v1819_v23  ;;  %v1823_v15 = vor.u32 %v1822_v48, %v1821_v31 }
  0xf0   :  { %v1834_v50 = vshrl.u32 %v3688_v43, %v1819_v23  ;;  %vm1262_vm7 = vweird.f32 %v4279_v29  ;;  %v1826_v16 = vor.u32 %v1825_v7, %v1824_v58  ;;  %v1829_v39 = vor.u32 %v1828_v46, %v1827_v14 }
  0xf1   :  { %v1832_v45 = vor.u32 %v1831_v51, %v1830_v61  ;;  %vm1836_vm8 = vcmp.lt.s32.totalorder %v1817_v59, 1  ;;  %v3465_v5 = vmin.u32 %v1766_v57, %v4662_v2  ;;  %v4682_v20 = vshll.u32 %v1812_v35, 8 }
  0xf2   :  { %v1835_v56 = vor.u32 %v1834_v50, %v1833_v38  ;;  %v1916_v18 = vor.u32 8388608, %v4668_v10  ;;  %v1786_v22 = vsub.s32 4, %v1762_v8  ;;  %vm1838_vm10 = vcmp.lt.s32.totalorder %v1817_v59, 3 }
  0xf3   :  { %vm1839_vm11 = vcmp.lt.s32.totalorder %v1817_v59, 4  ;;  %v3472_v3 = vadd.s32 4294967169, %v1912_v53  ;;  %v1768_v0 = vclz %v3465_v5  ;;  %vm1837_vm9 = vcmp.lt.s32.totalorder %v1817_v59, 2 }
  0xf4   :  { %v1840_v55 = vsel %vm1836_vm8, %v1820_v9, %v1823_v15  ;;  %v1844_v25 = vsel %vm1836_vm8, %v1823_v15, %v1826_v16  ;;  %v1841_v17 = vsel %vm1839_vm11, %v1829_v39, 2102212464  ;;  %v1845_v11 = vsel %vm1839_vm11, %v1832_v45, 920167782 }
  0xf5   :  { %v1848_v54 = vsel %vm1836_vm8, %v1826_v16, %v1829_v39  ;;  %v1849_v19 = vsel %vm1839_vm11, %v1835_v56, 1326507024  ;;  %v3466_v24 = vadd.s32 4294967294, %v1768_v0  ;;  %v1842_v6 = vsel %vm1838_vm10, %v1826_v16, %v1841_v17 }
  0xf6   :  { %v3643_v41 = vpop.eup %3642  ;;  %v1846_v47 = vsel %vm1838_vm10, %v1829_v39, %v1845_v11  ;;  %v1850_v26 = vsel %vm1838_vm10, %v1832_v45, %v1849_v19  ;;  %v1787_v13 = vsel %vm1702_vm2, %v1786_v22, %v1762_v8  ;;  %v1843_v35 = vsel %vm1837_vm9, %v1840_v55, %v1842_v6 }
  0xf7   :  { %v3645_v52 = vpop.eup %3644  ;;  %v1270_v63 = vxor.u32 2147483648, %v3643_v41  ;;  %v1851_v23 = vsel %vm1837_vm9, %v1848_v54, %v1850_v26  ;;  %vm3467_vm12 = vcmp.lt.s32.totalorder %v3466_v24, 0  ;;  %v1847_v10 = vsel %vm1837_vm9, %v1844_v25, %v1846_v47 }
  0xf8   :  { %v1267_v31 = vxor.u32 2147483648, %v3645_v52  ;;  %v4690_v58 = vmul.u32.u64.low %v4682_v20, %v1851_v23  ;;  %v4691_v14 = vmul.u32.u64.high %v4682_v20, %v1851_v23, %v4690_v58  ;;  %v1771_v38 = vsel %vm3467_vm12, 0, %v3466_v24 }
  0xf9   :  { %v1271_v61 = vsel %vm1269_vm0, %v1270_v63, %v3645_v52  ;;  %v1688_v48 = vsel %vm1686_vm1, %v1270_v63, %v3645_v52  ;;  %v1772_v46 = vsub.s32 32, %v1771_v38  ;;  %v1773_v51 = vshll.u32 %v4662_v2, %v1771_v38 }
  0xfa   :  { %v1268_v8 = vsel %vm1266_vm3, %v3643_v41, %v1267_v31  ;;  %v1685_v7 = vsel %vm1683_vm4, %v3643_v41, %v1267_v31  ;;  %v1776_v9 = vsub.s32 4294967266, %v1771_v38  ;;  %v1918_v15 = vadd.s32 1, %v3472_v3 }
  0xfb   :  { %v1272_v53 = vsel %vm1265_vm6, %v1268_v8, %v1271_v61  ;;  %v1689_v57 = vsel %vm1682_vm5, %v1685_v7, %v1688_v48  ;;  %v1774_v16 = vshrl.u32 %v4649_v40, %v1772_v46  ;;  %v2015_v39 = vand.u32 2139095040, %v4653_v12 }
  0xfc   :  { %v1273_v59 = vsel %vm1262_vm7, nan, %v1272_v53  ;;  %v1690_v50 = vsel %vm1262_vm7, nan, %v1689_v57  ;;  %v1777_v33 = vadd.s32 127, %v1776_v9  ;;  %vm1919_vm13 = vcmp.gt.s32.totalorder %v1918_v15, 0 }
  0xfd   :  { %3443 = vst [vmem:[%s5391_s1 + $0x78] sm:$0xff] %v1273_v59  ;;  %3463 = vst [vmem:[%s5391_s1 + $0x98] sm:$0xff] %v1690_v50  ;;  %v4720_v44 = vmul.u32.u64.low %v4682_v20, %v1847_v10  ;;  %v4721_v2 = vmul.u32.u64.high %v4682_v20, %v1847_v10, %v4720_v44  ;;  %vm4726_vm14 = vcmp.le.f32.partialorder %v1700_v1, 0.7853982  ;;  %v1775_v40 = vor.u32 %v1774_v16, %v1773_v51 }
  0xfe   :  { %v1920_v45 = vsel %vm1919_vm13, %v1918_v15, 0  ;;  %v2016_v5 = vshrl.u32 %v2015_v39, 23  ;;  %v1778_v56 = vshll.u32 %v1777_v33, 23  ;;  %v4732_v22 = vsel %vm4726_vm14, 0, %v1787_v13 }
  0xff   :  { %v4734_v3 = vshll.u32 %v1916_v18, 8  ;;  %v2012_v0 = vand.u32 2147483647, %v4653_v12  ;;  %v1859_v55 = vmul.u32 %v4682_v20, %v1843_v35  ;;  %vm1861_vm15 = vc.u32 %v4691_v14, %v4720_v44 }
 0x100   :  { %v1921_v1 = vshrl.u32 %v1920_v45, 5  ;;  %v1922_v25 = vand.u32 31, %v1920_v45  ;;  %v1779_v17 = vor.u32 4788187, %v1778_v56  ;;  %v1782_v11 = vcvt.s32.f32 %v1775_v40 }
 0x101   :  { %v1862_v54 = vadd.s32 1, %v4721_v2  ;;  %v3476_v19 = vadd.s32 4294967169, %v2016_v5  ;;  %v1793_v29 = vadd.s32 3, %v4732_v22  ;;  %vm4789_vm5 = vcmp.le.f32.partialorder %v1804_v21, 0.7853982 }
 0x102   :  { %v1923_v41 = vsub.s32 32, %v1922_v25  ;;  %v1925_v24 = vshll.u32 %v3683_v28, %v1922_v25  ;;  %v1928_v18 = vshll.u32 %v3684_v30, %v1922_v25  ;;  %v1931_v6 = vshll.u32 %v3685_v32, %v1922_v25 }
 0x103   :  { %v1780_v47 = vand.u32 2147483647, %v1779_v17  ;;  %v1863_v20 = vsel %vm1861_vm15, %v1862_v54, %v4721_v2  ;;  %v1934_v26 = vshll.u32 %v3686_v34, %v1922_v25  ;;  %v1937_v52 = vshll.u32 %v3687_v36, %v1922_v25 }
 0x104   :  { %v1864_v63 = vadd.s32 %v1863_v20, %v1859_v55  ;;  %v1926_v13 = vshrl.u32 %v3684_v30, %v1923_v41  ;;  %v1929_v35 = vshrl.u32 %v3685_v32, %v1923_v41  ;;  %vm1940_vm0 = vcmp.lt.s32.totalorder %v1921_v1, 1 }
 0x105   :  { %v1783_v23 = vmul.f32 %v1782_v11, %v1780_v47  ;;  %v1932_v31 = vshrl.u32 %v3686_v34, %v1923_v41  ;;  %v1935_v58 = vshrl.u32 %v3687_v36, %v1923_v41  ;;  %v1938_v61 = vshrl.u32 %v3688_v43, %v1923_v41 }
 0x106   :  { %v1865_v48 = vadd.s32 536870912, %v1864_v63  ;;  %v1924_v38 = vshrl.u32 %v3683_v28, %v1923_v41  ;;  %v1927_v10 = vor.u32 %v1926_v13, %v1925_v24  ;;  %v1930_v8 = vor.u32 %v1929_v35, %v1928_v18 }
 0x107   :  { %v1784_v7 = vxor.u32 2147483648, %v1783_v23  ;;  %v1933_v46 = vor.u32 %v1932_v31, %v1931_v6  ;;  %v1936_v51 = vor.u32 %v1935_v58, %v1934_v26  ;;  %v1939_v53 = vor.u32 %v1938_v61, %v1937_v52 }
 0x108   :  { %v1866_v57 = vshrl.u32 %v1865_v48, 30  ;;  %vm1941_vm1 = vcmp.lt.s32.totalorder %v1921_v1, 2  ;;  %vm1942_vm3 = vcmp.lt.s32.totalorder %v1921_v1, 3  ;;  %vm1943_vm4 = vcmp.lt.s32.totalorder %v1921_v1, 4 }
 0x109   :  { %v1785_v9 = vsel %vm1702_vm2, %v1784_v7, %v1783_v23  ;;  %v1945_v15 = vsel %vm1943_vm4, %v1933_v46, 2102212464  ;;  %v1948_v59 = vsel %vm1940_vm0, %v1927_v10, %v1930_v8  ;;  %v1949_v50 = vsel %vm1943_vm4, %v1936_v51, 920167782 }
 0x10a   :  { %v1788_v16 = vsel %vm4726_vm14, %v4460_v27, %v1785_v9  ;;  %v1867_v39 = vshll.u32 %v1866_v57, 30  ;;  %v1944_v33 = vsel %vm1940_vm0, %v1924_v38, %v1927_v10  ;;  %v1952_v2 = vsel %vm1940_vm0, %v1930_v8, %v1933_v46 }
 0x10b   :  { %3646 = vcosq.f32 %v1788_v16  ;;  %v1946_v40 = vsel %vm1942_vm3, %v1930_v8, %v1945_v15  ;;  %v1950_v45 = vsel %vm1942_vm3, %v1933_v46, %v1949_v50  ;;  %v1953_v5 = vsel %vm1943_vm4, %v1939_v53, 1326507024 }
 0x10c   :  { %3648 = vsinq.f32 %v1788_v16  ;;  %v4763_v56 = vsub.s32 %v1864_v63, %v1867_v39  ;;  %v1890_v55 = vsub.s32 4, %v1866_v57  ;;  %v1951_v25 = vsel %vm1941_vm1, %v1948_v59, %v1950_v45 }
 0x10d   :  { %v1954_v17 = vsel %vm1942_vm3, %v1936_v51, %v1953_v5  ;;  %v4769_v11 = vmul.u32.u64.low %v4734_v3, %v1951_v25  ;;  %v4770_v54 = vmul.u32.u64.high %v4734_v3, %v1951_v25, %v4769_v11  ;;  %v1947_v24 = vsel %vm1941_vm1, %v1944_v33, %v1946_v40 }
 0x10e   :  { %v1870_v41 = vsub.s32 0, %v4763_v56  ;;  %v1955_v18 = vsel %vm1941_vm1, %v1952_v2, %v1954_v17  ;;  %v2019_v6 = vand.u32 8388607, %v2012_v0  ;;  %vm1806_vm2 = vcmp.lt.s32.totalorder %v4549_v4, 0 }
 0x10f   :  { %v4779_v47 = vmul.u32.u64.low %v4734_v3, %v1955_v18  ;;  %v4780_v20 = vmul.u32.u64.high %v4734_v3, %v1955_v18, %v4779_v47  ;;  %v2022_v26 = vadd.s32 1, %v3476_v19  ;;  %v1891_v63 = vsel %vm1806_vm2, %v1890_v55, %v1866_v57 }
 0x110   :  { %v3469_v52 = vmin.u32 %v1870_v41, %v4763_v56  ;;  %v1794_v13 = vand.u32 3, %v1793_v29  ;;  %v1963_v35 = vmul.u32 %v4734_v3, %v1947_v24  ;;  %v1966_v1 = vadd.s32 1, %v4770_v54 }
 0x111   :  { %vm2023_vm6 = vcmp.gt.s32.totalorder %v2022_v26, 0  ;;  %v2020_v58 = vor.u32 8388608, %v2019_v6  ;;  %v4795_v19 = vsel %vm4789_vm5, 0, %v1891_v63  ;;  %vm1965_vm7 = vc.u32 %v4780_v20, %v4769_v11 }
 0x112   :  { %v1872_v31 = vclz %v3469_v52  ;;  %v2024_v61 = vsel %vm2023_vm6, %v2022_v26, 0  ;;  %vm1792_vm8 = vweird.f32 %v4460_v27  ;;  %v1967_v48 = vsel %vm1965_vm7, %v1966_v1, %v4770_v54 }
 0x113   :  { %v2026_v38 = vand.u32 31, %v2024_v61  ;;  %vm1795_vm10 = vcmp.lt.s32.totalorder %v1794_v13, 2  ;;  %vm1796_vm11 = vcmp.eq.s32.totalorder %v1794_v13, 0  ;;  %vm1799_vm9 = vcmp.eq.s32.totalorder %v1794_v13, 2 }
 0x114   :  { %v3470_v3 = vadd.s32 4294967294, %v1872_v31  ;;  %v1968_v21 = vadd.s32 %v1967_v48, %v1963_v35  ;;  %v1860_v10 = vadd.s32 %v4720_v44, %v4691_v14  ;;  %v4803_v8 = vadd.s32 3, %v4795_v19 }
 0x115   :  { %v4805_v7 = vshll.u32 %v2020_v58, 8  ;;  %v2027_v53 = vsub.s32 32, %v2026_v38  ;;  %v4808_v57 = vand.u32 3, %v4732_v22  ;;  %v4814_v14 = vadd.s32 %v4769_v11, %v4780_v20 }
 0x116   :  { %vm3471_vm12 = vcmp.lt.s32.totalorder %v3470_v3, 0  ;;  %v1969_v51 = vadd.s32 536870912, %v1968_v21  ;;  %v4821_v33 = vshrl.u32 %v2024_v61, 5  ;;  %v2029_v22 = vshll.u32 %v3683_v28, %v2026_v38 }
 0x117   :  { %v1875_v46 = vsel %vm3471_vm12, 0, %v3470_v3  ;;  %v2032_v5 = vshll.u32 %v3684_v30, %v2026_v38  ;;  %v2030_v25 = vshrl.u32 %v3684_v30, %v2027_v53  ;;  %v2035_v29 = vshll.u32 %v3685_v32, %v2026_v38 }
 0x118   :  { %v4810_v9 = vpop.eup %3646  ;;  %v1876_v15 = vsub.s32 32, %v1875_v46  ;;  %v1877_v59 = vshll.u32 %v4763_v56, %v1875_v46  ;;  %v1880_v50 = vsub.s32 4294967266, %v1875_v46  ;;  %v4819_v39 = vshrl.u32 %v1969_v51, 30 }
 0x119   :  { %v4816_v44 = vpop.eup %3648  ;;  %v1800_v16 = vxor.u32 2147483648, %v4810_v9  ;;  %v2033_v41 = vshrl.u32 %v3685_v32, %v2027_v53  ;;  %v2036_v6 = vshrl.u32 %v3686_v34, %v2027_v53  ;;  %v2038_v47 = vshll.u32 %v3686_v34, %v2026_v38 }
 0x11a   :  { %v1797_v2 = vxor.u32 2147483648, %v4816_v44  ;;  %v1878_v40 = vshrl.u32 %v1860_v10, %v1876_v15  ;;  %v1881_v45 = vadd.s32 127, %v1880_v50  ;;  %v1971_v55 = vshll.u32 %v4819_v39, 30 }
 0x11b   :  { %v1801_v56 = vsel %vm1799_vm9, %v1800_v16, %v4816_v44  ;;  %vm2216_vm13 = vcmp.eq.s32.totalorder %v4808_v57, 0  ;;  %v2028_v13 = vshrl.u32 %v3683_v28, %v2027_v53  ;;  %v2039_v35 = vshrl.u32 %v3687_v36, %v2027_v53 }
 0x11c   :  { %v1798_v17 = vsel %vm1796_vm11, %v4810_v9, %v1797_v2  ;;  %v1879_v11 = vor.u32 %v1878_v40, %v1877_v59  ;;  %v1882_v54 = vshll.u32 %v1881_v45, 23  ;;  %v4839_v18 = vsub.s32 %v1968_v21, %v1971_v55 }
 0x11d   :  { %v1802_v24 = vsel %vm1795_vm10, %v1798_v17, %v1801_v56  ;;  %v2041_v1 = vshll.u32 %v3687_v36, %v2026_v38  ;;  %v2031_v58 = vor.u32 %v2030_v25, %v2029_v22  ;;  %v2034_v61 = vor.u32 %v2033_v41, %v2032_v5 }
 0x11e   :  { %v1803_v20 = vsel %vm1792_vm8, nan, %v1802_v24  ;;  %v1883_v26 = vor.u32 4788187, %v1882_v54  ;;  %v1886_v52 = vcvt.s32.f32 %v1879_v11  ;;  %v1974_v63 = vsub.s32 0, %v4839_v18 }
 0x11f   :  { %3480 = vst [vmem:[%s5391_s1 + $0xa0] sm:$0xff] %v1803_v20  ;;  %v2042_v3 = vshrl.u32 %v3688_v43, %v2027_v53  ;;  %v2037_v21 = vor.u32 %v2036_v6, %v2035_v29  ;;  %v2040_v10 = vor.u32 %v2039_v35, %v2038_v47  ;;  %vm2044_vm14 = vcmp.lt.s32.totalorder %v4821_v33, 1 }
 0x120   :  { %v1884_v31 = vand.u32 2147483647, %v1883_v26  ;;  %v3473_v48 = vmin.u32 %v1974_v63, %v4839_v18  ;;  %vm2215_vm15 = vcmp.lt.s32.totalorder %v4808_v57, 2  ;;  %vm1910_vm0 = vcmp.lt.s32.totalorder %v4636_v60, 0 }
 0x121   :  { %v2043_v51 = vor.u32 %v2042_v3, %v2041_v1  ;;  %vm2046_vm1 = vcmp.lt.s32.totalorder %v4821_v33, 3  ;;  %vm2047_vm3 = vcmp.lt.s32.totalorder %v4821_v33, 4  ;;  %vm2045_vm4 = vcmp.lt.s32.totalorder %v4821_v33, 2 }
 0x122   :  { %v1887_v46 = vmul.f32 %v1886_v52, %v1884_v31  ;;  %v1976_v38 = vclz %v3473_v48  ;;  %v2048_v53 = vsel %vm2044_vm14, %v2028_v13, %v2031_v58  ;;  %vm2219_vm6 = vcmp.eq.s32.totalorder %v4808_v57, 2 }
 0x123   :  { %v2049_v59 = vsel %vm2047_vm3, %v2037_v21, 2102212464  ;;  %v2052_v50 = vsel %vm2044_vm14, %v2031_v58, %v2034_v61  ;;  %v2053_v22 = vsel %vm2047_vm3, %v2040_v10, 920167782  ;;  %v2056_v56 = vsel %vm2044_vm14, %v2034_v61, %v2037_v21 }
 0x124   :  { %v1888_v15 = vxor.u32 2147483648, %v1887_v46  ;;  %v3474_v40 = vadd.s32 4294967294, %v1976_v38  ;;  %v2050_v45 = vsel %vm2046_vm1, %v2034_v61, %v2049_v59  ;;  %v2054_v5 = vsel %vm2046_vm1, %v2037_v21, %v2053_v22 }
 0x125   :  { %v1994_v25 = vsub.s32 4, %v4819_v39  ;;  %v2051_v29 = vsel %vm2045_vm4, %v2048_v53, %v2050_v45  ;;  %v2057_v17 = vsel %vm2047_vm3, %v2043_v51, 1326507024  ;;  %v2055_v54 = vsel %vm2045_vm4, %v2052_v50, %v2054_v5 }
 0x126   :  { %v1889_v55 = vsel %vm1806_vm2, %v1888_v15, %v1887_v46  ;;  %vm3475_vm7 = vcmp.lt.s32.totalorder %v3474_v40, 0  ;;  %v2058_v41 = vsel %vm2046_vm1, %v2040_v10, %v2057_v17  ;;  %v2218_v47 = vsel %vm2216_vm13, %v4810_v9, %v1797_v2 }
 0x127   :  { %v1892_v11 = vsel %vm4789_vm5, %v4549_v4, %v1889_v55  ;;  %v1979_v24 = vsel %vm3475_vm7, 0, %v3474_v40  ;;  %v2059_v6 = vsel %vm2045_vm4, %v2056_v56, %v2058_v41  ;;  %v1995_v2 = vsel %vm1910_vm0, %v1994_v25, %v4819_v39 }
 0x128   :  { %3650 = vcosq.f32 %v1892_v11  ;;  %v1980_v23 = vsub.s32 32, %v1979_v24  ;;  %v1981_v20 = vshll.u32 %v4839_v18, %v1979_v24  ;;  %v1984_v26 = vsub.s32 4294967266, %v1979_v24 }
 0x129   :  { %3652 = vsinq.f32 %v1892_v11  ;;  %v4899_v52 = vmul.u32.u64.low %v4805_v7, %v2059_v6  ;;  %v4900_v63 = vmul.u32.u64.high %v4805_v7, %v2059_v6, %v4899_v52  ;;  %v2221_v18 = vsel %vm2219_vm6, %v1800_v16, %v4816_v44 }
 0x12a   :  { %v4903_v13 = vmul.u32.u64.low %v4805_v7, %v2055_v54  ;;  %v4904_v35 = vmul.u32.u64.high %v4805_v7, %v2055_v54, %v4903_v13  ;;  %v1982_v33 = vshrl.u32 %v4814_v14, %v1980_v23  ;;  %v1985_v1 = vadd.s32 127, %v1984_v26 }
 0x12b   :  { %vm4918_vm2 = vcmp.le.f32.partialorder %v1908_v37, 0.7853982  ;;  %v2222_v14 = vsel %vm2215_vm15, %v2218_v47, %v2221_v18  ;;  %v4925_v58 = vmul.f32 8.0, %v4457_v49  ;;  %v2067_v3 = vmul.u32 %v4805_v7, %v2051_v29 }
 0x12c   :  { %v1983_v61 = vor.u32 %v1982_v33, %v1981_v20  ;;  %v1986_v39 = vshll.u32 %v1985_v1, 23  ;;  %v2223_v9 = vsel %vm1792_vm8, nan, %v2222_v14  ;;  %v1898_v44 = vand.u32 3, %v4803_v8 }
 0x12d   :  { %v1997_v37 = vsel %vm4918_vm2, 0, %v1995_v2  ;;  %vm2069_vm5 = vc.u32 %v4900_v63, %v4903_v13  ;;  %v2070_v57 = vadd.s32 1, %v4904_v35  ;;  %3500 = vst [vmem:[%s5391_s1 + $0xc0] sm:$0xff] %v2223_v9  ;;  %v2542_v7 = vand.u32 2147483647, %v4925_v58 }
 0x12e   :  { %v1987_v49 = vor.u32 4788187, %v1986_v39  ;;  %v1990_v16 = vcvt.s32.f32 %v1983_v61  ;;  %v2317_v8 = vand.u32 3, %v4795_v19  ;;  %v2545_v48 = vand.u32 2139095040, %v4925_v58 }
 0x12f   :  { %v2071_v27 = vsel %vm2069_vm5, %v2070_v57, %v4904_v35  ;;  %v2001_v10 = vadd.s32 3, %v1997_v37  ;;  %vm1896_vm8 = vweird.f32 %v4549_v4  ;;  %vm1899_vm10 = vcmp.lt.s32.totalorder %v1898_v44, 2 }
 0x130   :  { %v1988_v21 = vand.u32 2147483647, %v1987_v49  ;;  %v2072_v46 = vadd.s32 %v2071_v27, %v2067_v3  ;;  %v2546_v51 = vshrl.u32 %v2545_v48, 23  ;;  %vm1900_vm11 = vcmp.eq.s32.totalorder %v1898_v44, 0 }
 0x131   :  { %v2549_v15 = vand.u32 8388607, %v2542_v7  ;;  %vm1903_vm9 = vcmp.eq.s32.totalorder %v1898_v44, 2  ;;  %vm2318_vm12 = vcmp.lt.s32.totalorder %v2317_v8, 2  ;;  %v4947_v19 = vmul.f32 8.0, %v4546_v62 }
 0x132   :  { %v1991_v38 = vmul.f32 %v1990_v16, %v1988_v21  ;;  %v2073_v53 = vadd.s32 536870912, %v2072_v46  ;;  %v3504_v59 = vadd.s32 4294967169, %v2546_v51  ;;  %v4949_v40 = vand.u32 3, %v2001_v10 }
 0x133   :  { %vm2322_vm13 = vcmp.eq.s32.totalorder %v2317_v8, 2  ;;  %vm2319_vm14 = vcmp.eq.s32.totalorder %v2317_v8, 0  ;;  %v4951_v55 = vand.u32 3, %v1997_v37  ;;  %v2550_v54 = vor.u32 8388608, %v2549_v15 }
 0x134   :  { %v1992_v22 = vxor.u32 2147483648, %v1991_v38  ;;  %v2074_v45 = vshrl.u32 %v2073_v53, 30  ;;  %v2552_v25 = vadd.s32 1, %v3504_v59  ;;  %v2649_v6 = vand.u32 2139095040, %v4947_v19 }
 0x135   :  { %v3651_v50 = vpop.eup %3650  ;;  %v2646_v52 = vand.u32 2147483647, %v4947_v19  ;;  %vm2007_vm1 = vcmp.eq.s32.totalorder %v4949_v40, 2  ;;  %v2068_v3 = vadd.s32 %v4903_v13, %v4900_v63  ;;  %vm2425_vm3 = vcmp.eq.s32.totalorder %v4951_v55, 2 }
 0x136   :  { %v3653_v5 = vpop.eup %3652  ;;  %v1904_v56 = vxor.u32 2147483648, %v3651_v50  ;;  %v1993_v17 = vsel %vm1910_vm0, %v1992_v22, %v1991_v38  ;;  %v2075_v11 = vshll.u32 %v2074_v45, 30  ;;  %vm2553_vm15 = vcmp.gt.s32.totalorder %v2552_v25, 0 }
 0x137   :  { %v1901_v29 = vxor.u32 2147483648, %v3653_v5  ;;  %v1996_v41 = vsel %vm4918_vm2, %v4636_v60, %v1993_v17  ;;  %v2098_v1 = vsub.s32 4, %v2074_v45  ;;  %v2554_v31 = vsel %vm2553_vm15, %v2552_v25, 0 }
 0x138   :  { %v1905_v62 = vsel %vm1903_vm9, %v1904_v56, %v3653_v5  ;;  %v2324_v24 = vsel %vm2322_vm13, %v1904_v56, %v3653_v5  ;;  %3654 = vcosq.f32 %v1996_v41  ;;  %v4961_v23 = vsub.s32 %v2072_v46, %v2075_v11 }
 0x139   :  { %v1902_v47 = vsel %vm1900_vm11, %v3651_v50, %v1901_v29  ;;  %3656 = vsinq.f32 %v1996_v41  ;;  %v2321_v26 = vsel %vm2319_vm14, %v3651_v50, %v1901_v29  ;;  %vm2014_vm0 = vcmp.lt.s32.totalorder %v4653_v12, 0 }
 0x13a   :  { %v1906_v20 = vsel %vm1899_vm10, %v1902_v47, %v1905_v62  ;;  %v2078_v33 = vsub.s32 0, %v4961_v23  ;;  %v2325_v2 = vsel %vm2318_vm12, %v2321_v26, %v2324_v24  ;;  %v2556_v61 = vand.u32 31, %v2554_v31 }
 0x13b   :  { %v1907_v35 = vsel %vm1896_vm8, nan, %v1906_v20  ;;  %v2326_v18 = vsel %vm1896_vm8, nan, %v2325_v2  ;;  %v2650_v39 = vshrl.u32 %v2649_v6, 23  ;;  %v4984_v4 = vshrl.u32 %v2554_v31, 5 }
 0x13c   :  { %3481 = vst [vmem:[%s5391_s1 + $0xa8] sm:$0xff] %v1907_v35  ;;  %v3477_v14 = vmin.u32 %v2078_v33, %v4961_v23  ;;  %3501 = vst [vmem:[%s5391_s1 + $0xc8] sm:$0xff] %v2326_v18  ;;  %vm2004_vm4 = vcmp.eq.s32.totalorder %v4949_v40, 0  ;;  %v4989_v44 = vsel %vm2014_vm0, %v2098_v1, %v2074_v45  ;;  %vm2422_vm6 = vcmp.eq.s32.totalorder %v4951_v55, 0 }
 0x13d   :  { %v4992_v37 = vshll.u32 %v2550_v54, 8  ;;  %v4996_v57 = vand.u32 8388607, %v2646_v52  ;;  %vm2003_vm7 = vcmp.lt.s32.totalorder %v4949_v40, 2  ;;  %vm2421_vm2 = vcmp.lt.s32.totalorder %v4951_v55, 2 }
 0x13e   :  { %v2080_v9 = vclz %v3477_v14  ;;  %v2557_v63 = vsub.s32 32, %v2556_v61  ;;  %v2559_v13 = vshll.u32 %v3683_v28, %v2556_v61  ;;  %v2562_v49 = vshll.u32 %v3684_v30, %v2556_v61 }
 0x13f   :  { %v2565_v16 = vshll.u32 %v3685_v32, %v2556_v61  ;;  %vm2000_vm5 = vweird.f32 %v4636_v60  ;;  %v2568_v8 = vshll.u32 %v3686_v34, %v2556_v61  ;;  %v2571_v48 = vshll.u32 %v3687_v36, %v2556_v61 }
 0x140   :  { %v3478_v27 = vadd.s32 4294967294, %v2080_v9  ;;  %v3508_v21 = vadd.s32 4294967169, %v2650_v39  ;;  %v2560_v10 = vshrl.u32 %v3684_v30, %v2557_v63  ;;  %v2563_v46 = vshrl.u32 %v3685_v32, %v2557_v63 }
 0x141   :  { %v2566_v51 = vshrl.u32 %v3686_v34, %v2557_v63  ;;  %vm2574_vm8 = vcmp.lt.s32.totalorder %v4984_v4, 1  ;;  %v2558_v38 = vshrl.u32 %v3683_v28, %v2557_v63  ;;  %v2569_v53 = vshrl.u32 %v3687_v36, %v2557_v63 }
 0x142   :  { %vm3479_vm10 = vcmp.lt.s32.totalorder %v3478_v27, 0  ;;  %v2572_v15 = vshrl.u32 %v3688_v43, %v2557_v63  ;;  %v2561_v50 = vor.u32 %v2560_v10, %v2559_v13  ;;  %v2564_v22 = vor.u32 %v2563_v46, %v2562_v49 }
 0x143   :  { %v2083_v59 = vsel %vm3479_vm10, 0, %v3478_v27  ;;  %v2567_v45 = vor.u32 %v2566_v51, %v2565_v16  ;;  %v2570_v29 = vor.u32 %v2569_v53, %v2568_v8  ;;  %vm2575_vm11 = vcmp.lt.s32.totalorder %v4984_v4, 2 }
 0x144   :  { %v2084_v5 = vsub.s32 32, %v2083_v59  ;;  %v2085_v56 = vshll.u32 %v4961_v23, %v2083_v59  ;;  %v2088_v25 = vsub.s32 4294967266, %v2083_v59  ;;  %v2573_v11 = vor.u32 %v2572_v15, %v2571_v48 }
 0x145   :  { %v3655_v17 = vpop.eup %3654  ;;  %vm2576_vm9 = vcmp.lt.s32.totalorder %v4984_v4, 3  ;;  %vm2577_vm12 = vcmp.lt.s32.totalorder %v4984_v4, 4  ;;  %v2578_v23 = vsel %vm2574_vm8, %v2558_v38, %v2561_v50  ;;  %v2582_v20 = vsel %vm2574_vm8, %v2561_v50, %v2564_v22 }
 0x146   :  { %v3657_v54 = vpop.eup %3656  ;;  %v2008_v62 = vxor.u32 2147483648, %v3655_v17  ;;  %v2086_v41 = vshrl.u32 %v2068_v3, %v2084_v5  ;;  %v2089_v24 = vadd.s32 127, %v2088_v25  ;;  %v2579_v6 = vsel %vm2577_vm12, %v2567_v45, 2102212464 }
 0x147   :  { %v2005_v47 = vxor.u32 2147483648, %v3657_v54  ;;  %v2583_v26 = vsel %vm2577_vm12, %v2570_v29, 920167782  ;;  %v2580_v14 = vsel %vm2576_vm9, %v2564_v22, %v2579_v6  ;;  %v2586_v27 = vsel %vm2574_vm8, %v2564_v22, %v2567_v45 }
 0x148   :  { %v2009_v35 = vsel %vm2007_vm1, %v2008_v62, %v3657_v54  ;;  %v2087_v33 = vor.u32 %v2086_v41, %v2085_v56  ;;  %v2090_v1 = vshll.u32 %v2089_v24, 23  ;;  %v2427_v2 = vsel %vm2425_vm3, %v2008_v62, %v3657_v54 }
 0x149   :  { %v2006_v18 = vsel %vm2004_vm4, %v3655_v17, %v2005_v47  ;;  %v2424_v31 = vsel %vm2422_vm6, %v3655_v17, %v2005_v47  ;;  %v2584_v61 = vsel %vm2576_vm9, %v2567_v45, %v2583_v26  ;;  %v2587_v55 = vsel %vm2577_vm12, %v2573_v11, 1326507024 }
 0x14a   :  { %v2010_v39 = vsel %vm2003_vm7, %v2006_v18, %v2009_v35  ;;  %v2091_v3 = vor.u32 4788187, %v2090_v1  ;;  %v2094_v9 = vcvt.s32.f32 %v2087_v33  ;;  %v2428_v63 = vsel %vm2421_vm2, %v2424_v31, %v2427_v2 }
 0x14b   :  { %v2011_v13 = vsel %vm2000_vm5, nan, %v2010_v39  ;;  %v2429_v49 = vsel %vm2000_vm5, nan, %v2428_v63  ;;  %v2585_v16 = vsel %vm2575_vm11, %v2582_v20, %v2584_v61  ;;  %vm5064_vm13 = vcmp.le.f32.partialorder %v2012_v0, 0.7853982 }
 0x14c   :  { %3482 = vst [vmem:[%s5391_s1 + $0xb0] sm:$0xff] %v2011_v13  ;;  %v2092_v40 = vand.u32 2147483647, %v2091_v3  ;;  %3502 = vst [vmem:[%s5391_s1 + $0xd0] sm:$0xff] %v2429_v49  ;;  %v5058_v60 = vmul.u32.u64.low %v4992_v37, %v2585_v16  ;;  %v5059_v8 = vmul.u32.u64.high %v4992_v37, %v2585_v16, %v5058_v60  ;;  %v2588_v10 = vsel %vm2576_vm9, %v2570_v29, %v2587_v55 }
 0x14d   :  { %v2656_v46 = vadd.s32 1, %v3508_v21  ;;  %v5071_v51 = vmul.f32 8.0, %v4633_v42  ;;  %v2581_v53 = vsel %vm2575_vm11, %v2578_v23, %v2580_v14  ;;  %v2589_v15 = vsel %vm2575_vm11, %v2586_v27, %v2588_v10 }
 0x14e   :  { %v2095_v38 = vmul.f32 %v2094_v9, %v2092_v40  ;;  %v2654_v59 = vor.u32 8388608, %v4996_v57  ;;  %v2101_v0 = vsel %vm5064_vm13, 0, %v4989_v44  ;;  %v2600_v21 = vadd.s32 1, %v5059_v8  ;;  %v3682_v57 = vld [vmem:[%s5391_s1 + $0x18] sm:$0xff] }
 0x14f   :  { %v5082_v50 = vmul.u32.u64.low %v4992_v37, %v2589_v15  ;;  %v5083_v22 = vmul.u32.u64.high %v4992_v37, %v2589_v15, %v5082_v50  ;;  %vm2657_vm14 = vcmp.gt.s32.totalorder %v2656_v46, 0  ;;  %v2597_v5 = vmul.u32 %v4992_v37, %v2581_v53 }
 0x150   :  { %v2096_v42 = vxor.u32 2147483648, %v2095_v38  ;;  %v2658_v45 = vsel %vm2657_vm14, %v2656_v46, 0  ;;  %v2750_v4 = vand.u32 2147483647, %v5071_v51  ;;  %v5091_v25 = vmul.f32 8.0, %v3682_v57 }
 0x151   :  { %v2660_v56 = vand.u32 31, %v2658_v45  ;;  %v2105_v29 = vadd.s32 3, %v2101_v0  ;;  %v5095_v17 = vand.u32 3, %v2101_v0  ;;  %v5097_v11 = vshll.u32 %v2654_v59, 8 }
 0x152   :  { %v2097_v44 = vsel %vm2014_vm0, %v2096_v42, %v2095_v38  ;;  %vm2599_vm15 = vc.u32 %v5083_v22, %v5058_v60  ;;  %v2659_v54 = vshrl.u32 %v2658_v45, 5  ;;  %v2753_v20 = vand.u32 2139095040, %v5071_v51 }
 0x153   :  { %v2100_v37 = vsel %vm5064_vm13, %v4653_v12, %v2097_v44  ;;  %v2661_v62 = vsub.s32 32, %v2660_v56  ;;  %v2601_v41 = vsel %vm2599_vm15, %v2600_v21, %v5059_v8  ;;  %v2663_v24 = vshll.u32 %v3683_v28, %v2660_v56 }
 0x154   :  { %3658 = vcosq.f32 %v2100_v37  ;;  %v2666_v6 = vshll.u32 %v3684_v30, %v2660_v56  ;;  %v2602_v47 = vadd.s32 %v2601_v41, %v2597_v5  ;;  %v2669_v35 = vshll.u32 %v3685_v32, %v2660_v56 }
 0x155   :  { %3660 = vsinq.f32 %v2100_v37  ;;  %v2664_v23 = vshrl.u32 %v3684_v30, %v2661_v62  ;;  %v2667_v26 = vshrl.u32 %v3685_v32, %v2661_v62  ;;  %v2670_v33 = vshrl.u32 %v3686_v34, %v2661_v62 }
 0x156   :  { %v2672_v1 = vshll.u32 %v3686_v34, %v2660_v56  ;;  %v2603_v2 = vadd.s32 536870912, %v2602_v47  ;;  %v2673_v31 = vshrl.u32 %v3687_v36, %v2661_v62  ;;  %v2675_v14 = vshll.u32 %v3687_v36, %v2660_v56 }
 0x157   :  { %v2665_v18 = vor.u32 %v2664_v23, %v2663_v24  ;;  %v2668_v61 = vor.u32 %v2667_v26, %v2666_v6  ;;  %v2671_v39 = vor.u32 %v2670_v33, %v2669_v35  ;;  %v2676_v3 = vshrl.u32 %v3688_v43, %v2661_v62 }
 0x158   :  { %vm2678_vm0 = vcmp.lt.s32.totalorder %v2659_v54, 1  ;;  %v2604_v9 = vshrl.u32 %v2603_v2, 30  ;;  %v2662_v63 = vshrl.u32 %v3683_v28, %v2661_v62  ;;  %v2674_v13 = vor.u32 %v2673_v31, %v2672_v1 }
 0x159   :  { %vm2680_vm1 = vcmp.lt.s32.totalorder %v2659_v54, 3  ;;  %v2677_v49 = vor.u32 %v2676_v3, %v2675_v14  ;;  %vm2679_vm3 = vcmp.lt.s32.totalorder %v2659_v54, 2  ;;  %vm2681_vm4 = vcmp.lt.s32.totalorder %v2659_v54, 4 }
 0x15a   :  { %v2686_v16 = vsel %vm2678_vm0, %v2665_v18, %v2668_v61  ;;  %v2106_v27 = vand.u32 3, %v2105_v29  ;;  %vm2544_vm6 = vcmp.lt.s32.totalorder %v4925_v58, 0  ;;  %v2605_v40 = vshll.u32 %v2604_v9, 30 }
 0x15b   :  { %v2683_v55 = vsel %vm2681_vm4, %v2671_v39, 2102212464  ;;  %v2687_v8 = vsel %vm2681_vm4, %v2674_v13, 920167782  ;;  %vm2104_vm7 = vweird.f32 %v4653_v12  ;;  %v2690_v10 = vsel %vm2678_vm0, %v2668_v61, %v2671_v39 }
 0x15c   :  { %v2688_v48 = vsel %vm2680_vm1, %v2671_v39, %v2687_v8  ;;  %v2691_v46 = vsel %vm2681_vm4, %v2677_v49, 1326507024  ;;  %v2754_v38 = vshrl.u32 %v2753_v20, 23  ;;  %v5122_v53 = vsub.s32 %v2602_v47, %v2605_v40 }
 0x15d   :  { %v2682_v15 = vsel %vm2678_vm0, %v2662_v63, %v2665_v18  ;;  %v2684_v59 = vsel %vm2680_vm1, %v2668_v61, %v2683_v55  ;;  %v2689_v0 = vsel %vm2679_vm3, %v2686_v16, %v2688_v48  ;;  %vm2524_vm2 = vcmp.lt.s32.totalorder %v5095_v17, 2 }
 0x15e   :  { %v2692_v50 = vsel %vm2680_vm1, %v2674_v13, %v2691_v46  ;;  %v5130_v42 = vmul.u32.u64.low %v5097_v11, %v2689_v0  ;;  %v5131_v21 = vmul.u32.u64.high %v5097_v11, %v2689_v0, %v5130_v42  ;;  %vm2525_vm5 = vcmp.eq.s32.totalorder %v5095_v17, 0 }
 0x15f   :  { %vm5137_vm8 = vcmp.le.f32.partialorder %v2542_v7, 0.7853982  ;;  %v2608_v5 = vsub.s32 0, %v5122_v53  ;;  %v2628_v56 = vsub.s32 4, %v2604_v9  ;;  %v2693_v57 = vsel %vm2679_vm3, %v2690_v10, %v2692_v50 }
 0x160   :  { %v2685_v44 = vsel %vm2679_vm3, %v2682_v15, %v2684_v59  ;;  %v5145_v29 = vmul.u32.u64.low %v5097_v11, %v2693_v57  ;;  %v5146_v37 = vmul.u32.u64.high %v5097_v11, %v2693_v57, %v5145_v29  ;;  %v3512_v62 = vadd.s32 4294967169, %v2754_v38 }
 0x161   :  { %v3659_v41 = vpop.eup %3658  ;;  %vm2107_vm10 = vcmp.lt.s32.totalorder %v2106_v27, 2  ;;  %vm2111_vm11 = vcmp.eq.s32.totalorder %v2106_v27, 2  ;;  %vm2528_vm9 = vcmp.eq.s32.totalorder %v5095_v17, 2  ;;  %v3505_v7 = vmin.u32 %v2608_v5, %v5122_v53 }
 0x162   :  { %v3661_v24 = vpop.eup %3660  ;;  %vm2108_vm12 = vcmp.eq.s32.totalorder %v2106_v27, 0  ;;  %v2112_v6 = vxor.u32 2147483648, %v3659_v41  ;;  %v2704_v47 = vadd.s32 1, %v5131_v21  ;;  %v2760_v23 = vadd.s32 1, %v3512_v62 }
 0x163   :  { %v2109_v54 = vxor.u32 2147483648, %v3661_v24  ;;  %v2610_v20 = vclz %v3505_v7  ;;  %v2701_v26 = vmul.u32 %v5097_v11, %v2685_v44  ;;  %v2757_v35 = vand.u32 8388607, %v2750_v4 }
 0x164   :  { %v2113_v33 = vsel %vm2111_vm11, %v2112_v6, %v3661_v24  ;;  %v2530_v1 = vsel %vm2528_vm9, %v2112_v6, %v3661_v24  ;;  %v2598_v2 = vadd.s32 %v5058_v60, %v5083_v22  ;;  %v2629_v18 = vsel %vm2544_vm6, %v2628_v56, %v2604_v9 }
 0x165   :  { %v2110_v31 = vsel %vm2108_vm12, %v3659_v41, %v2109_v54  ;;  %v2527_v14 = vsel %vm2525_vm5, %v3659_v41, %v2109_v54  ;;  %v3506_v61 = vadd.s32 4294967294, %v2610_v20  ;;  %vm2703_vm13 = vc.u32 %v5146_v37, %v5130_v42 }
 0x166   :  { %v2114_v11 = vsel %vm2107_vm10, %v2110_v31, %v2113_v33  ;;  %v2531_v39 = vsel %vm2524_vm2, %v2527_v14, %v2530_v1  ;;  %v2705_v3 = vsel %vm2703_vm13, %v2704_v47, %v5131_v21  ;;  %vm2761_vm14 = vcmp.gt.s32.totalorder %v2760_v23, 0 }
 0x167   :  { %v2115_v60 = vsel %vm2104_vm7, nan, %v2114_v11  ;;  %v2532_v22 = vsel %vm2104_vm7, nan, %v2531_v39  ;;  %vm3507_vm15 = vcmp.lt.s32.totalorder %v3506_v61, 0  ;;  %v2706_v9 = vadd.s32 %v2705_v3, %v2701_v26 }
 0x168   :  { %3483 = vst [vmem:[%s5391_s1 + $0xb8] sm:$0xff] %v2115_v60  ;;  %3503 = vst [vmem:[%s5391_s1 + $0xd8] sm:$0xff] %v2532_v22  ;;  %v2613_v17 = vsel %vm3507_vm15, 0, %v3506_v61  ;;  %v5178_v63 = vsel %vm5137_vm8, 0, %v2629_v18  ;;  %v2758_v13 = vor.u32 8388608, %v2757_v35  ;;  %v2762_v49 = vsel %vm2761_vm14, %v2760_v23, 0 }
 0x169   :  { %v2614_v16 = vsub.s32 32, %v2613_v17  ;;  %v2615_v12 = vshll.u32 %v5122_v53, %v2613_v17  ;;  %v2618_v27 = vsub.s32 4294967266, %v2613_v17  ;;  %v2707_v40 = vadd.s32 536870912, %v2706_v9 }
 0x16a   :  { %v2764_v55 = vand.u32 31, %v2762_v49  ;;  %v2854_v8 = vand.u32 2147483647, %v5091_v25  ;;  %v5185_v38 = vadd.s32 3, %v5178_v63  ;;  %v5187_v59 = vshll.u32 %v2758_v13, 8 }
 0x16b   :  { %v2616_v48 = vshrl.u32 %v2598_v2, %v2614_v16  ;;  %v2619_v10 = vadd.s32 127, %v2618_v27  ;;  %v5182_v46 = vshrl.u32 %v2707_v40, 30  ;;  %v2857_v0 = vand.u32 2139095040, %v5091_v25 }
 0x16c   :  { %v2765_v15 = vsub.s32 32, %v2764_v55  ;;  %v2767_v5 = vshll.u32 %v3683_v28, %v2764_v55  ;;  %v2770_v57 = vshll.u32 %v3684_v30, %v2764_v55  ;;  %v5197_v29 = vand.u32 8388607, %v2854_v8 }
 0x16d   :  { %v2617_v50 = vor.u32 %v2616_v48, %v2615_v12  ;;  %v2620_v21 = vshll.u32 %v2619_v10, 23  ;;  %v2709_v53 = vshll.u32 %v5182_v46, 30  ;;  %v2763_v24 = vshrl.u32 %v2762_v49, 5 }
 0x16e   :  { %v2768_v56 = vshrl.u32 %v3684_v30, %v2765_v15  ;;  %v2771_v44 = vshrl.u32 %v3685_v32, %v2765_v15  ;;  %v2766_v6 = vshrl.u32 %v3683_v28, %v2765_v15  ;;  %v2773_v47 = vshll.u32 %v3685_v32, %v2764_v55 }
 0x16f   :  { %v2621_v62 = vor.u32 4788187, %v2620_v21  ;;  %v2624_v41 = vcvt.s32.f32 %v2617_v50  ;;  %v2710_v7 = vsub.s32 %v2706_v9, %v2709_v53  ;;  %v2774_v23 = vshrl.u32 %v3686_v34, %v2765_v15 }
 0x170   :  { %v2858_v54 = vshrl.u32 %v2857_v0, 23  ;;  %v2769_v35 = vor.u32 %v2768_v56, %v2767_v5  ;;  %v2776_v33 = vshll.u32 %v3686_v34, %v2764_v55  ;;  %v2772_v1 = vor.u32 %v2771_v44, %v2770_v57 }
 0x171   :  { %v2622_v20 = vand.u32 2147483647, %v2621_v62  ;;  %v2712_v26 = vsub.s32 0, %v2710_v7  ;;  %v2777_v2 = vshrl.u32 %v3687_v36, %v2765_v15  ;;  %v2779_v18 = vshll.u32 %v3687_v36, %v2764_v55 }
 0x172   :  { %v2780_v31 = vshrl.u32 %v3688_v43, %v2765_v15  ;;  %v2702_v61 = vadd.s32 %v5130_v42, %v5146_v37  ;;  %vm2782_vm0 = vcmp.lt.s32.totalorder %v2763_v24, 1  ;;  %v2775_v39 = vor.u32 %v2774_v23, %v2773_v47 }
 0x173   :  { %v2625_v14 = vmul.f32 %v2624_v41, %v2622_v20  ;;  %v3509_v11 = vmin.u32 %v2712_v26, %v2710_v7  ;;  %v2778_v3 = vor.u32 %v2777_v2, %v2776_v33  ;;  %vm2785_vm1 = vcmp.lt.s32.totalorder %v2763_v24, 4 }
 0x174   :  { %v3516_v60 = vadd.s32 4294967169, %v2858_v54  ;;  %v2781_v17 = vor.u32 %v2780_v31, %v2779_v18  ;;  %vm2784_vm3 = vcmp.lt.s32.totalorder %v2763_v24, 3  ;;  %vm2783_vm4 = vcmp.lt.s32.totalorder %v2763_v24, 2 }
 0x175   :  { %v2626_v22 = vxor.u32 2147483648, %v2625_v14  ;;  %v2714_v9 = vclz %v3509_v11  ;;  %v2786_v13 = vsel %vm2782_vm0, %v2766_v6, %v2769_v35  ;;  %v2787_v49 = vsel %vm2785_vm1, %v2775_v39, 2102212464 }
 0x176   :  { %v2790_v16 = vsel %vm2782_vm0, %v2769_v35, %v2772_v1  ;;  %v2788_v12 = vsel %vm2784_vm3, %v2772_v1, %v2787_v49  ;;  %v2791_v27 = vsel %vm2785_vm1, %v2778_v3, 920167782  ;;  %v2732_v55 = vsub.s32 4, %v5182_v46 }
 0x177   :  { %v2627_v42 = vsel %vm2544_vm6, %v2626_v22, %v2625_v14  ;;  %v3510_v37 = vadd.s32 4294967294, %v2714_v9  ;;  %v2792_v48 = vsel %vm2784_vm3, %v2775_v39, %v2791_v27  ;;  %v2794_v10 = vsel %vm2782_vm0, %v2772_v1, %v2775_v39 }
 0x178   :  { %v2630_v40 = vsel %vm5137_vm8, %v4925_v58, %v2627_v42  ;;  %v2793_v15 = vsel %vm2783_vm4, %v2790_v16, %v2792_v48  ;;  %v2795_v0 = vsel %vm2785_vm1, %v2781_v17, 1326507024  ;;  %v2789_v21 = vsel %vm2783_vm4, %v2786_v13, %v2788_v12 }
 0x179   :  { %3662 = vcosq.f32 %v2630_v40  ;;  %vm3511_vm7 = vcmp.lt.s32.totalorder %v3510_v37, 0  ;;  %v2796_v53 = vsel %vm2784_vm3, %v2778_v3, %v2795_v0  ;;  %v2636_v47 = vand.u32 3, %v5185_v38 }
 0x17a   :  { %3664 = vsinq.f32 %v2630_v40  ;;  %v2717_v50 = vsel %vm3511_vm7, 0, %v3510_v37  ;;  %v2797_v57 = vsel %vm2783_vm4, %v2794_v10, %v2796_v53  ;;  %v2864_v20 = vadd.s32 1, %v3516_v60 }
 0x17b   :  { %v2718_v45 = vsub.s32 32, %v2717_v50  ;;  %v2719_v5 = vshll.u32 %v2710_v7, %v2717_v50  ;;  %v2722_v56 = vsub.s32 4294967266, %v2717_v50  ;;  %vm5238_vm6 = vcmp.le.f32.partialorder %v2646_v52, 0.7853982 }
 0x17c   :  { %v5227_v44 = vmul.u32.u64.low %v5187_v59, %v2797_v57  ;;  %v5228_v62 = vmul.u32.u64.high %v5187_v59, %v2797_v57, %v5227_v44  ;;  %v5231_v41 = vmul.u32.u64.low %v5187_v59, %v2793_v15  ;;  %v5232_v6 = vmul.u32.u64.high %v5187_v59, %v2793_v15, %v5231_v41 }
 0x17d   :  { %v2720_v23 = vshrl.u32 %v2702_v61, %v2718_v45  ;;  %v2723_v54 = vadd.s32 127, %v2722_v56  ;;  %vm2648_vm2 = vcmp.lt.s32.totalorder %v4947_v19, 0  ;;  %v2862_v24 = vor.u32 8388608, %v5197_v29 }
 0x17e   :  { %v2805_v33 = vmul.u32 %v5187_v59, %v2789_v21  ;;  %vm2865_vm5 = vcmp.gt.s32.totalorder %v2864_v20, 0  ;;  %v2733_v38 = vsel %vm2648_vm2, %v2732_v55, %v5182_v46  ;;  %vm2807_vm8 = vc.u32 %v5228_v62, %v5231_v41 }
 0x17f   :  { %v2721_v26 = vor.u32 %v2720_v23, %v2719_v5  ;;  %v2724_v35 = vshll.u32 %v2723_v54, 23  ;;  %v2808_v52 = vadd.s32 1, %v5232_v6  ;;  %v2866_v1 = vsel %vm2865_vm5, %v2864_v20, 0 }
 0x180   :  { %vm2634_vm10 = vweird.f32 %v4925_v58  ;;  %vm2637_vm11 = vcmp.lt.s32.totalorder %v2636_v47, 2  ;;  %v2868_v18 = vand.u32 31, %v2866_v1  ;;  %vm2638_vm9 = vcmp.eq.s32.totalorder %v2636_v47, 0 }
 0x181   :  { %v2725_v2 = vor.u32 4788187, %v2724_v35  ;;  %v2728_v29 = vcvt.s32.f32 %v2721_v26  ;;  %vm2641_vm12 = vcmp.eq.s32.totalorder %v2636_v47, 2  ;;  %v2809_v59 = vsel %vm2807_vm8, %v2808_v52, %v5232_v6 }
 0x182   :  { %v5253_v31 = vshll.u32 %v2862_v24, 8  ;;  %v5257_v46 = vsel %vm5238_vm6, 0, %v2733_v38  ;;  %v2810_v61 = vadd.s32 %v2809_v59, %v2805_v33  ;;  %v2869_v11 = vsub.s32 32, %v2868_v18 }
 0x183   :  { %v2726_v14 = vand.u32 2147483647, %v2725_v2  ;;  %v5259_v39 = vshrl.u32 %v2866_v1, 5  ;;  %v2871_v3 = vshll.u32 %v3683_v28, %v2868_v18  ;;  %v2874_v60 = vshll.u32 %v3684_v30, %v2868_v18 }
 0x184   :  { %v5264_v22 = vand.u32 3, %v5178_v63  ;;  %v2811_v17 = vadd.s32 536870912, %v2810_v61  ;;  %v2872_v13 = vshrl.u32 %v3684_v30, %v2869_v11  ;;  %v2877_v49 = vshll.u32 %v3685_v32, %v2868_v18 }
 0x185   :  { %v2729_v9 = vmul.f32 %v2728_v29, %v2726_v14  ;;  %v2875_v42 = vshrl.u32 %v3685_v32, %v2869_v11  ;;  %v2878_v37 = vshrl.u32 %v3686_v34, %v2869_v11  ;;  %v2880_v12 = vshll.u32 %v3686_v34, %v2868_v18 }
 0x186   :  { %v3663_v16 = vpop.eup %3662  ;;  %v2881_v27 = vshrl.u32 %v3687_v36, %v2869_v11  ;;  %v5272_v63 = vshrl.u32 %v2811_v17, 30  ;;  %v2883_v10 = vshll.u32 %v3687_v36, %v2868_v18  ;;  %v2870_v30 = vshrl.u32 %v3683_v28, %v2869_v11 }
 0x187   :  { %v3665_v40 = vpop.eup %3664  ;;  %v2642_v55 = vxor.u32 2147483648, %v3663_v16  ;;  %v2730_v48 = vxor.u32 2147483648, %v2729_v9  ;;  %v2873_v0 = vor.u32 %v2872_v13, %v2871_v3  ;;  %v2884_v50 = vshrl.u32 %v3688_v43, %v2869_v11 }
 0x188   :  { %v2639_v15 = vxor.u32 2147483648, %v3665_v40  ;;  %v2813_v21 = vshll.u32 %v5272_v63, 30  ;;  %v2876_v53 = vor.u32 %v2875_v42, %v2874_v60  ;;  %v2879_v5 = vor.u32 %v2878_v37, %v2877_v49 }
 0x189   :  { %v2643_v32 = vsel %vm2641_vm12, %v2642_v55, %v3665_v40  ;;  %v2731_v34 = vsel %vm2648_vm2, %v2730_v48, %v2729_v9  ;;  %v2882_v56 = vor.u32 %v2881_v27, %v2880_v12  ;;  %vm2886_vm13 = vcmp.lt.s32.totalorder %v5259_v39, 1 }
 0x18a   :  { %v2640_v45 = vsel %vm2638_vm9, %v3663_v16, %v2639_v15  ;;  %v2734_v36 = vsel %vm5238_vm6, %v4947_v19, %v2731_v34  ;;  %v5286_v43 = vsub.s32 %v2810_v61, %v2813_v21  ;;  %v2739_v44 = vadd.s32 3, %v5257_v46 }
 0x18b   :  { %v2644_v28 = vsel %vm2637_vm11, %v2640_v45, %v2643_v32  ;;  %3666 = vcosq.f32 %v2734_v36  ;;  %v2885_v6 = vor.u32 %v2884_v50, %v2883_v10  ;;  %vm2887_vm14 = vcmp.lt.s32.totalorder %v5259_v39, 2 }
 0x18c   :  { %v2645_v57 = vsel %vm2634_vm10, nan, %v2644_v28  ;;  %3668 = vsinq.f32 %v2734_v36  ;;  %v2816_v23 = vsub.s32 0, %v5286_v43  ;;  %vm2888_vm15 = vcmp.lt.s32.totalorder %v5259_v39, 3 }
 0x18d   :  { %3520 = vst [vmem:[%s5391_s1 + $0xe0] sm:$0xff] %v2645_v57  ;;  %vm2889_vm0 = vcmp.lt.s32.totalorder %v5259_v39, 4  ;;  %v2894_v54 = vsel %vm2886_vm13, %v2873_v0, %v2876_v53  ;;  %vm3058_vm1 = vcmp.eq.s32.totalorder %v5264_v22, 0  ;;  %v2890_v24 = vsel %vm2886_vm13, %v2870_v30, %v2873_v0 }
 0x18e   :  { %v2891_v47 = vsel %vm2889_vm0, %v2879_v5, 2102212464  ;;  %v2895_v20 = vsel %vm2889_vm0, %v2882_v56, 920167782  ;;  %v3513_v7 = vmin.u32 %v2816_v23, %v5286_v43  ;;  %v2898_v38 = vsel %vm2886_vm13, %v2876_v53, %v2879_v5 }
 0x18f   :  { %v2892_v26 = vsel %vm2888_vm15, %v2876_v53, %v2891_v47  ;;  %v2896_v35 = vsel %vm2888_vm15, %v2879_v5, %v2895_v20  ;;  %v2899_v52 = vsel %vm2889_vm0, %v2885_v6, 1326507024  ;;  %vm3061_vm3 = vcmp.eq.s32.totalorder %v5264_v22, 2 }
 0x190   :  { %v2897_v33 = vsel %vm2887_vm14, %v2894_v54, %v2896_v35  ;;  %v2740_v1 = vand.u32 3, %v2739_v44  ;;  %v2818_v2 = vclz %v3513_v7  ;;  %vm3057_vm4 = vcmp.lt.s32.totalorder %v5264_v22, 2 }
 0x191   :  { %v2893_v29 = vsel %vm2887_vm14, %v2890_v24, %v2892_v26  ;;  %v2900_v18 = vsel %vm2888_vm15, %v2882_v56, %v2899_v52  ;;  %v5320_v59 = vmul.u32.u64.low %v5253_v31, %v2897_v33  ;;  %v5321_v14 = vmul.u32.u64.high %v5253_v31, %v2897_v33, %v5320_v59 }
 0x192   :  { %v3514_v61 = vadd.s32 4294967294, %v2818_v2  ;;  %v2901_v11 = vsel %vm2887_vm14, %v2898_v38, %v2900_v18  ;;  %v3060_v3 = vsel %vm3058_vm1, %v3663_v16, %v2639_v15  ;;  %v3063_v60 = vsel %vm3061_vm3, %v2642_v55, %v3665_v40 }
 0x193   :  { %v5329_v9 = vmul.u32.u64.low %v5253_v31, %v2901_v11  ;;  %v5330_v17 = vmul.u32.u64.high %v5253_v31, %v2901_v11, %v5329_v9  ;;  %v3064_v13 = vsel %vm3057_vm4, %v3060_v3, %v3063_v60  ;;  %v3159_v49 = vand.u32 3, %v5257_v46 }
 0x194   :  { %v2806_v42 = vadd.s32 %v5231_v41, %v5228_v62  ;;  %vm3515_vm7 = vcmp.lt.s32.totalorder %v3514_v61, 0  ;;  %v3065_v37 = vsel %vm2634_vm10, nan, %v3064_v13  ;;  %vm2738_vm6 = vweird.f32 %v4947_v19 }
 0x195   :  { %v2821_v39 = vsel %vm3515_vm7, 0, %v3514_v61  ;;  %v2909_v22 = vmul.u32 %v5253_v31, %v2893_v29  ;;  %v2912_v16 = vadd.s32 1, %v5321_v14  ;;  %3540 = vst [vmem:[%s5391_s1 + $0x100] sm:$0xff] %v3065_v37  ;;  %vm2742_vm2 = vcmp.eq.s32.totalorder %v2740_v1, 0 }
 0x196   :  { %v2822_v46 = vsub.s32 32, %v2821_v39  ;;  %v2823_v12 = vshll.u32 %v5286_v43, %v2821_v39  ;;  %v2826_v62 = vsub.s32 4294967266, %v2821_v39  ;;  %vm2745_vm5 = vcmp.eq.s32.totalorder %v2740_v1, 2 }
 0x197   :  { %vm2911_vm8 = vc.u32 %v5330_v17, %v5320_v59  ;;  %vm3161_vm10 = vcmp.eq.s32.totalorder %v3159_v49, 0  ;;  %vm3164_vm11 = vcmp.eq.s32.totalorder %v3159_v49, 2  ;;  %vm2741_vm9 = vcmp.lt.s32.totalorder %v2740_v1, 2 }
 0x198   :  { %v3667_v41 = vpop.eup %3666  ;;  %v2824_v27 = vshrl.u32 %v2806_v42, %v2822_v46  ;;  %v2827_v40 = vadd.s32 127, %v2826_v62  ;;  %v2913_v55 = vsel %vm2911_vm8, %v2912_v16, %v5321_v14  ;;  %vm3160_vm12 = vcmp.lt.s32.totalorder %v3159_v49, 2 }
 0x199   :  { %v3669_v58 = vpop.eup %3668  ;;  %v2746_v31 = vxor.u32 2147483648, %v3667_v41  ;;  %v2914_v10 = vadd.s32 %v2913_v55, %v2909_v22  ;;  %vm2752_vm13 = vcmp.lt.s32.totalorder %v5071_v51, 0  ;;  %v2836_v23 = vsub.s32 4, %v5272_v63 }
 0x19a   :  { %v2743_v48 = vxor.u32 2147483648, %v3669_v58  ;;  %v2825_v30 = vor.u32 %v2824_v27, %v2823_v12  ;;  %v2828_v0 = vshll.u32 %v2827_v40, 23  ;;  %vm2751_vm14 = vcmp.le.f32.partialorder %v2750_v4, 0.7853982 }
 0x19b   :  { %v2747_v15 = vsel %vm2745_vm5, %v2746_v31, %v3669_v58  ;;  %v3166_v50 = vsel %vm3164_vm11, %v2746_v31, %v3669_v58  ;;  %v2915_v34 = vadd.s32 536870912, %v2914_v10  ;;  %v2837_v7 = vsel %vm2752_vm13, %v2836_v23, %v5272_v63 }
 0x19c   :  { %v2744_v32 = vsel %vm2742_vm2, %v3667_v41, %v2743_v48  ;;  %v3163_v21 = vsel %vm3161_vm10, %v3667_v41, %v2743_v48  ;;  %v2829_v45 = vor.u32 4788187, %v2828_v0  ;;  %v2832_v36 = vcvt.s32.f32 %v2825_v30 }
 0x19d   :  { %v2748_v53 = vsel %vm2741_vm9, %v2744_v32, %v2747_v15  ;;  %v3167_v5 = vsel %vm3160_vm12, %v3163_v21, %v3166_v50  ;;  %v5351_v28 = vshrl.u32 %v2915_v34, 30  ;;  %v2839_v33 = vsel %vm2751_vm14, 0, %v2837_v7 }
 0x19e   :  { %v2749_v56 = vsel %vm2738_vm6, nan, %v2748_v53  ;;  %v3168_v43 = vsel %vm2738_vm6, nan, %v3167_v5  ;;  %v2830_v57 = vand.u32 2147483647, %v2829_v45  ;;  %v2843_v52 = vadd.s32 3, %v2839_v33 }
 0x19f   :  { %3521 = vst [vmem:[%s5391_s1 + $0xe8] sm:$0xff] %v2749_v56  ;;  %3541 = vst [vmem:[%s5391_s1 + $0x108] sm:$0xff] %v3168_v43  ;;  %v2917_v44 = vshll.u32 %v5351_v28, 30  ;;  %v2910_v1 = vadd.s32 %v5320_v59, %v5330_v17  ;;  %v3262_v11 = vand.u32 3, %v2839_v33  ;;  %vm2842_vm2 = vweird.f32 %v5071_v51 }
 0x1a0   :  { %v2833_v6 = vmul.f32 %v2832_v36, %v2830_v57  ;;  %v2844_v14 = vand.u32 3, %v2843_v52  ;;  %vm2856_vm5 = vcmp.lt.s32.totalorder %v5091_v25, 0  ;;  %v2940_v41 = vsub.s32 4, %v5351_v28 }
 0x1a1   :  { %v2918_v47 = vsub.s32 %v2914_v10, %v2917_v44  ;;  %vm3267_vm1 = vcmp.eq.s32.totalorder %v3262_v11, 2  ;;  %vm3264_vm4 = vcmp.eq.s32.totalorder %v3262_v11, 0  ;;  %vm3263_vm6 = vcmp.lt.s32.totalorder %v3262_v11, 2 }
 0x1a2   :  { %v2834_v19 = vxor.u32 2147483648, %v2833_v6  ;;  %vm2849_vm0 = vcmp.eq.s32.totalorder %v2844_v14, 2  ;;  %vm2846_vm3 = vcmp.eq.s32.totalorder %v2844_v14, 0  ;;  %vm2845_vm7 = vcmp.lt.s32.totalorder %v2844_v14, 2 }
 0x1a3   :  { %v2920_v54 = vsub.s32 0, %v2918_v47  ;;  %vm2855_vm8 = vcmp.le.f32.partialorder %v2854_v8, 0.7853982  ;;  %v2941_v55 = vsel %vm2856_vm5, %v2940_v41, %v5351_v28 }
 0x1a4   :  { %v2835_v20 = vsel %vm2752_vm13, %v2834_v19, %v2833_v6  ;;  %v2943_v10 = vsel %vm2855_vm8, 0, %v2941_v55 }
 0x1a5   :  { %v2838_v24 = vsel %vm2751_vm14, %v5071_v51, %v2835_v20  ;;  %v3517_v26 = vmin.u32 %v2920_v54, %v2918_v47  ;;  %v2947_v15 = vadd.s32 3, %v2943_v10  ;;  %v3365_v30 = vand.u32 3, %v2943_v10 }
 0x1a6   :  { %3670 = vcosq.f32 %v2838_v24 }
 0x1a7   :  { %3672 = vsinq.f32 %v2838_v24  ;;  %v2922_v35 = vclz %v3517_v26  ;;  %v2948_v8 = vand.u32 3, %v2947_v15  ;;  %vm3370_vm11 = vcmp.eq.s32.totalorder %v3365_v30, 2 }
 0x1a8   :  { %vm3367_vm12 = vcmp.eq.s32.totalorder %v3365_v30, 0  ;;  %vm3366_vm14 = vcmp.lt.s32.totalorder %v3365_v30, 2 }
 0x1a9   :  { %v3518_v38 = vadd.s32 4294967294, %v2922_v35  ;;  %vm2953_vm10 = vcmp.eq.s32.totalorder %v2948_v8, 2  ;;  %vm2950_vm9 = vcmp.eq.s32.totalorder %v2948_v8, 0  ;;  %vm2949_vm13 = vcmp.lt.s32.totalorder %v2948_v8, 2 }
 0x1ab   :  { %vm3519_vm15 = vcmp.lt.s32.totalorder %v3518_v38, 0 }
 0x1ac   :  { %v2925_v2 = vsel %vm3519_vm15, 0, %v3518_v38  ;;  %vm2946_vm15 = vweird.f32 %v5091_v25 }
 0x1ad   :  { %v2926_v4 = vsub.s32 32, %v2925_v2  ;;  %v2927_v29 = vshll.u32 %v2918_v47, %v2925_v2  ;;  %v2930_v18 = vsub.s32 4294967266, %v2925_v2 }
 0x1af   :  { %v2928_v61 = vshrl.u32 %v2910_v1, %v2926_v4  ;;  %v2931_v63 = vadd.s32 127, %v2930_v18 }
 0x1b1   :  { %v2929_v3 = vor.u32 %v2928_v61, %v2927_v29  ;;  %v2932_v60 = vshll.u32 %v2931_v63, 23 }
 0x1b3   :  { %v3671_v9 = vpop.eup %3670  ;;  %v2933_v13 = vor.u32 4788187, %v2932_v60  ;;  %v2936_v49 = vcvt.s32.f32 %v2929_v3 }
 0x1b4   :  { %v3673_v42 = vpop.eup %3672  ;;  %v2850_v37 = vxor.u32 2147483648, %v3671_v9 }
 0x1b5   :  { %v2847_v59 = vxor.u32 2147483648, %v3673_v42  ;;  %v2934_v17 = vand.u32 2147483647, %v2933_v13 }
 0x1b6   :  { %v2851_v39 = vsel %vm2849_vm0, %v2850_v37, %v3673_v42  ;;  %v3269_v22 = vsel %vm3267_vm1, %v2850_v37, %v3673_v42 }
 0x1b7   :  { %v2848_v16 = vsel %vm2846_vm3, %v3671_v9, %v2847_v59  ;;  %v2937_v46 = vmul.f32 %v2936_v49, %v2934_v17  ;;  %v3266_v12 = vsel %vm3264_vm4, %v3671_v9, %v2847_v59 }
 0x1b8   :  { %v2852_v62 = vsel %vm2845_vm7, %v2848_v16, %v2851_v39  ;;  %v3270_v58 = vsel %vm3263_vm6, %v3266_v12, %v3269_v22 }
 0x1b9   :  { %v2853_v31 = vsel %vm2842_vm2, nan, %v2852_v62  ;;  %v2938_v27 = vxor.u32 2147483648, %v2937_v46  ;;  %v3271_v40 = vsel %vm2842_vm2, nan, %v3270_v58 }
 0x1ba   :  { %3522 = vst [vmem:[%s5391_s1 + $0xf0] sm:$0xff] %v2853_v31  ;;  %3542 = vst [vmem:[%s5391_s1 + $0x110] sm:$0xff] %v3271_v40 }
 0x1bb   :  { %v2939_v51 = vsel %vm2856_vm5, %v2938_v27, %v2937_v46 }
 0x1bc   :  { %v2942_v48 = vsel %vm2855_vm8, %v5091_v25, %v2939_v51 }
 0x1bd   :  { %3674 = vcosq.f32 %v2942_v48 }
 0x1be   :  { %3676 = vsinq.f32 %v2942_v48 }
 0x1ca   :  { %v3675_v0 = vpop.eup %3674 }
 0x1cb   :  { %v3677_v50 = vpop.eup %3676  ;;  %v2954_v32 = vxor.u32 2147483648, %v3675_v0 }
 0x1cc   :  { %v2951_v34 = vxor.u32 2147483648, %v3677_v50 }
 0x1cd   :  { %v2955_v21 = vsel %vm2953_vm10, %v2954_v32, %v3677_v50  ;;  %v3372_v53 = vsel %vm3370_vm11, %v2954_v32, %v3677_v50 }
 0x1ce   :  { %v2952_v45 = vsel %vm2950_vm9, %v3675_v0, %v2951_v34  ;;  %v3369_v36 = vsel %vm3367_vm12, %v3675_v0, %v2951_v34 }
 0x1cf   :  { %v2956_v5 = vsel %vm2949_vm13, %v2952_v45, %v2955_v21  ;;  %v3373_v56 = vsel %vm3366_vm14, %v3369_v36, %v3372_v53 }
 0x1d0   :  { %v2957_v28 = vsel %vm2946_vm15, nan, %v2956_v5  ;;  %v3374_v43 = vsel %vm2946_vm15, nan, %v3373_v56 }
 0x1d1   :  { %3523 = vst [vmem:[%s5391_s1 + $0xf8] sm:$0xff] %v2957_v28  ;;  %3543 = vst [vmem:[%s5391_s1 + $0x118] sm:$0xff] %v3374_v43 }

</bundles_post_ra>
